<compile_context>
chip_gen: v7x
topology: tpu7x:2x2x1
jax: 0.10.0
libtpu: 0.0.40
codegen_flags: <defaults>
</compile_context>

<pallas_src>
import functools

import jax
import jax.numpy as jnp
import numpy as np
from jax.experimental import pallas as pl
from jax.experimental.pallas import tpu as pltpu

NEG_SLOPE = 0.01           # nn.LeakyReLU() default negative_slope
LANES = 128                # TPU lane width


def _round_up(x, m):
    return (x + m - 1) // m * m


def _pick_batch_tile(n):
    for d in (8, 4, 2, 1):
        if n % d == 0:
            return d
    return 1


# ----------------------------------------------------------------------------
# Kernels
# ----------------------------------------------------------------------------
def _accumulate_taps(t_ref, w_ref, acc_ref, b, ho, wo):
    """Nine accumulating MXU matmuls for image `b` of the batch tile.

    t_ref  : (TB, 6, (HO+1)*WO, Cin)  bf16  phase/column layout (see _prep_taps)
    w_ref  : (9, Cin, Cout_pad)       bf16
    acc_ref: (HO*WO, Cout_pad)        f32 VMEM scratch
    """
    m = ho * wo
    acc_ref[...] = jnp.zeros_like(acc_ref)
    for ki in range(3):
        p, di = ki % 2, ki // 2                       # row phase / row offset
        for kj in range(3):
            ph = p * 3 + kj                           # phase-column index
            lhs = t_ref[b, ph, pl.ds(di * wo, m), :]  # (M, Cin) bf16
            acc_ref[...] += jnp.dot(lhs, w_ref[ki * 3 + kj],
                                    preferred_element_type=jnp.float32)


def _conv_lrelu_kernel(t_ref, w_ref, b_ref, o_ref, acc_ref, *, tb, ho, wo):
    """Fused 3x3 / stride-2 conv + bias + LeakyReLU for a tile of `tb` images."""
    for b in range(tb):
        _accumulate_taps(t_ref, w_ref, acc_ref, b, ho, wo)
        act = acc_ref[...] + b_ref[...]                    # f32 epilogue
        act = jnp.where(act >= 0.0, act, NEG_SLOPE * act)
        o_ref[b] = act.astype(o_ref.dtype)                 # lane-dense store


def _conv_lrelu_linear_kernel(t_ref, w_ref, b_ref, wl_ref, bl_ref, o_ref,
                              acc_ref, *, tb, ho, wo):
    """Third conv + LeakyReLU with the Linear(4*4*4nh, 1) head fused in."""
    for b in range(tb):
        _accumulate_taps(t_ref, w_ref, acc_ref, b, ho, wo)
        act = acc_ref[...] + b_ref[...]
        act = jnp.where(act >= 0.0, act, NEG_SLOPE * act)  # (M, Cout_pad) f32
        val = jnp.sum(act * wl_ref[...])                   # VPU mul + reduce
        row = jnp.broadcast_to(jnp.reshape(val, (1, 1)),
                               (1, o_ref.shape[-1])) + bl_ref[...]
        o_ref[b] = row.astype(o_ref.dtype)


# ----------------------------------------------------------------------------
# Wrapper-side layout prep (pure XLA layout ops; ~1.5x input bytes, no im2col)
# ----------------------------------------------------------------------------
def _prep_taps(x_nhwc):
    """(N, H, W, C) -> ((N, 6, (H/2+1)*(W/2), C) bf16, HO, WO).

    t[n, p*3+kj, i*WO + ow, c] = x_pad[n, 2*i + p, 2*ow + kj, c], so tap
    (ki, kj) of the stride-2 conv is the contiguous row window
    [(ki//2)*WO, (ki//2)*WO + HO*WO) of phase column (ki%2)*3 + kj.
    """
    n, h, w, c = x_nhwc.shape
    assert h % 2 == 0 and w % 2 == 0, (h, w)
    ho, wo = h // 2, w // 2
    xp = jnp.pad(x_nhwc, ((0, 0), (1, 1), (1, 1), (0, 0)))     # (N, H+2, W+2, C)
    cols = []
    for p in range(2):
        rows_p = xp[:, p::2, :, :]                             # (N, HO+1, W+2, C)
        for kj in range(3):
            cols.append(rows_p[:, :, kj:kj + 2 * wo:2, :])     # (N, HO+1, WO, C)
    t = jnp.stack(cols, axis=1)                                # (N, 6, HO+1, WO, C)
    return t.reshape(n, 6, (ho + 1) * wo, c), ho, wo


def _prep_conv_weights(w_oihw, bias, cop):
    cout, cin, kh, kw = w_oihw.shape
    assert (kh, kw) == (3, 3)
    w_mat = jnp.transpose(w_oihw, (2, 3, 1, 0)).reshape(kh * kw, cin, cout)
    w_mat = jnp.pad(w_mat, ((0, 0), (0, 0), (0, cop - cout))).astype(jnp.bfloat16)
    b_row = jnp.pad(bias.astype(jnp.float32).reshape(1, cout),
                    ((0, 0), (0, cop - cout)))
    return w_mat, b_row


def _compiler_params():
    return pltpu.CompilerParams(
        dimension_semantics=("parallel",),
        vmem_limit_bytes=32 * 1024 * 1024)


# ----------------------------------------------------------------------------
# Layer wrappers
# ----------------------------------------------------------------------------
def conv3x3_s2_lrelu(x_nhwc, w_oihw, bias):
    """PyTorch Conv2d(Cin, Cout, 3, stride=2, padding=1) + LeakyReLU (NHWC)."""
    n = x_nhwc.shape[0]
    cin = x_nhwc.shape[-1]
    cout = w_oihw.shape[0]
    cop = _round_up(cout, LANES)
    t, ho, wo = _prep_taps(x_nhwc.astype(jnp.bfloat16))
    m, sp = ho * wo, (ho + 1) * wo
    w_mat, b_row = _prep_conv_weights(w_oihw, bias, cop)

    tb = _pick_batch_tile(n)
    grid = (n // tb,)
    kernel = functools.partial(_conv_lrelu_kernel, tb=tb, ho=ho, wo=wo)
    cost = pl.CostEstimate(
        flops=2 * n * m * 9 * cin * cop,
        transcendentals=0,
        bytes_accessed=t.size * 2 + w_mat.size * 2 + b_row.size * 4
        + n * m * cop * 2)

    y = pl.pallas_call(
        kernel,
        out_shape=jax.ShapeDtypeStruct((n, m, cop), jnp.bfloat16),
        grid=grid,
        in_specs=[
            pl.BlockSpec((tb, 6, sp, cin), lambda g: (g, 0, 0, 0)),
            pl.BlockSpec((9, cin, cop), lambda g: (0, 0, 0)),
            pl.BlockSpec((1, cop), lambda g: (0, 0)),
        ],
        out_specs=pl.BlockSpec((tb, m, cop), lambda g: (g, 0, 0)),
        scratch_shapes=[pltpu.VMEM((m, cop), jnp.float32)],
        compiler_params=_compiler_params(),
        cost_estimate=cost,
    )(t, w_mat, b_row)

    return y.reshape(n, ho, wo, cop)[..., :cout]       # drop channel lane padding


def conv3x3_s2_lrelu_linear(x_nhwc, w_oihw, bias, wl, bl):
    """Third conv + LeakyReLU with the Linear head fused into the epilogue.

    `wl` is the PyTorch-style (Cout*HO*WO, 1) weight acting on the NCHW flatten;
    its rows are permuted once here to the kernel's (oh*WO + ow, c) layout so no
    runtime NHWC->NCHW transpose of the activation is needed.
    """
    n = x_nhwc.shape[0]
    cin = x_nhwc.shape[-1]
    cout = w_oihw.shape[0]
    cop = _round_up(cout, LANES)
    t, ho, wo = _prep_taps(x_nhwc.astype(jnp.bfloat16))
    m, sp = ho * wo, (ho + 1) * wo
    w_mat, b_row = _prep_conv_weights(w_oihw, bias, cop)

    assert wl.shape == (cout * m, 1), wl.shape
    wl_hw_c = jnp.transpose(wl.reshape(cout, ho, wo), (1, 2, 0)).reshape(m, cout)
    wl_hw_c = jnp.pad(wl_hw_c.astype(jnp.float32), ((0, 0), (0, cop - cout)))
    bl_11 = bl.astype(jnp.float32).reshape(1, 1)

    tb = _pick_batch_tile(n)
    grid = (n // tb,)
    kernel = functools.partial(_conv_lrelu_linear_kernel, tb=tb, ho=ho, wo=wo)
    cost = pl.CostEstimate(
        flops=2 * n * m * 9 * cin * cop + 2 * n * m * cop,
        transcendentals=0,
        bytes_accessed=t.size * 2 + w_mat.size * 2 + wl_hw_c.size * 4
        + n * LANES * 4)

    y = pl.pallas_call(
        kernel,
        out_shape=jax.ShapeDtypeStruct((n, 1, LANES), jnp.float32),
        grid=grid,
        in_specs=[
            pl.BlockSpec((tb, 6, sp, cin), lambda g: (g, 0, 0, 0)),
            pl.BlockSpec((9, cin, cop), lambda g: (0, 0, 0)),
            pl.BlockSpec((1, cop), lambda g: (0, 0)),
            pl.BlockSpec((m, cop), lambda g: (0, 0)),
            pl.BlockSpec((1, 1), lambda g: (0, 0)),
        ],
        out_specs=pl.BlockSpec((tb, 1, LANES), lambda g: (g, 0, 0)),
        scratch_shapes=[pltpu.VMEM((m, cop), jnp.float32)],
        compiler_params=_compiler_params(),
        cost_estimate=cost,
    )(t, w_mat, b_row, wl_hw_c, bl_11)

    return y[:, 0, :1]                                 # (N, 1) f32


# ----------------------------------------------------------------------------
# Discriminator: parameters + forward
# ----------------------------------------------------------------------------
def init_discriminator_params(key, nh):
    ks = jax.random.split(key, 8)
    scale = 0.05

    def w(k, shape):
        return scale * jax.random.normal(k, shape, dtype=jnp.float32)

    return {
        "w1": w(ks[0], (nh, 3, 3, 3)),          # Conv2d(3, nh, 3, 2, 1)
        "b1": w(ks[1], (nh,)),
        "w2": w(ks[2], (2 * nh, nh, 3, 3)),     # Conv2d(nh, 2nh, 3, 2, 1)
        "b2": w(ks[3], (2 * nh,)),
        "w3": w(ks[4], (4 * nh, 2 * nh, 3, 3)), # Conv2d(2nh, 4nh, 3, 2, 1)
        "b3": w(ks[5], (4 * nh,)),
        "wl": w(ks[6], (4 * 4 * 4 * nh, 1)),    # Linear(4*4*4nh, 1)
        "bl": w(ks[7], (1,)),
    }


def discriminator_forward(params, x_nchw):
    x = jnp.transpose(x_nchw, (0, 2, 3, 1)).astype(jnp.bfloat16)   # NCHW -> NHWC
    x = conv3x3_s2_lrelu(x, params["w1"], params["b1"])            # (N,16,16, nh)
    x = conv3x3_s2_lrelu(x, params["w2"], params["b2"])            # (N, 8, 8,2nh)
    out = conv3x3_s2_lrelu_linear(x, params["w3"], params["b3"],
                                  params["wl"], params["bl"])      # (N, 1)
    return out


# ----------------------------------------------------------------------------
# Pure-JAX reference (same bf16-operand / f32-accumulate numerics)
# ----------------------------------------------------------------------------
def reference_forward(params, x_nchw):
    def conv(x, wt, bias, cast_out):
        y = jax.lax.conv_general_dilated(
            x.astype(jnp.bfloat16),
            jnp.transpose(wt, (2, 3, 1, 0)).astype(jnp.bfloat16),
            window_strides=(2, 2), padding=((1, 1), (1, 1)),
            dimension_numbers=("NHWC", "HWIO", "NHWC"),
            preferred_element_type=jnp.float32)
        y = y + bias.astype(jnp.float32)
        y = jnp.where(y >= 0.0, y, NEG_SLOPE * y)
        return y.astype(jnp.bfloat16) if cast_out else y

    x = jnp.transpose(x_nchw, (0, 2, 3, 1))
    a1 = conv(x, params["w1"], params["b1"], True)
    a2 = conv(a1, params["w2"], params["b2"], True)
    a3 = conv(a2, params["w3"], params["b3"], False)               # f32
    n = a3.shape[0]
    flat = jnp.transpose(a3, (0, 3, 1, 2)).reshape(n, -1)          # NCHW flatten
    return jnp.dot(flat, params["wl"],
                   precision=jax.lax.Precision.HIGHEST) + params["bl"]


if __name__ == "__main__":
    # Spatial must be 32 (32 -> 16 -> 8 -> 4 so the 4*4*4*nh flatten holds);
    # nh=32 keeps the demo small (module default is 128).
    NH = 32
    BATCH = 2

    key = jax.random.PRNGKey(0)
    k_params, k_input = jax.random.split(key)
    params = init_discriminator_params(k_params, NH)
    x = jax.random.normal(k_input, (BATCH, 3, 32, 32), dtype=jnp.float32)

    fwd = jax.jit(discriminator_forward)
    out = jax.block_until_ready(fwd(params, x))
    assert out.shape == (BATCH, 1), out.shape

    ref = jax.block_until_ready(jax.jit(reference_forward)(params, x))
    np.testing.assert_allclose(np.asarray(out, dtype=np.float32),
                               np.asarray(ref, dtype=np.float32),
                               rtol=2e-2, atol=2e-3)
    print("KERNEL_OK")
</pallas_src>

<mosaic_0001>
module attributes {stable_mosaic.version = 11 : i64} {
  func.func @_conv_lrelu_kernel(%arg0: i32, %arg1: memref<2x6x272x3xbf16, #tpu.memory_space<vmem>>, %arg2: memref<9x3x128xbf16, #tpu.memory_space<vmem>>, %arg3: memref<1x128xf32, #tpu.memory_space<vmem>>, %arg4: memref<2x256x128xbf16, #tpu.memory_space<vmem>>, %arg5: memref<256x128xf32, #tpu.memory_space<vmem>>) attributes {dimension_semantics = [#tpu.dimension_semantics<parallel>], iteration_bounds = array<i64: 1>, scalar_prefetch = 0 : i64, scratch_operands = 1 : i64, tpu.core_type = #tpu.core_type<tc>, window_params = [{transform_indices = @transform_0, window_bounds = array<i64: 2, 6, 272, 3>}, {pipeline_mode = #tpu.pipeline_mode<synchronous>, transform_indices = @transform_1, window_bounds = array<i64: 9, 3, 128>}, {pipeline_mode = #tpu.pipeline_mode<synchronous>, transform_indices = @transform_2, window_bounds = array<i64: 1, 128>}, {transform_indices = @transform_3, window_bounds = array<i64: 2, 256, 128>}]} {
    %cst = arith.constant 0.000000e+00 : f32
    %0 = vector.broadcast %cst : f32 to vector<256x128xf32>
    %c0 = arith.constant 0 : index
    %c0_0 = arith.constant 0 : index
    %1 = vector.load %arg5[%c0, %c0_0] : memref<256x128xf32, #tpu.memory_space<vmem>>, vector<256x128xf32>
    tpu.vector_store %arg5[%c0, %c0_0], %0 {strides = array<i32>} : memref<256x128xf32, #tpu.memory_space<vmem>>, vector<256x128xf32>,
    %c0_1 = arith.constant 0 : index
    %c0_2 = arith.constant 0 : index
    %c0_3 = arith.constant 0 : index
    %c0_4 = arith.constant 0 : index
    %2 = vector.load %arg1[%c0_1, %c0_2, %c0_3, %c0_4] : memref<2x6x272x3xbf16, #tpu.memory_space<vmem>>, vector<1x1x256x3xbf16>
    %3 = vector.shape_cast %2 : vector<1x1x256x3xbf16> to vector<256x3xbf16>
    %c0_5 = arith.constant 0 : index
    %c0_6 = arith.constant 0 : index
    %4 = vector.load %arg5[%c0_5, %c0_6] : memref<256x128xf32, #tpu.memory_space<vmem>>, vector<256x128xf32>
    %c0_7 = arith.constant 0 : index
    %c0_8 = arith.constant 0 : index
    %c0_9 = arith.constant 0 : index
    %5 = vector.load %arg2[%c0_7, %c0_8, %c0_9] : memref<9x3x128xbf16, #tpu.memory_space<vmem>>, vector<1x3x128xbf16>
    %6 = vector.shape_cast %5 : vector<1x3x128xbf16> to vector<3x128xbf16>
    %cst_10 = arith.constant dense<0.000000e+00> : vector<256x128xf32>
    %7 = tpu.matmul %3, %6, %cst_10 {dimension_numbers = #tpu.dot_dimension_numbers<[1], [0], [0], [1], [0, 0, 1, 1], [], []>} : vector<256x3xbf16>, vector<3x128xbf16>, vector<256x128xf32> -> vector<256x128xf32>
    %8 = arith.addf %4, %7 : vector<256x128xf32>
    %c0_11 = arith.constant 0 : index
    %c0_12 = arith.constant 0 : index
    %9 = vector.load %arg5[%c0_11, %c0_12] : memref<256x128xf32, #tpu.memory_space<vmem>>, vector<256x128xf32>
    tpu.vector_store %arg5[%c0_11, %c0_12], %8 {strides = array<i32>} : memref<256x128xf32, #tpu.memory_space<vmem>>, vector<256x128xf32>,
    %c0_13 = arith.constant 0 : index
    %c1 = arith.constant 1 : index
    %c0_14 = arith.constant 0 : index
    %c0_15 = arith.constant 0 : index
    %10 = vector.load %arg1[%c0_13, %c1, %c0_14, %c0_15] : memref<2x6x272x3xbf16, #tpu.memory_space<vmem>>, vector<1x1x256x3xbf16>
    %11 = vector.shape_cast %10 : vector<1x1x256x3xbf16> to vector<256x3xbf16>
    %c0_16 = arith.constant 0 : index
    %c0_17 = arith.constant 0 : index
    %12 = vector.load %arg5[%c0_16, %c0_17] : memref<256x128xf32, #tpu.memory_space<vmem>>, vector<256x128xf32>
    %c1_18 = arith.constant 1 : index
    %c0_19 = arith.constant 0 : index
    %c0_20 = arith.constant 0 : index
    %13 = vector.load %arg2[%c1_18, %c0_19, %c0_20] : memref<9x3x128xbf16, #tpu.memory_space<vmem>>, vector<1x3x128xbf16>
    %14 = vector.shape_cast %13 : vector<1x3x128xbf16> to vector<3x128xbf16>
    %cst_21 = arith.constant dense<0.000000e+00> : vector<256x128xf32>
    %15 = tpu.matmul %11, %14, %cst_21 {dimension_numbers = #tpu.dot_dimension_numbers<[1], [0], [0], [1], [0, 0, 1, 1], [], []>} : vector<256x3xbf16>, vector<3x128xbf16>, vector<256x128xf32> -> vector<256x128xf32>
    %16 = arith.addf %12, %15 : vector<256x128xf32>
    %c0_22 = arith.constant 0 : index
    %c0_23 = arith.constant 0 : index
    %17 = vector.load %arg5[%c0_22, %c0_23] : memref<256x128xf32, #tpu.memory_space<vmem>>, vector<256x128xf32>
    tpu.vector_store %arg5[%c0_22, %c0_23], %16 {strides = array<i32>} : memref<256x128xf32, #tpu.memory_space<vmem>>, vector<256x128xf32>,
    %c0_24 = arith.constant 0 : index
    %c2 = arith.constant 2 : index
    %c0_25 = arith.constant 0 : index
    %c0_26 = arith.constant 0 : index
    %18 = vector.load %arg1[%c0_24, %c2, %c0_25, %c0_26] : memref<2x6x272x3xbf16, #tpu.memory_space<vmem>>, vector<1x1x256x3xbf16>
    %19 = vector.shape_cast %18 : vector<1x1x256x3xbf16> to vector<256x3xbf16>
    %c0_27 = arith.constant 0 : index
    %c0_28 = arith.constant 0 : index
    %20 = vector.load %arg5[%c0_27, %c0_28] : memref<256x128xf32, #tpu.memory_space<vmem>>, vector<256x128xf32>
    %c2_29 = arith.constant 2 : index
    %c0_30 = arith.constant 0 : index
    %c0_31 = arith.constant 0 : index
    %21 = vector.load %arg2[%c2_29, %c0_30, %c0_31] : memref<9x3x128xbf16, #tpu.memory_space<vmem>>, vector<1x3x128xbf16>
    %22 = vector.shape_cast %21 : vector<1x3x128xbf16> to vector<3x128xbf16>
    %cst_32 = arith.constant dense<0.000000e+00> : vector<256x128xf32>
    %23 = tpu.matmul %19, %22, %cst_32 {dimension_numbers = #tpu.dot_dimension_numbers<[1], [0], [0], [1], [0, 0, 1, 1], [], []>} : vector<256x3xbf16>, vector<3x128xbf16>, vector<256x128xf32> -> vector<256x128xf32>
    %24 = arith.addf %20, %23 : vector<256x128xf32>
    %c0_33 = arith.constant 0 : index
    %c0_34 = arith.constant 0 : index
    %25 = vector.load %arg5[%c0_33, %c0_34] : memref<256x128xf32, #tpu.memory_space<vmem>>, vector<256x128xf32>
    tpu.vector_store %arg5[%c0_33, %c0_34], %24 {strides = array<i32>} : memref<256x128xf32, #tpu.memory_space<vmem>>, vector<256x128xf32>,
    %c0_35 = arith.constant 0 : index
    %c3 = arith.constant 3 : index
    %c0_36 = arith.constant 0 : index
    %c0_37 = arith.constant 0 : index
    %26 = vector.load %arg1[%c0_35, %c3, %c0_36, %c0_37] : memref<2x6x272x3xbf16, #tpu.memory_space<vmem>>, vector<1x1x256x3xbf16>
    %27 = vector.shape_cast %26 : vector<1x1x256x3xbf16> to vector<256x3xbf16>
    %c0_38 = arith.constant 0 : index
    %c0_39 = arith.constant 0 : index
    %28 = vector.load %arg5[%c0_38, %c0_39] : memref<256x128xf32, #tpu.memory_space<vmem>>, vector<256x128xf32>
    %c3_40 = arith.constant 3 : index
    %c0_41 = arith.constant 0 : index
    %c0_42 = arith.constant 0 : index
    %29 = vector.load %arg2[%c3_40, %c0_41, %c0_42] : memref<9x3x128xbf16, #tpu.memory_space<vmem>>, vector<1x3x128xbf16>
    %30 = vector.shape_cast %29 : vector<1x3x128xbf16> to vector<3x128xbf16>
    %cst_43 = arith.constant dense<0.000000e+00> : vector<256x128xf32>
    %31 = tpu.matmul %27, %30, %cst_43 {dimension_numbers = #tpu.dot_dimension_numbers<[1], [0], [0], [1], [0, 0, 1, 1], [], []>} : vector<256x3xbf16>, vector<3x128xbf16>, vector<256x128xf32> -> vector<256x128xf32>
    %32 = arith.addf %28, %31 : vector<256x128xf32>
    %c0_44 = arith.constant 0 : index
    %c0_45 = arith.constant 0 : index
    %33 = vector.load %arg5[%c0_44, %c0_45] : memref<256x128xf32, #tpu.memory_space<vmem>>, vector<256x128xf32>
    tpu.vector_store %arg5[%c0_44, %c0_45], %32 {strides = array<i32>} : memref<256x128xf32, #tpu.memory_space<vmem>>, vector<256x128xf32>,
    %c0_46 = arith.constant 0 : index
    %c4 = arith.constant 4 : index
    %c0_47 = arith.constant 0 : index
    %c0_48 = arith.constant 0 : index
    %34 = vector.load %arg1[%c0_46, %c4, %c0_47, %c0_48] : memref<2x6x272x3xbf16, #tpu.memory_space<vmem>>, vector<1x1x256x3xbf16>
    %35 = vector.shape_cast %34 : vector<1x1x256x3xbf16> to vector<256x3xbf16>
    %c0_49 = arith.constant 0 : index
    %c0_50 = arith.constant 0 : index
    %36 = vector.load %arg5[%c0_49, %c0_50] : memref<256x128xf32, #tpu.memory_space<vmem>>, vector<256x128xf32>
    %c4_51 = arith.constant 4 : index
    %c0_52 = arith.constant 0 : index
    %c0_53 = arith.constant 0 : index
    %37 = vector.load %arg2[%c4_51, %c0_52, %c0_53] : memref<9x3x128xbf16, #tpu.memory_space<vmem>>, vector<1x3x128xbf16>
    %38 = vector.shape_cast %37 : vector<1x3x128xbf16> to vector<3x128xbf16>
    %cst_54 = arith.constant dense<0.000000e+00> : vector<256x128xf32>
    %39 = tpu.matmul %35, %38, %cst_54 {dimension_numbers = #tpu.dot_dimension_numbers<[1], [0], [0], [1], [0, 0, 1, 1], [], []>} : vector<256x3xbf16>, vector<3x128xbf16>, vector<256x128xf32> -> vector<256x128xf32>
    %40 = arith.addf %36, %39 : vector<256x128xf32>
    %c0_55 = arith.constant 0 : index
    %c0_56 = arith.constant 0 : index
    %41 = vector.load %arg5[%c0_55, %c0_56] : memref<256x128xf32, #tpu.memory_space<vmem>>, vector<256x128xf32>
    tpu.vector_store %arg5[%c0_55, %c0_56], %40 {strides = array<i32>} : memref<256x128xf32, #tpu.memory_space<vmem>>, vector<256x128xf32>,
    %c0_57 = arith.constant 0 : index
    %c5 = arith.constant 5 : index
    %c0_58 = arith.constant 0 : index
    %c0_59 = arith.constant 0 : index
    %42 = vector.load %arg1[%c0_57, %c5, %c0_58, %c0_59] : memref<2x6x272x3xbf16, #tpu.memory_space<vmem>>, vector<1x1x256x3xbf16>
    %43 = vector.shape_cast %42 : vector<1x1x256x3xbf16> to vector<256x3xbf16>
    %c0_60 = arith.constant 0 : index
    %c0_61 = arith.constant 0 : index
    %44 = vector.load %arg5[%c0_60, %c0_61] : memref<256x128xf32, #tpu.memory_space<vmem>>, vector<256x128xf32>
    %c5_62 = arith.constant 5 : index
    %c0_63 = arith.constant 0 : index
    %c0_64 = arith.constant 0 : index
    %45 = vector.load %arg2[%c5_62, %c0_63, %c0_64] : memref<9x3x128xbf16, #tpu.memory_space<vmem>>, vector<1x3x128xbf16>
    %46 = vector.shape_cast %45 : vector<1x3x128xbf16> to vector<3x128xbf16>
    %cst_65 = arith.constant dense<0.000000e+00> : vector<256x128xf32>
    %47 = tpu.matmul %43, %46, %cst_65 {dimension_numbers = #tpu.dot_dimension_numbers<[1], [0], [0], [1], [0, 0, 1, 1], [], []>} : vector<256x3xbf16>, vector<3x128xbf16>, vector<256x128xf32> -> vector<256x128xf32>
    %48 = arith.addf %44, %47 : vector<256x128xf32>
    %c0_66 = arith.constant 0 : index
    %c0_67 = arith.constant 0 : index
    %49 = vector.load %arg5[%c0_66, %c0_67] : memref<256x128xf32, #tpu.memory_space<vmem>>, vector<256x128xf32>
    tpu.vector_store %arg5[%c0_66, %c0_67], %48 {strides = array<i32>} : memref<256x128xf32, #tpu.memory_space<vmem>>, vector<256x128xf32>,
    %c0_68 = arith.constant 0 : index
    %c0_69 = arith.constant 0 : index
    %c16 = arith.constant 16 : index
    %c0_70 = arith.constant 0 : index
    %50 = vector.load %arg1[%c0_68, %c0_69, %c16, %c0_70] : memref<2x6x272x3xbf16, #tpu.memory_space<vmem>>, vector<1x1x256x3xbf16>
    %51 = vector.shape_cast %50 : vector<1x1x256x3xbf16> to vector<256x3xbf16>
    %c0_71 = arith.constant 0 : index
    %c0_72 = arith.constant 0 : index
    %52 = vector.load %arg5[%c0_71, %c0_72] : memref<256x128xf32, #tpu.memory_space<vmem>>, vector<256x128xf32>
    %c6 = arith.constant 6 : index
    %c0_73 = arith.constant 0 : index
    %c0_74 = arith.constant 0 : index
    %53 = vector.load %arg2[%c6, %c0_73, %c0_74] : memref<9x3x128xbf16, #tpu.memory_space<vmem>>, vector<1x3x128xbf16>
    %54 = vector.shape_cast %53 : vector<1x3x128xbf16> to vector<3x128xbf16>
    %cst_75 = arith.constant dense<0.000000e+00> : vector<256x128xf32>
    %55 = tpu.matmul %51, %54, %cst_75 {dimension_numbers = #tpu.dot_dimension_numbers<[1], [0], [0], [1], [0, 0, 1, 1], [], []>} : vector<256x3xbf16>, vector<3x128xbf16>, vector<256x128xf32> -> vector<256x128xf32>
    %56 = arith.addf %52, %55 : vector<256x128xf32>
    %c0_76 = arith.constant 0 : index
    %c0_77 = arith.constant 0 : index
    %57 = vector.load %arg5[%c0_76, %c0_77] : memref<256x128xf32, #tpu.memory_space<vmem>>, vector<256x128xf32>
    tpu.vector_store %arg5[%c0_76, %c0_77], %56 {strides = array<i32>} : memref<256x128xf32, #tpu.memory_space<vmem>>, vector<256x128xf32>,
    %c0_78 = arith.constant 0 : index
    %c1_79 = arith.constant 1 : index
    %c16_80 = arith.constant 16 : index
    %c0_81 = arith.constant 0 : index
    %58 = vector.load %arg1[%c0_78, %c1_79, %c16_80, %c0_81] : memref<2x6x272x3xbf16, #tpu.memory_space<vmem>>, vector<1x1x256x3xbf16>
    %59 = vector.shape_cast %58 : vector<1x1x256x3xbf16> to vector<256x3xbf16>
    %c0_82 = arith.constant 0 : index
    %c0_83 = arith.constant 0 : index
    %60 = vector.load %arg5[%c0_82, %c0_83] : memref<256x128xf32, #tpu.memory_space<vmem>>, vector<256x128xf32>
    %c7 = arith.constant 7 : index
    %c0_84 = arith.constant 0 : index
    %c0_85 = arith.constant 0 : index
    %61 = vector.load %arg2[%c7, %c0_84, %c0_85] : memref<9x3x128xbf16, #tpu.memory_space<vmem>>, vector<1x3x128xbf16>
    %62 = vector.shape_cast %61 : vector<1x3x128xbf16> to vector<3x128xbf16>
    %cst_86 = arith.constant dense<0.000000e+00> : vector<256x128xf32>
    %63 = tpu.matmul %59, %62, %cst_86 {dimension_numbers = #tpu.dot_dimension_numbers<[1], [0], [0], [1], [0, 0, 1, 1], [], []>} : vector<256x3xbf16>, vector<3x128xbf16>, vector<256x128xf32> -> vector<256x128xf32>
    %64 = arith.addf %60, %63 : vector<256x128xf32>
    %c0_87 = arith.constant 0 : index
    %c0_88 = arith.constant 0 : index
    %65 = vector.load %arg5[%c0_87, %c0_88] : memref<256x128xf32, #tpu.memory_space<vmem>>, vector<256x128xf32>
    tpu.vector_store %arg5[%c0_87, %c0_88], %64 {strides = array<i32>} : memref<256x128xf32, #tpu.memory_space<vmem>>, vector<256x128xf32>,
    %c0_89 = arith.constant 0 : index
    %c2_90 = arith.constant 2 : index
    %c16_91 = arith.constant 16 : index
    %c0_92 = arith.constant 0 : index
    %66 = vector.load %arg1[%c0_89, %c2_90, %c16_91, %c0_92] : memref<2x6x272x3xbf16, #tpu.memory_space<vmem>>, vector<1x1x256x3xbf16>
    %67 = vector.shape_cast %66 : vector<1x1x256x3xbf16> to vector<256x3xbf16>
    %c0_93 = arith.constant 0 : index
    %c0_94 = arith.constant 0 : index
    %68 = vector.load %arg5[%c0_93, %c0_94] : memref<256x128xf32, #tpu.memory_space<vmem>>, vector<256x128xf32>
    %c8 = arith.constant 8 : index
    %c0_95 = arith.constant 0 : index
    %c0_96 = arith.constant 0 : index
    %69 = vector.load %arg2[%c8, %c0_95, %c0_96] : memref<9x3x128xbf16, #tpu.memory_space<vmem>>, vector<1x3x128xbf16>
    %70 = vector.shape_cast %69 : vector<1x3x128xbf16> to vector<3x128xbf16>
    %cst_97 = arith.constant dense<0.000000e+00> : vector<256x128xf32>
    %71 = tpu.matmul %67, %70, %cst_97 {dimension_numbers = #tpu.dot_dimension_numbers<[1], [0], [0], [1], [0, 0, 1, 1], [], []>} : vector<256x3xbf16>, vector<3x128xbf16>, vector<256x128xf32> -> vector<256x128xf32>
    %72 = arith.addf %68, %71 : vector<256x128xf32>
    %c0_98 = arith.constant 0 : index
    %c0_99 = arith.constant 0 : index
    %73 = vector.load %arg5[%c0_98, %c0_99] : memref<256x128xf32, #tpu.memory_space<vmem>>, vector<256x128xf32>
    tpu.vector_store %arg5[%c0_98, %c0_99], %72 {strides = array<i32>} : memref<256x128xf32, #tpu.memory_space<vmem>>, vector<256x128xf32>,
    %c0_100 = arith.constant 0 : index
    %c0_101 = arith.constant 0 : index
    %74 = vector.load %arg5[%c0_100, %c0_101] : memref<256x128xf32, #tpu.memory_space<vmem>>, vector<256x128xf32>
    %c0_102 = arith.constant 0 : index
    %c0_103 = arith.constant 0 : index
    %75 = vector.load %arg3[%c0_102, %c0_103] : memref<1x128xf32, #tpu.memory_space<vmem>>, vector<1x128xf32>
    %76 = vector.broadcast %75 : vector<1x128xf32> to vector<256x128xf32>
    %77 = arith.addf %74, %76 : vector<256x128xf32>
    %cst_104 = arith.constant 0.000000e+00 : f32
    %78 = vector.broadcast %cst_104 : f32 to vector<256x128xf32>
    %79 = arith.cmpf oge, %77, %78 : vector<256x128xf32>
    %cst_105 = arith.constant 0.00999999977 : f32
    %80 = vector.broadcast %cst_105 : f32 to vector<256x128xf32>
    %81 = arith.mulf %80, %77 : vector<256x128xf32>
    %82 = arith.select %79, %77, %81 : vector<256x128xi1>, vector<256x128xf32>
    %83 = arith.truncf %82 : vector<256x128xf32> to vector<256x128xbf16>
    %c0_106 = arith.constant 0 : index
    %c0_107 = arith.constant 0 : index
    %c0_108 = arith.constant 0 : index
    %84 = vector.load %arg4[%c0_106, %c0_107, %c0_108] : memref<2x256x128xbf16, #tpu.memory_space<vmem>>, vector<1x256x128xbf16>
    %85 = vector.shape_cast %84 : vector<1x256x128xbf16> to vector<256x128xbf16>
    %86 = vector.shape_cast %83 : vector<256x128xbf16> to vector<1x256x128xbf16>
    tpu.vector_store %arg4[%c0_106, %c0_107, %c0_108], %86 {strides = array<i32>} : memref<2x256x128xbf16, #tpu.memory_space<vmem>>, vector<1x256x128xbf16>,
    %cst_109 = arith.constant 0.000000e+00 : f32
    %87 = vector.broadcast %cst_109 : f32 to vector<256x128xf32>
    %c0_110 = arith.constant 0 : index
    %c0_111 = arith.constant 0 : index
    %88 = vector.load %arg5[%c0_110, %c0_111] : memref<256x128xf32, #tpu.memory_space<vmem>>, vector<256x128xf32>
    tpu.vector_store %arg5[%c0_110, %c0_111], %87 {strides = array<i32>} : memref<256x128xf32, #tpu.memory_space<vmem>>, vector<256x128xf32>,
    %c1_112 = arith.constant 1 : index
    %c0_113 = arith.constant 0 : index
    %c0_114 = arith.constant 0 : index
    %c0_115 = arith.constant 0 : index
    %89 = vector.load %arg1[%c1_112, %c0_113, %c0_114, %c0_115] : memref<2x6x272x3xbf16, #tpu.memory_space<vmem>>, vector<1x1x256x3xbf16>
    %90 = vector.shape_cast %89 : vector<1x1x256x3xbf16> to vector<256x3xbf16>
    %c0_116 = arith.constant 0 : index
    %c0_117 = arith.constant 0 : index
    %91 = vector.load %arg5[%c0_116, %c0_117] : memref<256x128xf32, #tpu.memory_space<vmem>>, vector<256x128xf32>
    %c0_118 = arith.constant 0 : index
    %c0_119 = arith.constant 0 : index
    %c0_120 = arith.constant 0 : index
    %92 = vector.load %arg2[%c0_118, %c0_119, %c0_120] : memref<9x3x128xbf16, #tpu.memory_space<vmem>>, vector<1x3x128xbf16>
    %93 = vector.shape_cast %92 : vector<1x3x128xbf16> to vector<3x128xbf16>
    %cst_121 = arith.constant dense<0.000000e+00> : vector<256x128xf32>
    %94 = tpu.matmul %90, %93, %cst_121 {dimension_numbers = #tpu.dot_dimension_numbers<[1], [0], [0], [1], [0, 0, 1, 1], [], []>} : vector<256x3xbf16>, vector<3x128xbf16>, vector<256x128xf32> -> vector<256x128xf32>
    %95 = arith.addf %91, %94 : vector<256x128xf32>
    %c0_122 = arith.constant 0 : index
    %c0_123 = arith.constant 0 : index
    %96 = vector.load %arg5[%c0_122, %c0_123] : memref<256x128xf32, #tpu.memory_space<vmem>>, vector<256x128xf32>
    tpu.vector_store %arg5[%c0_122, %c0_123], %95 {strides = array<i32>} : memref<256x128xf32, #tpu.memory_space<vmem>>, vector<256x128xf32>,
    %c1_124 = arith.constant 1 : index
    %c1_125 = arith.constant 1 : index
    %c0_126 = arith.constant 0 : index
    %c0_127 = arith.constant 0 : index
    %97 = vector.load %arg1[%c1_124, %c1_125, %c0_126, %c0_127] : memref<2x6x272x3xbf16, #tpu.memory_space<vmem>>, vector<1x1x256x3xbf16>
    %98 = vector.shape_cast %97 : vector<1x1x256x3xbf16> to vector<256x3xbf16>
    %c0_128 = arith.constant 0 : index
    %c0_129 = arith.constant 0 : index
    %99 = vector.load %arg5[%c0_128, %c0_129] : memref<256x128xf32, #tpu.memory_space<vmem>>, vector<256x128xf32>
    %c1_130 = arith.constant 1 : index
    %c0_131 = arith.constant 0 : index
    %c0_132 = arith.constant 0 : index
    %100 = vector.load %arg2[%c1_130, %c0_131, %c0_132] : memref<9x3x128xbf16, #tpu.memory_space<vmem>>, vector<1x3x128xbf16>
    %101 = vector.shape_cast %100 : vector<1x3x128xbf16> to vector<3x128xbf16>
    %cst_133 = arith.constant dense<0.000000e+00> : vector<256x128xf32>
    %102 = tpu.matmul %98, %101, %cst_133 {dimension_numbers = #tpu.dot_dimension_numbers<[1], [0], [0], [1], [0, 0, 1, 1], [], []>} : vector<256x3xbf16>, vector<3x128xbf16>, vector<256x128xf32> -> vector<256x128xf32>
    %103 = arith.addf %99, %102 : vector<256x128xf32>
    %c0_134 = arith.constant 0 : index
    %c0_135 = arith.constant 0 : index
    %104 = vector.load %arg5[%c0_134, %c0_135] : memref<256x128xf32, #tpu.memory_space<vmem>>, vector<256x128xf32>
    tpu.vector_store %arg5[%c0_134, %c0_135], %103 {strides = array<i32>} : memref<256x128xf32, #tpu.memory_space<vmem>>, vector<256x128xf32>,
    %c1_136 = arith.constant 1 : index
    %c2_137 = arith.constant 2 : index
    %c0_138 = arith.constant 0 : index
    %c0_139 = arith.constant 0 : index
    %105 = vector.load %arg1[%c1_136, %c2_137, %c0_138, %c0_139] : memref<2x6x272x3xbf16, #tpu.memory_space<vmem>>, vector<1x1x256x3xbf16>
    %106 = vector.shape_cast %105 : vector<1x1x256x3xbf16> to vector<256x3xbf16>
    %c0_140 = arith.constant 0 : index
    %c0_141 = arith.constant 0 : index
    %107 = vector.load %arg5[%c0_140, %c0_141] : memref<256x128xf32, #tpu.memory_space<vmem>>, vector<256x128xf32>
    %c2_142 = arith.constant 2 : index
    %c0_143 = arith.constant 0 : index
    %c0_144 = arith.constant 0 : index
    %108 = vector.load %arg2[%c2_142, %c0_143, %c0_144] : memref<9x3x128xbf16, #tpu.memory_space<vmem>>, vector<1x3x128xbf16>
    %109 = vector.shape_cast %108 : vector<1x3x128xbf16> to vector<3x128xbf16>
    %cst_145 = arith.constant dense<0.000000e+00> : vector<256x128xf32>
    %110 = tpu.matmul %106, %109, %cst_145 {dimension_numbers = #tpu.dot_dimension_numbers<[1], [0], [0], [1], [0, 0, 1, 1], [], []>} : vector<256x3xbf16>, vector<3x128xbf16>, vector<256x128xf32> -> vector<256x128xf32>
    %111 = arith.addf %107, %110 : vector<256x128xf32>
    %c0_146 = arith.constant 0 : index
    %c0_147 = arith.constant 0 : index
    %112 = vector.load %arg5[%c0_146, %c0_147] : memref<256x128xf32, #tpu.memory_space<vmem>>, vector<256x128xf32>
    tpu.vector_store %arg5[%c0_146, %c0_147], %111 {strides = array<i32>} : memref<256x128xf32, #tpu.memory_space<vmem>>, vector<256x128xf32>,
    %c1_148 = arith.constant 1 : index
    %c3_149 = arith.constant 3 : index
    %c0_150 = arith.constant 0 : index
    %c0_151 = arith.constant 0 : index
    %113 = vector.load %arg1[%c1_148, %c3_149, %c0_150, %c0_151] : memref<2x6x272x3xbf16, #tpu.memory_space<vmem>>, vector<1x1x256x3xbf16>
    %114 = vector.shape_cast %113 : vector<1x1x256x3xbf16> to vector<256x3xbf16>
    %c0_152 = arith.constant 0 : index
    %c0_153 = arith.constant 0 : index
    %115 = vector.load %arg5[%c0_152, %c0_153] : memref<256x128xf32, #tpu.memory_space<vmem>>, vector<256x128xf32>
    %c3_154 = arith.constant 3 : index
    %c0_155 = arith.constant 0 : index
    %c0_156 = arith.constant 0 : index
    %116 = vector.load %arg2[%c3_154, %c0_155, %c0_156] : memref<9x3x128xbf16, #tpu.memory_space<vmem>>, vector<1x3x128xbf16>
    %117 = vector.shape_cast %116 : vector<1x3x128xbf16> to vector<3x128xbf16>
    %cst_157 = arith.constant dense<0.000000e+00> : vector<256x128xf32>
    %118 = tpu.matmul %114, %117, %cst_157 {dimension_numbers = #tpu.dot_dimension_numbers<[1], [0], [0], [1], [0, 0, 1, 1], [], []>} : vector<256x3xbf16>, vector<3x128xbf16>, vector<256x128xf32> -> vector<256x128xf32>
    %119 = arith.addf %115, %118 : vector<256x128xf32>
    %c0_158 = arith.constant 0 : index
    %c0_159 = arith.constant 0 : index
    %120 = vector.load %arg5[%c0_158, %c0_159] : memref<256x128xf32, #tpu.memory_space<vmem>>, vector<256x128xf32>
    tpu.vector_store %arg5[%c0_158, %c0_159], %119 {strides = array<i32>} : memref<256x128xf32, #tpu.memory_space<vmem>>, vector<256x128xf32>,
    %c1_160 = arith.constant 1 : index
    %c4_161 = arith.constant 4 : index
    %c0_162 = arith.constant 0 : index
    %c0_163 = arith.constant 0 : index
    %121 = vector.load %arg1[%c1_160, %c4_161, %c0_162, %c0_163] : memref<2x6x272x3xbf16, #tpu.memory_space<vmem>>, vector<1x1x256x3xbf16>
    %122 = vector.shape_cast %121 : vector<1x1x256x3xbf16> to vector<256x3xbf16>
    %c0_164 = arith.constant 0 : index
    %c0_165 = arith.constant 0 : index
    %123 = vector.load %arg5[%c0_164, %c0_165] : memref<256x128xf32, #tpu.memory_space<vmem>>, vector<256x128xf32>
    %c4_166 = arith.constant 4 : index
    %c0_167 = arith.constant 0 : index
    %c0_168 = arith.constant 0 : index
    %124 = vector.load %arg2[%c4_166, %c0_167, %c0_168] : memref<9x3x128xbf16, #tpu.memory_space<vmem>>, vector<1x3x128xbf16>
    %125 = vector.shape_cast %124 : vector<1x3x128xbf16> to vector<3x128xbf16>
    %cst_169 = arith.constant dense<0.000000e+00> : vector<256x128xf32>
    %126 = tpu.matmul %122, %125, %cst_169 {dimension_numbers = #tpu.dot_dimension_numbers<[1], [0], [0], [1], [0, 0, 1, 1], [], []>} : vector<256x3xbf16>, vector<3x128xbf16>, vector<256x128xf32> -> vector<256x128xf32>
    %127 = arith.addf %123, %126 : vector<256x128xf32>
    %c0_170 = arith.constant 0 : index
    %c0_171 = arith.constant 0 : index
    %128 = vector.load %arg5[%c0_170, %c0_171] : memref<256x128xf32, #tpu.memory_space<vmem>>, vector<256x128xf32>
    tpu.vector_store %arg5[%c0_170, %c0_171], %127 {strides = array<i32>} : memref<256x128xf32, #tpu.memory_space<vmem>>, vector<256x128xf32>,
    %c1_172 = arith.constant 1 : index
    %c5_173 = arith.constant 5 : index
    %c0_174 = arith.constant 0 : index
    %c0_175 = arith.constant 0 : index
    %129 = vector.load %arg1[%c1_172, %c5_173, %c0_174, %c0_175] : memref<2x6x272x3xbf16, #tpu.memory_space<vmem>>, vector<1x1x256x3xbf16>
    %130 = vector.shape_cast %129 : vector<1x1x256x3xbf16> to vector<256x3xbf16>
    %c0_176 = arith.constant 0 : index
    %c0_177 = arith.constant 0 : index
    %131 = vector.load %arg5[%c0_176, %c0_177] : memref<256x128xf32, #tpu.memory_space<vmem>>, vector<256x128xf32>
    %c5_178 = arith.constant 5 : index
    %c0_179 = arith.constant 0 : index
    %c0_180 = arith.constant 0 : index
    %132 = vector.load %arg2[%c5_178, %c0_179, %c0_180] : memref<9x3x128xbf16, #tpu.memory_space<vmem>>, vector<1x3x128xbf16>
    %133 = vector.shape_cast %132 : vector<1x3x128xbf16> to vector<3x128xbf16>
    %cst_181 = arith.constant dense<0.000000e+00> : vector<256x128xf32>
    %134 = tpu.matmul %130, %133, %cst_181 {dimension_numbers = #tpu.dot_dimension_numbers<[1], [0], [0], [1], [0, 0, 1, 1], [], []>} : vector<256x3xbf16>, vector<3x128xbf16>, vector<256x128xf32> -> vector<256x128xf32>
    %135 = arith.addf %131, %134 : vector<256x128xf32>
    %c0_182 = arith.constant 0 : index
    %c0_183 = arith.constant 0 : index
    %136 = vector.load %arg5[%c0_182, %c0_183] : memref<256x128xf32, #tpu.memory_space<vmem>>, vector<256x128xf32>
    tpu.vector_store %arg5[%c0_182, %c0_183], %135 {strides = array<i32>} : memref<256x128xf32, #tpu.memory_space<vmem>>, vector<256x128xf32>,
    %c1_184 = arith.constant 1 : index
    %c0_185 = arith.constant 0 : index
    %c16_186 = arith.constant 16 : index
    %c0_187 = arith.constant 0 : index
    %137 = vector.load %arg1[%c1_184, %c0_185, %c16_186, %c0_187] : memref<2x6x272x3xbf16, #tpu.memory_space<vmem>>, vector<1x1x256x3xbf16>
    %138 = vector.shape_cast %137 : vector<1x1x256x3xbf16> to vector<256x3xbf16>
    %c0_188 = arith.constant 0 : index
    %c0_189 = arith.constant 0 : index
    %139 = vector.load %arg5[%c0_188, %c0_189] : memref<256x128xf32, #tpu.memory_space<vmem>>, vector<256x128xf32>
    %c6_190 = arith.constant 6 : index
    %c0_191 = arith.constant 0 : index
    %c0_192 = arith.constant 0 : index
    %140 = vector.load %arg2[%c6_190, %c0_191, %c0_192] : memref<9x3x128xbf16, #tpu.memory_space<vmem>>, vector<1x3x128xbf16>
    %141 = vector.shape_cast %140 : vector<1x3x128xbf16> to vector<3x128xbf16>
    %cst_193 = arith.constant dense<0.000000e+00> : vector<256x128xf32>
    %142 = tpu.matmul %138, %141, %cst_193 {dimension_numbers = #tpu.dot_dimension_numbers<[1], [0], [0], [1], [0, 0, 1, 1], [], []>} : vector<256x3xbf16>, vector<3x128xbf16>, vector<256x128xf32> -> vector<256x128xf32>
    %143 = arith.addf %139, %142 : vector<256x128xf32>
    %c0_194 = arith.constant 0 : index
    %c0_195 = arith.constant 0 : index
    %144 = vector.load %arg5[%c0_194, %c0_195] : memref<256x128xf32, #tpu.memory_space<vmem>>, vector<256x128xf32>
    tpu.vector_store %arg5[%c0_194, %c0_195], %143 {strides = array<i32>} : memref<256x128xf32, #tpu.memory_space<vmem>>, vector<256x128xf32>,
    %c1_196 = arith.constant 1 : index
    %c1_197 = arith.constant 1 : index
    %c16_198 = arith.constant 16 : index
    %c0_199 = arith.constant 0 : index
    %145 = vector.load %arg1[%c1_196, %c1_197, %c16_198, %c0_199] : memref<2x6x272x3xbf16, #tpu.memory_space<vmem>>, vector<1x1x256x3xbf16>
    %146 = vector.shape_cast %145 : vector<1x1x256x3xbf16> to vector<256x3xbf16>
    %c0_200 = arith.constant 0 : index
    %c0_201 = arith.constant 0 : index
    %147 = vector.load %arg5[%c0_200, %c0_201] : memref<256x128xf32, #tpu.memory_space<vmem>>, vector<256x128xf32>
    %c7_202 = arith.constant 7 : index
    %c0_203 = arith.constant 0 : index
    %c0_204 = arith.constant 0 : index
    %148 = vector.load %arg2[%c7_202, %c0_203, %c0_204] : memref<9x3x128xbf16, #tpu.memory_space<vmem>>, vector<1x3x128xbf16>
    %149 = vector.shape_cast %148 : vector<1x3x128xbf16> to vector<3x128xbf16>
    %cst_205 = arith.constant dense<0.000000e+00> : vector<256x128xf32>
    %150 = tpu.matmul %146, %149, %cst_205 {dimension_numbers = #tpu.dot_dimension_numbers<[1], [0], [0], [1], [0, 0, 1, 1], [], []>} : vector<256x3xbf16>, vector<3x128xbf16>, vector<256x128xf32> -> vector<256x128xf32>
    %151 = arith.addf %147, %150 : vector<256x128xf32>
    %c0_206 = arith.constant 0 : index
    %c0_207 = arith.constant 0 : index
    %152 = vector.load %arg5[%c0_206, %c0_207] : memref<256x128xf32, #tpu.memory_space<vmem>>, vector<256x128xf32>
    tpu.vector_store %arg5[%c0_206, %c0_207], %151 {strides = array<i32>} : memref<256x128xf32, #tpu.memory_space<vmem>>, vector<256x128xf32>,
    %c1_208 = arith.constant 1 : index
    %c2_209 = arith.constant 2 : index
    %c16_210 = arith.constant 16 : index
    %c0_211 = arith.constant 0 : index
    %153 = vector.load %arg1[%c1_208, %c2_209, %c16_210, %c0_211] : memref<2x6x272x3xbf16, #tpu.memory_space<vmem>>, vector<1x1x256x3xbf16>
    %154 = vector.shape_cast %153 : vector<1x1x256x3xbf16> to vector<256x3xbf16>
    %c0_212 = arith.constant 0 : index
    %c0_213 = arith.constant 0 : index
    %155 = vector.load %arg5[%c0_212, %c0_213] : memref<256x128xf32, #tpu.memory_space<vmem>>, vector<256x128xf32>
    %c8_214 = arith.constant 8 : index
    %c0_215 = arith.constant 0 : index
    %c0_216 = arith.constant 0 : index
    %156 = vector.load %arg2[%c8_214, %c0_215, %c0_216] : memref<9x3x128xbf16, #tpu.memory_space<vmem>>, vector<1x3x128xbf16>
    %157 = vector.shape_cast %156 : vector<1x3x128xbf16> to vector<3x128xbf16>
    %cst_217 = arith.constant dense<0.000000e+00> : vector<256x128xf32>
    %158 = tpu.matmul %154, %157, %cst_217 {dimension_numbers = #tpu.dot_dimension_numbers<[1], [0], [0], [1], [0, 0, 1, 1], [], []>} : vector<256x3xbf16>, vector<3x128xbf16>, vector<256x128xf32> -> vector<256x128xf32>
    %159 = arith.addf %155, %158 : vector<256x128xf32>
    %c0_218 = arith.constant 0 : index
    %c0_219 = arith.constant 0 : index
    %160 = vector.load %arg5[%c0_218, %c0_219] : memref<256x128xf32, #tpu.memory_space<vmem>>, vector<256x128xf32>
    tpu.vector_store %arg5[%c0_218, %c0_219], %159 {strides = array<i32>} : memref<256x128xf32, #tpu.memory_space<vmem>>, vector<256x128xf32>,
    %c0_220 = arith.constant 0 : index
    %c0_221 = arith.constant 0 : index
    %161 = vector.load %arg5[%c0_220, %c0_221] : memref<256x128xf32, #tpu.memory_space<vmem>>, vector<256x128xf32>
    %c0_222 = arith.constant 0 : index
    %c0_223 = arith.constant 0 : index
    %162 = vector.load %arg3[%c0_222, %c0_223] : memref<1x128xf32, #tpu.memory_space<vmem>>, vector<1x128xf32>
    %163 = vector.broadcast %162 : vector<1x128xf32> to vector<256x128xf32>
    %164 = arith.addf %161, %163 : vector<256x128xf32>
    %cst_224 = arith.constant 0.000000e+00 : f32
    %165 = vector.broadcast %cst_224 : f32 to vector<256x128xf32>
    %166 = arith.cmpf oge, %164, %165 : vector<256x128xf32>
    %cst_225 = arith.constant 0.00999999977 : f32
    %167 = vector.broadcast %cst_225 : f32 to vector<256x128xf32>
    %168 = arith.mulf %167, %164 : vector<256x128xf32>
    %169 = arith.select %166, %164, %168 : vector<256x128xi1>, vector<256x128xf32>
    %170 = arith.truncf %169 : vector<256x128xf32> to vector<256x128xbf16>
    %c1_226 = arith.constant 1 : index
    %c0_227 = arith.constant 0 : index
    %c0_228 = arith.constant 0 : index
    %171 = vector.load %arg4[%c1_226, %c0_227, %c0_228] : memref<2x256x128xbf16, #tpu.memory_space<vmem>>, vector<1x256x128xbf16>
    %172 = vector.shape_cast %171 : vector<1x256x128xbf16> to vector<256x128xbf16>
    %173 = vector.shape_cast %170 : vector<256x128xbf16> to vector<1x256x128xbf16>
    tpu.vector_store %arg4[%c1_226, %c0_227, %c0_228], %173 {strides = array<i32>} : memref<2x256x128xbf16, #tpu.memory_space<vmem>>, vector<1x256x128xbf16>,
    return
  }
  func.func @transform_0(%arg0: i32) -> (i32, i32, i32, i32) {
    %c0_i32 = arith.constant 0 : i32
    %c0_i32_0 = arith.constant 0 : i32
    %c0_i32_1 = arith.constant 0 : i32
    %c0_i32_2 = arith.constant 0 : i32
    return %arg0, %c0_i32, %c0_i32_0, %c0_i32_1 : i32, i32, i32, i32
  }
  func.func @transform_1(%arg0: i32) -> (i32, i32, i32) {
    %c0_i32 = arith.constant 0 : i32
    %c0_i32_0 = arith.constant 0 : i32
    %c0_i32_1 = arith.constant 0 : i32
    %c0_i32_2 = arith.constant 0 : i32
    return %c0_i32, %c0_i32_0, %c0_i32_1 : i32, i32, i32
  }
  func.func @transform_2(%arg0: i32) -> (i32, i32) {
    %c0_i32 = arith.constant 0 : i32
    %c0_i32_0 = arith.constant 0 : i32
    %c0_i32_1 = arith.constant 0 : i32
    return %c0_i32, %c0_i32_0 : i32, i32
  }
  func.func @transform_3(%arg0: i32) -> (i32, i32, i32) {
    %c0_i32 = arith.constant 0 : i32
    %c0_i32_0 = arith.constant 0 : i32
    %c0_i32_1 = arith.constant 0 : i32
    return %arg0, %c0_i32, %c0_i32_0 : i32, i32, i32
  }
}

module attributes {stable_mosaic.version = 11 : i64} {
  func.func @_conv_lrelu_kernel(%arg0: i32, %arg1: memref<2x6x72x32xbf16, #tpu.memory_space<vmem>>, %arg2: memref<9x32x128xbf16, #tpu.memory_space<vmem>>, %arg3: memref<1x128xf32, #tpu.memory_space<vmem>>, %arg4: memref<2x64x128xbf16, #tpu.memory_space<vmem>>, %arg5: memref<64x128xf32, #tpu.memory_space<vmem>>) attributes {dimension_semantics = [#tpu.dimension_semantics<parallel>], iteration_bounds = array<i64: 1>, scalar_prefetch = 0 : i64, scratch_operands = 1 : i64, tpu.core_type = #tpu.core_type<tc>, window_params = [{transform_indices = @transform_0, window_bounds = array<i64: 2, 6, 72, 32>}, {pipeline_mode = #tpu.pipeline_mode<synchronous>, transform_indices = @transform_1, window_bounds = array<i64: 9, 32, 128>}, {pipeline_mode = #tpu.pipeline_mode<synchronous>, transform_indices = @transform_2, window_bounds = array<i64: 1, 128>}, {transform_indices = @transform_3, window_bounds = array<i64: 2, 64, 128>}]} {
    %cst = arith.constant 0.000000e+00 : f32
    %0 = vector.broadcast %cst : f32 to vector<64x128xf32>
    %c0 = arith.constant 0 : index
    %c0_0 = arith.constant 0 : index
    %1 = vector.load %arg5[%c0, %c0_0] : memref<64x128xf32, #tpu.memory_space<vmem>>, vector<64x128xf32>
    tpu.vector_store %arg5[%c0, %c0_0], %0 {strides = array<i32>} : memref<64x128xf32, #tpu.memory_space<vmem>>, vector<64x128xf32>,
    %c0_1 = arith.constant 0 : index
    %c0_2 = arith.constant 0 : index
    %c0_3 = arith.constant 0 : index
    %c0_4 = arith.constant 0 : index
    %2 = vector.load %arg1[%c0_1, %c0_2, %c0_3, %c0_4] : memref<2x6x72x32xbf16, #tpu.memory_space<vmem>>, vector<1x1x64x32xbf16>
    %3 = vector.shape_cast %2 : vector<1x1x64x32xbf16> to vector<64x32xbf16>
    %c0_5 = arith.constant 0 : index
    %c0_6 = arith.constant 0 : index
    %4 = vector.load %arg5[%c0_5, %c0_6] : memref<64x128xf32, #tpu.memory_space<vmem>>, vector<64x128xf32>
    %c0_7 = arith.constant 0 : index
    %c0_8 = arith.constant 0 : index
    %c0_9 = arith.constant 0 : index
    %5 = vector.load %arg2[%c0_7, %c0_8, %c0_9] : memref<9x32x128xbf16, #tpu.memory_space<vmem>>, vector<1x32x128xbf16>
    %6 = vector.shape_cast %5 : vector<1x32x128xbf16> to vector<32x128xbf16>
    %cst_10 = arith.constant dense<0.000000e+00> : vector<64x128xf32>
    %7 = tpu.matmul %3, %6, %cst_10 {dimension_numbers = #tpu.dot_dimension_numbers<[1], [0], [0], [1], [0, 0, 1, 1], [], []>} : vector<64x32xbf16>, vector<32x128xbf16>, vector<64x128xf32> -> vector<64x128xf32>
    %8 = arith.addf %4, %7 : vector<64x128xf32>
    %c0_11 = arith.constant 0 : index
    %c0_12 = arith.constant 0 : index
    %9 = vector.load %arg5[%c0_11, %c0_12] : memref<64x128xf32, #tpu.memory_space<vmem>>, vector<64x128xf32>
    tpu.vector_store %arg5[%c0_11, %c0_12], %8 {strides = array<i32>} : memref<64x128xf32, #tpu.memory_space<vmem>>, vector<64x128xf32>,
    %c0_13 = arith.constant 0 : index
    %c1 = arith.constant 1 : index
    %c0_14 = arith.constant 0 : index
    %c0_15 = arith.constant 0 : index
    %10 = vector.load %arg1[%c0_13, %c1, %c0_14, %c0_15] : memref<2x6x72x32xbf16, #tpu.memory_space<vmem>>, vector<1x1x64x32xbf16>
    %11 = vector.shape_cast %10 : vector<1x1x64x32xbf16> to vector<64x32xbf16>
    %c0_16 = arith.constant 0 : index
    %c0_17 = arith.constant 0 : index
    %12 = vector.load %arg5[%c0_16, %c0_17] : memref<64x128xf32, #tpu.memory_space<vmem>>, vector<64x128xf32>
    %c1_18 = arith.constant 1 : index
    %c0_19 = arith.constant 0 : index
    %c0_20 = arith.constant 0 : index
    %13 = vector.load %arg2[%c1_18, %c0_19, %c0_20] : memref<9x32x128xbf16, #tpu.memory_space<vmem>>, vector<1x32x128xbf16>
    %14 = vector.shape_cast %13 : vector<1x32x128xbf16> to vector<32x128xbf16>
    %cst_21 = arith.constant dense<0.000000e+00> : vector<64x128xf32>
    %15 = tpu.matmul %11, %14, %cst_21 {dimension_numbers = #tpu.dot_dimension_numbers<[1], [0], [0], [1], [0, 0, 1, 1], [], []>} : vector<64x32xbf16>, vector<32x128xbf16>, vector<64x128xf32> -> vector<64x128xf32>
    %16 = arith.addf %12, %15 : vector<64x128xf32>
    %c0_22 = arith.constant 0 : index
    %c0_23 = arith.constant 0 : index
    %17 = vector.load %arg5[%c0_22, %c0_23] : memref<64x128xf32, #tpu.memory_space<vmem>>, vector<64x128xf32>
    tpu.vector_store %arg5[%c0_22, %c0_23], %16 {strides = array<i32>} : memref<64x128xf32, #tpu.memory_space<vmem>>, vector<64x128xf32>,
    %c0_24 = arith.constant 0 : index
    %c2 = arith.constant 2 : index
    %c0_25 = arith.constant 0 : index
    %c0_26 = arith.constant 0 : index
    %18 = vector.load %arg1[%c0_24, %c2, %c0_25, %c0_26] : memref<2x6x72x32xbf16, #tpu.memory_space<vmem>>, vector<1x1x64x32xbf16>
    %19 = vector.shape_cast %18 : vector<1x1x64x32xbf16> to vector<64x32xbf16>
    %c0_27 = arith.constant 0 : index
    %c0_28 = arith.constant 0 : index
    %20 = vector.load %arg5[%c0_27, %c0_28] : memref<64x128xf32, #tpu.memory_space<vmem>>, vector<64x128xf32>
    %c2_29 = arith.constant 2 : index
    %c0_30 = arith.constant 0 : index
    %c0_31 = arith.constant 0 : index
    %21 = vector.load %arg2[%c2_29, %c0_30, %c0_31] : memref<9x32x128xbf16, #tpu.memory_space<vmem>>, vector<1x32x128xbf16>
    %22 = vector.shape_cast %21 : vector<1x32x128xbf16> to vector<32x128xbf16>
    %cst_32 = arith.constant dense<0.000000e+00> : vector<64x128xf32>
    %23 = tpu.matmul %19, %22, %cst_32 {dimension_numbers = #tpu.dot_dimension_numbers<[1], [0], [0], [1], [0, 0, 1, 1], [], []>} : vector<64x32xbf16>, vector<32x128xbf16>, vector<64x128xf32> -> vector<64x128xf32>
    %24 = arith.addf %20, %23 : vector<64x128xf32>
    %c0_33 = arith.constant 0 : index
    %c0_34 = arith.constant 0 : index
    %25 = vector.load %arg5[%c0_33, %c0_34] : memref<64x128xf32, #tpu.memory_space<vmem>>, vector<64x128xf32>
    tpu.vector_store %arg5[%c0_33, %c0_34], %24 {strides = array<i32>} : memref<64x128xf32, #tpu.memory_space<vmem>>, vector<64x128xf32>,
    %c0_35 = arith.constant 0 : index
    %c3 = arith.constant 3 : index
    %c0_36 = arith.constant 0 : index
    %c0_37 = arith.constant 0 : index
    %26 = vector.load %arg1[%c0_35, %c3, %c0_36, %c0_37] : memref<2x6x72x32xbf16, #tpu.memory_space<vmem>>, vector<1x1x64x32xbf16>
    %27 = vector.shape_cast %26 : vector<1x1x64x32xbf16> to vector<64x32xbf16>
    %c0_38 = arith.constant 0 : index
    %c0_39 = arith.constant 0 : index
    %28 = vector.load %arg5[%c0_38, %c0_39] : memref<64x128xf32, #tpu.memory_space<vmem>>, vector<64x128xf32>
    %c3_40 = arith.constant 3 : index
    %c0_41 = arith.constant 0 : index
    %c0_42 = arith.constant 0 : index
    %29 = vector.load %arg2[%c3_40, %c0_41, %c0_42] : memref<9x32x128xbf16, #tpu.memory_space<vmem>>, vector<1x32x128xbf16>
    %30 = vector.shape_cast %29 : vector<1x32x128xbf16> to vector<32x128xbf16>
    %cst_43 = arith.constant dense<0.000000e+00> : vector<64x128xf32>
    %31 = tpu.matmul %27, %30, %cst_43 {dimension_numbers = #tpu.dot_dimension_numbers<[1], [0], [0], [1], [0, 0, 1, 1], [], []>} : vector<64x32xbf16>, vector<32x128xbf16>, vector<64x128xf32> -> vector<64x128xf32>
    %32 = arith.addf %28, %31 : vector<64x128xf32>
    %c0_44 = arith.constant 0 : index
    %c0_45 = arith.constant 0 : index
    %33 = vector.load %arg5[%c0_44, %c0_45] : memref<64x128xf32, #tpu.memory_space<vmem>>, vector<64x128xf32>
    tpu.vector_store %arg5[%c0_44, %c0_45], %32 {strides = array<i32>} : memref<64x128xf32, #tpu.memory_space<vmem>>, vector<64x128xf32>,
    %c0_46 = arith.constant 0 : index
    %c4 = arith.constant 4 : index
    %c0_47 = arith.constant 0 : index
    %c0_48 = arith.constant 0 : index
    %34 = vector.load %arg1[%c0_46, %c4, %c0_47, %c0_48] : memref<2x6x72x32xbf16, #tpu.memory_space<vmem>>, vector<1x1x64x32xbf16>
    %35 = vector.shape_cast %34 : vector<1x1x64x32xbf16> to vector<64x32xbf16>
    %c0_49 = arith.constant 0 : index
    %c0_50 = arith.constant 0 : index
    %36 = vector.load %arg5[%c0_49, %c0_50] : memref<64x128xf32, #tpu.memory_space<vmem>>, vector<64x128xf32>
    %c4_51 = arith.constant 4 : index
    %c0_52 = arith.constant 0 : index
    %c0_53 = arith.constant 0 : index
    %37 = vector.load %arg2[%c4_51, %c0_52, %c0_53] : memref<9x32x128xbf16, #tpu.memory_space<vmem>>, vector<1x32x128xbf16>
    %38 = vector.shape_cast %37 : vector<1x32x128xbf16> to vector<32x128xbf16>
    %cst_54 = arith.constant dense<0.000000e+00> : vector<64x128xf32>
    %39 = tpu.matmul %35, %38, %cst_54 {dimension_numbers = #tpu.dot_dimension_numbers<[1], [0], [0], [1], [0, 0, 1, 1], [], []>} : vector<64x32xbf16>, vector<32x128xbf16>, vector<64x128xf32> -> vector<64x128xf32>
    %40 = arith.addf %36, %39 : vector<64x128xf32>
    %c0_55 = arith.constant 0 : index
    %c0_56 = arith.constant 0 : index
    %41 = vector.load %arg5[%c0_55, %c0_56] : memref<64x128xf32, #tpu.memory_space<vmem>>, vector<64x128xf32>
    tpu.vector_store %arg5[%c0_55, %c0_56], %40 {strides = array<i32>} : memref<64x128xf32, #tpu.memory_space<vmem>>, vector<64x128xf32>,
    %c0_57 = arith.constant 0 : index
    %c5 = arith.constant 5 : index
    %c0_58 = arith.constant 0 : index
    %c0_59 = arith.constant 0 : index
    %42 = vector.load %arg1[%c0_57, %c5, %c0_58, %c0_59] : memref<2x6x72x32xbf16, #tpu.memory_space<vmem>>, vector<1x1x64x32xbf16>
    %43 = vector.shape_cast %42 : vector<1x1x64x32xbf16> to vector<64x32xbf16>
    %c0_60 = arith.constant 0 : index
    %c0_61 = arith.constant 0 : index
    %44 = vector.load %arg5[%c0_60, %c0_61] : memref<64x128xf32, #tpu.memory_space<vmem>>, vector<64x128xf32>
    %c5_62 = arith.constant 5 : index
    %c0_63 = arith.constant 0 : index
    %c0_64 = arith.constant 0 : index
    %45 = vector.load %arg2[%c5_62, %c0_63, %c0_64] : memref<9x32x128xbf16, #tpu.memory_space<vmem>>, vector<1x32x128xbf16>
    %46 = vector.shape_cast %45 : vector<1x32x128xbf16> to vector<32x128xbf16>
    %cst_65 = arith.constant dense<0.000000e+00> : vector<64x128xf32>
    %47 = tpu.matmul %43, %46, %cst_65 {dimension_numbers = #tpu.dot_dimension_numbers<[1], [0], [0], [1], [0, 0, 1, 1], [], []>} : vector<64x32xbf16>, vector<32x128xbf16>, vector<64x128xf32> -> vector<64x128xf32>
    %48 = arith.addf %44, %47 : vector<64x128xf32>
    %c0_66 = arith.constant 0 : index
    %c0_67 = arith.constant 0 : index
    %49 = vector.load %arg5[%c0_66, %c0_67] : memref<64x128xf32, #tpu.memory_space<vmem>>, vector<64x128xf32>
    tpu.vector_store %arg5[%c0_66, %c0_67], %48 {strides = array<i32>} : memref<64x128xf32, #tpu.memory_space<vmem>>, vector<64x128xf32>,
    %c0_68 = arith.constant 0 : index
    %c0_69 = arith.constant 0 : index
    %c8 = arith.constant 8 : index
    %c0_70 = arith.constant 0 : index
    %50 = vector.load %arg1[%c0_68, %c0_69, %c8, %c0_70] : memref<2x6x72x32xbf16, #tpu.memory_space<vmem>>, vector<1x1x64x32xbf16>
    %51 = vector.shape_cast %50 : vector<1x1x64x32xbf16> to vector<64x32xbf16>
    %c0_71 = arith.constant 0 : index
    %c0_72 = arith.constant 0 : index
    %52 = vector.load %arg5[%c0_71, %c0_72] : memref<64x128xf32, #tpu.memory_space<vmem>>, vector<64x128xf32>
    %c6 = arith.constant 6 : index
    %c0_73 = arith.constant 0 : index
    %c0_74 = arith.constant 0 : index
    %53 = vector.load %arg2[%c6, %c0_73, %c0_74] : memref<9x32x128xbf16, #tpu.memory_space<vmem>>, vector<1x32x128xbf16>
    %54 = vector.shape_cast %53 : vector<1x32x128xbf16> to vector<32x128xbf16>
    %cst_75 = arith.constant dense<0.000000e+00> : vector<64x128xf32>
    %55 = tpu.matmul %51, %54, %cst_75 {dimension_numbers = #tpu.dot_dimension_numbers<[1], [0], [0], [1], [0, 0, 1, 1], [], []>} : vector<64x32xbf16>, vector<32x128xbf16>, vector<64x128xf32> -> vector<64x128xf32>
    %56 = arith.addf %52, %55 : vector<64x128xf32>
    %c0_76 = arith.constant 0 : index
    %c0_77 = arith.constant 0 : index
    %57 = vector.load %arg5[%c0_76, %c0_77] : memref<64x128xf32, #tpu.memory_space<vmem>>, vector<64x128xf32>
    tpu.vector_store %arg5[%c0_76, %c0_77], %56 {strides = array<i32>} : memref<64x128xf32, #tpu.memory_space<vmem>>, vector<64x128xf32>,
    %c0_78 = arith.constant 0 : index
    %c1_79 = arith.constant 1 : index
    %c8_80 = arith.constant 8 : index
    %c0_81 = arith.constant 0 : index
    %58 = vector.load %arg1[%c0_78, %c1_79, %c8_80, %c0_81] : memref<2x6x72x32xbf16, #tpu.memory_space<vmem>>, vector<1x1x64x32xbf16>
    %59 = vector.shape_cast %58 : vector<1x1x64x32xbf16> to vector<64x32xbf16>
    %c0_82 = arith.constant 0 : index
    %c0_83 = arith.constant 0 : index
    %60 = vector.load %arg5[%c0_82, %c0_83] : memref<64x128xf32, #tpu.memory_space<vmem>>, vector<64x128xf32>
    %c7 = arith.constant 7 : index
    %c0_84 = arith.constant 0 : index
    %c0_85 = arith.constant 0 : index
    %61 = vector.load %arg2[%c7, %c0_84, %c0_85] : memref<9x32x128xbf16, #tpu.memory_space<vmem>>, vector<1x32x128xbf16>
    %62 = vector.shape_cast %61 : vector<1x32x128xbf16> to vector<32x128xbf16>
    %cst_86 = arith.constant dense<0.000000e+00> : vector<64x128xf32>
    %63 = tpu.matmul %59, %62, %cst_86 {dimension_numbers = #tpu.dot_dimension_numbers<[1], [0], [0], [1], [0, 0, 1, 1], [], []>} : vector<64x32xbf16>, vector<32x128xbf16>, vector<64x128xf32> -> vector<64x128xf32>
    %64 = arith.addf %60, %63 : vector<64x128xf32>
    %c0_87 = arith.constant 0 : index
    %c0_88 = arith.constant 0 : index
    %65 = vector.load %arg5[%c0_87, %c0_88] : memref<64x128xf32, #tpu.memory_space<vmem>>, vector<64x128xf32>
    tpu.vector_store %arg5[%c0_87, %c0_88], %64 {strides = array<i32>} : memref<64x128xf32, #tpu.memory_space<vmem>>, vector<64x128xf32>,
    %c0_89 = arith.constant 0 : index
    %c2_90 = arith.constant 2 : index
    %c8_91 = arith.constant 8 : index
    %c0_92 = arith.constant 0 : index
    %66 = vector.load %arg1[%c0_89, %c2_90, %c8_91, %c0_92] : memref<2x6x72x32xbf16, #tpu.memory_space<vmem>>, vector<1x1x64x32xbf16>
    %67 = vector.shape_cast %66 : vector<1x1x64x32xbf16> to vector<64x32xbf16>
    %c0_93 = arith.constant 0 : index
    %c0_94 = arith.constant 0 : index
    %68 = vector.load %arg5[%c0_93, %c0_94] : memref<64x128xf32, #tpu.memory_space<vmem>>, vector<64x128xf32>
    %c8_95 = arith.constant 8 : index
    %c0_96 = arith.constant 0 : index
    %c0_97 = arith.constant 0 : index
    %69 = vector.load %arg2[%c8_95, %c0_96, %c0_97] : memref<9x32x128xbf16, #tpu.memory_space<vmem>>, vector<1x32x128xbf16>
    %70 = vector.shape_cast %69 : vector<1x32x128xbf16> to vector<32x128xbf16>
    %cst_98 = arith.constant dense<0.000000e+00> : vector<64x128xf32>
    %71 = tpu.matmul %67, %70, %cst_98 {dimension_numbers = #tpu.dot_dimension_numbers<[1], [0], [0], [1], [0, 0, 1, 1], [], []>} : vector<64x32xbf16>, vector<32x128xbf16>, vector<64x128xf32> -> vector<64x128xf32>
    %72 = arith.addf %68, %71 : vector<64x128xf32>
    %c0_99 = arith.constant 0 : index
    %c0_100 = arith.constant 0 : index
    %73 = vector.load %arg5[%c0_99, %c0_100] : memref<64x128xf32, #tpu.memory_space<vmem>>, vector<64x128xf32>
    tpu.vector_store %arg5[%c0_99, %c0_100], %72 {strides = array<i32>} : memref<64x128xf32, #tpu.memory_space<vmem>>, vector<64x128xf32>,
    %c0_101 = arith.constant 0 : index
    %c0_102 = arith.constant 0 : index
    %74 = vector.load %arg5[%c0_101, %c0_102] : memref<64x128xf32, #tpu.memory_space<vmem>>, vector<64x128xf32>
    %c0_103 = arith.constant 0 : index
    %c0_104 = arith.constant 0 : index
    %75 = vector.load %arg3[%c0_103, %c0_104] : memref<1x128xf32, #tpu.memory_space<vmem>>, vector<1x128xf32>
    %76 = vector.broadcast %75 : vector<1x128xf32> to vector<64x128xf32>
    %77 = arith.addf %74, %76 : vector<64x128xf32>
    %cst_105 = arith.constant 0.000000e+00 : f32
    %78 = vector.broadcast %cst_105 : f32 to vector<64x128xf32>
    %79 = arith.cmpf oge, %77, %78 : vector<64x128xf32>
    %cst_106 = arith.constant 0.00999999977 : f32
    %80 = vector.broadcast %cst_106 : f32 to vector<64x128xf32>
    %81 = arith.mulf %80, %77 : vector<64x128xf32>
    %82 = arith.select %79, %77, %81 : vector<64x128xi1>, vector<64x128xf32>
    %83 = arith.truncf %82 : vector<64x128xf32> to vector<64x128xbf16>
    %c0_107 = arith.constant 0 : index
    %c0_108 = arith.constant 0 : index
    %c0_109 = arith.constant 0 : index
    %84 = vector.load %arg4[%c0_107, %c0_108, %c0_109] : memref<2x64x128xbf16, #tpu.memory_space<vmem>>, vector<1x64x128xbf16>
    %85 = vector.shape_cast %84 : vector<1x64x128xbf16> to vector<64x128xbf16>
    %86 = vector.shape_cast %83 : vector<64x128xbf16> to vector<1x64x128xbf16>
    tpu.vector_store %arg4[%c0_107, %c0_108, %c0_109], %86 {strides = array<i32>} : memref<2x64x128xbf16, #tpu.memory_space<vmem>>, vector<1x64x128xbf16>,
    %cst_110 = arith.constant 0.000000e+00 : f32
    %87 = vector.broadcast %cst_110 : f32 to vector<64x128xf32>
    %c0_111 = arith.constant 0 : index
    %c0_112 = arith.constant 0 : index
    %88 = vector.load %arg5[%c0_111, %c0_112] : memref<64x128xf32, #tpu.memory_space<vmem>>, vector<64x128xf32>
    tpu.vector_store %arg5[%c0_111, %c0_112], %87 {strides = array<i32>} : memref<64x128xf32, #tpu.memory_space<vmem>>, vector<64x128xf32>,
    %c1_113 = arith.constant 1 : index
    %c0_114 = arith.constant 0 : index
    %c0_115 = arith.constant 0 : index
    %c0_116 = arith.constant 0 : index
    %89 = vector.load %arg1[%c1_113, %c0_114, %c0_115, %c0_116] : memref<2x6x72x32xbf16, #tpu.memory_space<vmem>>, vector<1x1x64x32xbf16>
    %90 = vector.shape_cast %89 : vector<1x1x64x32xbf16> to vector<64x32xbf16>
    %c0_117 = arith.constant 0 : index
    %c0_118 = arith.constant 0 : index
    %91 = vector.load %arg5[%c0_117, %c0_118] : memref<64x128xf32, #tpu.memory_space<vmem>>, vector<64x128xf32>
    %c0_119 = arith.constant 0 : index
    %c0_120 = arith.constant 0 : index
    %c0_121 = arith.constant 0 : index
    %92 = vector.load %arg2[%c0_119, %c0_120, %c0_121] : memref<9x32x128xbf16, #tpu.memory_space<vmem>>, vector<1x32x128xbf16>
    %93 = vector.shape_cast %92 : vector<1x32x128xbf16> to vector<32x128xbf16>
    %cst_122 = arith.constant dense<0.000000e+00> : vector<64x128xf32>
    %94 = tpu.matmul %90, %93, %cst_122 {dimension_numbers = #tpu.dot_dimension_numbers<[1], [0], [0], [1], [0, 0, 1, 1], [], []>} : vector<64x32xbf16>, vector<32x128xbf16>, vector<64x128xf32> -> vector<64x128xf32>
    %95 = arith.addf %91, %94 : vector<64x128xf32>
    %c0_123 = arith.constant 0 : index
    %c0_124 = arith.constant 0 : index
    %96 = vector.load %arg5[%c0_123, %c0_124] : memref<64x128xf32, #tpu.memory_space<vmem>>, vector<64x128xf32>
    tpu.vector_store %arg5[%c0_123, %c0_124], %95 {strides = array<i32>} : memref<64x128xf32, #tpu.memory_space<vmem>>, vector<64x128xf32>,
    %c1_125 = arith.constant 1 : index
    %c1_126 = arith.constant 1 : index
    %c0_127 = arith.constant 0 : index
    %c0_128 = arith.constant 0 : index
    %97 = vector.load %arg1[%c1_125, %c1_126, %c0_127, %c0_128] : memref<2x6x72x32xbf16, #tpu.memory_space<vmem>>, vector<1x1x64x32xbf16>
    %98 = vector.shape_cast %97 : vector<1x1x64x32xbf16> to vector<64x32xbf16>
    %c0_129 = arith.constant 0 : index
    %c0_130 = arith.constant 0 : index
    %99 = vector.load %arg5[%c0_129, %c0_130] : memref<64x128xf32, #tpu.memory_space<vmem>>, vector<64x128xf32>
    %c1_131 = arith.constant 1 : index
    %c0_132 = arith.constant 0 : index
    %c0_133 = arith.constant 0 : index
    %100 = vector.load %arg2[%c1_131, %c0_132, %c0_133] : memref<9x32x128xbf16, #tpu.memory_space<vmem>>, vector<1x32x128xbf16>
    %101 = vector.shape_cast %100 : vector<1x32x128xbf16> to vector<32x128xbf16>
    %cst_134 = arith.constant dense<0.000000e+00> : vector<64x128xf32>
    %102 = tpu.matmul %98, %101, %cst_134 {dimension_numbers = #tpu.dot_dimension_numbers<[1], [0], [0], [1], [0, 0, 1, 1], [], []>} : vector<64x32xbf16>, vector<32x128xbf16>, vector<64x128xf32> -> vector<64x128xf32>
    %103 = arith.addf %99, %102 : vector<64x128xf32>
    %c0_135 = arith.constant 0 : index
    %c0_136 = arith.constant 0 : index
    %104 = vector.load %arg5[%c0_135, %c0_136] : memref<64x128xf32, #tpu.memory_space<vmem>>, vector<64x128xf32>
    tpu.vector_store %arg5[%c0_135, %c0_136], %103 {strides = array<i32>} : memref<64x128xf32, #tpu.memory_space<vmem>>, vector<64x128xf32>,
    %c1_137 = arith.constant 1 : index
    %c2_138 = arith.constant 2 : index
    %c0_139 = arith.constant 0 : index
    %c0_140 = arith.constant 0 : index
    %105 = vector.load %arg1[%c1_137, %c2_138, %c0_139, %c0_140] : memref<2x6x72x32xbf16, #tpu.memory_space<vmem>>, vector<1x1x64x32xbf16>
    %106 = vector.shape_cast %105 : vector<1x1x64x32xbf16> to vector<64x32xbf16>
    %c0_141 = arith.constant 0 : index
    %c0_142 = arith.constant 0 : index
    %107 = vector.load %arg5[%c0_141, %c0_142] : memref<64x128xf32, #tpu.memory_space<vmem>>, vector<64x128xf32>
    %c2_143 = arith.constant 2 : index
    %c0_144 = arith.constant 0 : index
    %c0_145 = arith.constant 0 : index
    %108 = vector.load %arg2[%c2_143, %c0_144, %c0_145] : memref<9x32x128xbf16, #tpu.memory_space<vmem>>, vector<1x32x128xbf16>
    %109 = vector.shape_cast %108 : vector<1x32x128xbf16> to vector<32x128xbf16>
    %cst_146 = arith.constant dense<0.000000e+00> : vector<64x128xf32>
    %110 = tpu.matmul %106, %109, %cst_146 {dimension_numbers = #tpu.dot_dimension_numbers<[1], [0], [0], [1], [0, 0, 1, 1], [], []>} : vector<64x32xbf16>, vector<32x128xbf16>, vector<64x128xf32> -> vector<64x128xf32>
    %111 = arith.addf %107, %110 : vector<64x128xf32>
    %c0_147 = arith.constant 0 : index
    %c0_148 = arith.constant 0 : index
    %112 = vector.load %arg5[%c0_147, %c0_148] : memref<64x128xf32, #tpu.memory_space<vmem>>, vector<64x128xf32>
    tpu.vector_store %arg5[%c0_147, %c0_148], %111 {strides = array<i32>} : memref<64x128xf32, #tpu.memory_space<vmem>>, vector<64x128xf32>,
    %c1_149 = arith.constant 1 : index
    %c3_150 = arith.constant 3 : index
    %c0_151 = arith.constant 0 : index
    %c0_152 = arith.constant 0 : index
    %113 = vector.load %arg1[%c1_149, %c3_150, %c0_151, %c0_152] : memref<2x6x72x32xbf16, #tpu.memory_space<vmem>>, vector<1x1x64x32xbf16>
    %114 = vector.shape_cast %113 : vector<1x1x64x32xbf16> to vector<64x32xbf16>
    %c0_153 = arith.constant 0 : index
    %c0_154 = arith.constant 0 : index
    %115 = vector.load %arg5[%c0_153, %c0_154] : memref<64x128xf32, #tpu.memory_space<vmem>>, vector<64x128xf32>
    %c3_155 = arith.constant 3 : index
    %c0_156 = arith.constant 0 : index
    %c0_157 = arith.constant 0 : index
    %116 = vector.load %arg2[%c3_155, %c0_156, %c0_157] : memref<9x32x128xbf16, #tpu.memory_space<vmem>>, vector<1x32x128xbf16>
    %117 = vector.shape_cast %116 : vector<1x32x128xbf16> to vector<32x128xbf16>
    %cst_158 = arith.constant dense<0.000000e+00> : vector<64x128xf32>
    %118 = tpu.matmul %114, %117, %cst_158 {dimension_numbers = #tpu.dot_dimension_numbers<[1], [0], [0], [1], [0, 0, 1, 1], [], []>} : vector<64x32xbf16>, vector<32x128xbf16>, vector<64x128xf32> -> vector<64x128xf32>
    %119 = arith.addf %115, %118 : vector<64x128xf32>
    %c0_159 = arith.constant 0 : index
    %c0_160 = arith.constant 0 : index
    %120 = vector.load %arg5[%c0_159, %c0_160] : memref<64x128xf32, #tpu.memory_space<vmem>>, vector<64x128xf32>
    tpu.vector_store %arg5[%c0_159, %c0_160], %119 {strides = array<i32>} : memref<64x128xf32, #tpu.memory_space<vmem>>, vector<64x128xf32>,
    %c1_161 = arith.constant 1 : index
    %c4_162 = arith.constant 4 : index
    %c0_163 = arith.constant 0 : index
    %c0_164 = arith.constant 0 : index
    %121 = vector.load %arg1[%c1_161, %c4_162, %c0_163, %c0_164] : memref<2x6x72x32xbf16, #tpu.memory_space<vmem>>, vector<1x1x64x32xbf16>
    %122 = vector.shape_cast %121 : vector<1x1x64x32xbf16> to vector<64x32xbf16>
    %c0_165 = arith.constant 0 : index
    %c0_166 = arith.constant 0 : index
    %123 = vector.load %arg5[%c0_165, %c0_166] : memref<64x128xf32, #tpu.memory_space<vmem>>, vector<64x128xf32>
    %c4_167 = arith.constant 4 : index
    %c0_168 = arith.constant 0 : index
    %c0_169 = arith.constant 0 : index
    %124 = vector.load %arg2[%c4_167, %c0_168, %c0_169] : memref<9x32x128xbf16, #tpu.memory_space<vmem>>, vector<1x32x128xbf16>
    %125 = vector.shape_cast %124 : vector<1x32x128xbf16> to vector<32x128xbf16>
    %cst_170 = arith.constant dense<0.000000e+00> : vector<64x128xf32>
    %126 = tpu.matmul %122, %125, %cst_170 {dimension_numbers = #tpu.dot_dimension_numbers<[1], [0], [0], [1], [0, 0, 1, 1], [], []>} : vector<64x32xbf16>, vector<32x128xbf16>, vector<64x128xf32> -> vector<64x128xf32>
    %127 = arith.addf %123, %126 : vector<64x128xf32>
    %c0_171 = arith.constant 0 : index
    %c0_172 = arith.constant 0 : index
    %128 = vector.load %arg5[%c0_171, %c0_172] : memref<64x128xf32, #tpu.memory_space<vmem>>, vector<64x128xf32>
    tpu.vector_store %arg5[%c0_171, %c0_172], %127 {strides = array<i32>} : memref<64x128xf32, #tpu.memory_space<vmem>>, vector<64x128xf32>,
    %c1_173 = arith.constant 1 : index
    %c5_174 = arith.constant 5 : index
    %c0_175 = arith.constant 0 : index
    %c0_176 = arith.constant 0 : index
    %129 = vector.load %arg1[%c1_173, %c5_174, %c0_175, %c0_176] : memref<2x6x72x32xbf16, #tpu.memory_space<vmem>>, vector<1x1x64x32xbf16>
    %130 = vector.shape_cast %129 : vector<1x1x64x32xbf16> to vector<64x32xbf16>
    %c0_177 = arith.constant 0 : index
    %c0_178 = arith.constant 0 : index
    %131 = vector.load %arg5[%c0_177, %c0_178] : memref<64x128xf32, #tpu.memory_space<vmem>>, vector<64x128xf32>
    %c5_179 = arith.constant 5 : index
    %c0_180 = arith.constant 0 : index
    %c0_181 = arith.constant 0 : index
    %132 = vector.load %arg2[%c5_179, %c0_180, %c0_181] : memref<9x32x128xbf16, #tpu.memory_space<vmem>>, vector<1x32x128xbf16>
    %133 = vector.shape_cast %132 : vector<1x32x128xbf16> to vector<32x128xbf16>
    %cst_182 = arith.constant dense<0.000000e+00> : vector<64x128xf32>
    %134 = tpu.matmul %130, %133, %cst_182 {dimension_numbers = #tpu.dot_dimension_numbers<[1], [0], [0], [1], [0, 0, 1, 1], [], []>} : vector<64x32xbf16>, vector<32x128xbf16>, vector<64x128xf32> -> vector<64x128xf32>
    %135 = arith.addf %131, %134 : vector<64x128xf32>
    %c0_183 = arith.constant 0 : index
    %c0_184 = arith.constant 0 : index
    %136 = vector.load %arg5[%c0_183, %c0_184] : memref<64x128xf32, #tpu.memory_space<vmem>>, vector<64x128xf32>
    tpu.vector_store %arg5[%c0_183, %c0_184], %135 {strides = array<i32>} : memref<64x128xf32, #tpu.memory_space<vmem>>, vector<64x128xf32>,
    %c1_185 = arith.constant 1 : index
    %c0_186 = arith.constant 0 : index
    %c8_187 = arith.constant 8 : index
    %c0_188 = arith.constant 0 : index
    %137 = vector.load %arg1[%c1_185, %c0_186, %c8_187, %c0_188] : memref<2x6x72x32xbf16, #tpu.memory_space<vmem>>, vector<1x1x64x32xbf16>
    %138 = vector.shape_cast %137 : vector<1x1x64x32xbf16> to vector<64x32xbf16>
    %c0_189 = arith.constant 0 : index
    %c0_190 = arith.constant 0 : index
    %139 = vector.load %arg5[%c0_189, %c0_190] : memref<64x128xf32, #tpu.memory_space<vmem>>, vector<64x128xf32>
    %c6_191 = arith.constant 6 : index
    %c0_192 = arith.constant 0 : index
    %c0_193 = arith.constant 0 : index
    %140 = vector.load %arg2[%c6_191, %c0_192, %c0_193] : memref<9x32x128xbf16, #tpu.memory_space<vmem>>, vector<1x32x128xbf16>
    %141 = vector.shape_cast %140 : vector<1x32x128xbf16> to vector<32x128xbf16>
    %cst_194 = arith.constant dense<0.000000e+00> : vector<64x128xf32>
    %142 = tpu.matmul %138, %141, %cst_194 {dimension_numbers = #tpu.dot_dimension_numbers<[1], [0], [0], [1], [0, 0, 1, 1], [], []>} : vector<64x32xbf16>, vector<32x128xbf16>, vector<64x128xf32> -> vector<64x128xf32>
    %143 = arith.addf %139, %142 : vector<64x128xf32>
    %c0_195 = arith.constant 0 : index
    %c0_196 = arith.constant 0 : index
    %144 = vector.load %arg5[%c0_195, %c0_196] : memref<64x128xf32, #tpu.memory_space<vmem>>, vector<64x128xf32>
    tpu.vector_store %arg5[%c0_195, %c0_196], %143 {strides = array<i32>} : memref<64x128xf32, #tpu.memory_space<vmem>>, vector<64x128xf32>,
    %c1_197 = arith.constant 1 : index
    %c1_198 = arith.constant 1 : index
    %c8_199 = arith.constant 8 : index
    %c0_200 = arith.constant 0 : index
    %145 = vector.load %arg1[%c1_197, %c1_198, %c8_199, %c0_200] : memref<2x6x72x32xbf16, #tpu.memory_space<vmem>>, vector<1x1x64x32xbf16>
    %146 = vector.shape_cast %145 : vector<1x1x64x32xbf16> to vector<64x32xbf16>
    %c0_201 = arith.constant 0 : index
    %c0_202 = arith.constant 0 : index
    %147 = vector.load %arg5[%c0_201, %c0_202] : memref<64x128xf32, #tpu.memory_space<vmem>>, vector<64x128xf32>
    %c7_203 = arith.constant 7 : index
    %c0_204 = arith.constant 0 : index
    %c0_205 = arith.constant 0 : index
    %148 = vector.load %arg2[%c7_203, %c0_204, %c0_205] : memref<9x32x128xbf16, #tpu.memory_space<vmem>>, vector<1x32x128xbf16>
    %149 = vector.shape_cast %148 : vector<1x32x128xbf16> to vector<32x128xbf16>
    %cst_206 = arith.constant dense<0.000000e+00> : vector<64x128xf32>
    %150 = tpu.matmul %146, %149, %cst_206 {dimension_numbers = #tpu.dot_dimension_numbers<[1], [0], [0], [1], [0, 0, 1, 1], [], []>} : vector<64x32xbf16>, vector<32x128xbf16>, vector<64x128xf32> -> vector<64x128xf32>
    %151 = arith.addf %147, %150 : vector<64x128xf32>
    %c0_207 = arith.constant 0 : index
    %c0_208 = arith.constant 0 : index
    %152 = vector.load %arg5[%c0_207, %c0_208] : memref<64x128xf32, #tpu.memory_space<vmem>>, vector<64x128xf32>
    tpu.vector_store %arg5[%c0_207, %c0_208], %151 {strides = array<i32>} : memref<64x128xf32, #tpu.memory_space<vmem>>, vector<64x128xf32>,
    %c1_209 = arith.constant 1 : index
    %c2_210 = arith.constant 2 : index
    %c8_211 = arith.constant 8 : index
    %c0_212 = arith.constant 0 : index
    %153 = vector.load %arg1[%c1_209, %c2_210, %c8_211, %c0_212] : memref<2x6x72x32xbf16, #tpu.memory_space<vmem>>, vector<1x1x64x32xbf16>
    %154 = vector.shape_cast %153 : vector<1x1x64x32xbf16> to vector<64x32xbf16>
    %c0_213 = arith.constant 0 : index
    %c0_214 = arith.constant 0 : index
    %155 = vector.load %arg5[%c0_213, %c0_214] : memref<64x128xf32, #tpu.memory_space<vmem>>, vector<64x128xf32>
    %c8_215 = arith.constant 8 : index
    %c0_216 = arith.constant 0 : index
    %c0_217 = arith.constant 0 : index
    %156 = vector.load %arg2[%c8_215, %c0_216, %c0_217] : memref<9x32x128xbf16, #tpu.memory_space<vmem>>, vector<1x32x128xbf16>
    %157 = vector.shape_cast %156 : vector<1x32x128xbf16> to vector<32x128xbf16>
    %cst_218 = arith.constant dense<0.000000e+00> : vector<64x128xf32>
    %158 = tpu.matmul %154, %157, %cst_218 {dimension_numbers = #tpu.dot_dimension_numbers<[1], [0], [0], [1], [0, 0, 1, 1], [], []>} : vector<64x32xbf16>, vector<32x128xbf16>, vector<64x128xf32> -> vector<64x128xf32>
    %159 = arith.addf %155, %158 : vector<64x128xf32>
    %c0_219 = arith.constant 0 : index
    %c0_220 = arith.constant 0 : index
    %160 = vector.load %arg5[%c0_219, %c0_220] : memref<64x128xf32, #tpu.memory_space<vmem>>, vector<64x128xf32>
    tpu.vector_store %arg5[%c0_219, %c0_220], %159 {strides = array<i32>} : memref<64x128xf32, #tpu.memory_space<vmem>>, vector<64x128xf32>,
    %c0_221 = arith.constant 0 : index
    %c0_222 = arith.constant 0 : index
    %161 = vector.load %arg5[%c0_221, %c0_222] : memref<64x128xf32, #tpu.memory_space<vmem>>, vector<64x128xf32>
    %c0_223 = arith.constant 0 : index
    %c0_224 = arith.constant 0 : index
    %162 = vector.load %arg3[%c0_223, %c0_224] : memref<1x128xf32, #tpu.memory_space<vmem>>, vector<1x128xf32>
    %163 = vector.broadcast %162 : vector<1x128xf32> to vector<64x128xf32>
    %164 = arith.addf %161, %163 : vector<64x128xf32>
    %cst_225 = arith.constant 0.000000e+00 : f32
    %165 = vector.broadcast %cst_225 : f32 to vector<64x128xf32>
    %166 = arith.cmpf oge, %164, %165 : vector<64x128xf32>
    %cst_226 = arith.constant 0.00999999977 : f32
    %167 = vector.broadcast %cst_226 : f32 to vector<64x128xf32>
    %168 = arith.mulf %167, %164 : vector<64x128xf32>
    %169 = arith.select %166, %164, %168 : vector<64x128xi1>, vector<64x128xf32>
    %170 = arith.truncf %169 : vector<64x128xf32> to vector<64x128xbf16>
    %c1_227 = arith.constant 1 : index
    %c0_228 = arith.constant 0 : index
    %c0_229 = arith.constant 0 : index
    %171 = vector.load %arg4[%c1_227, %c0_228, %c0_229] : memref<2x64x128xbf16, #tpu.memory_space<vmem>>, vector<1x64x128xbf16>
    %172 = vector.shape_cast %171 : vector<1x64x128xbf16> to vector<64x128xbf16>
    %173 = vector.shape_cast %170 : vector<64x128xbf16> to vector<1x64x128xbf16>
    tpu.vector_store %arg4[%c1_227, %c0_228, %c0_229], %173 {strides = array<i32>} : memref<2x64x128xbf16, #tpu.memory_space<vmem>>, vector<1x64x128xbf16>,
    return
  }
  func.func @transform_0(%arg0: i32) -> (i32, i32, i32, i32) {
    %c0_i32 = arith.constant 0 : i32
    %c0_i32_0 = arith.constant 0 : i32
    %c0_i32_1 = arith.constant 0 : i32
    %c0_i32_2 = arith.constant 0 : i32
    return %arg0, %c0_i32, %c0_i32_0, %c0_i32_1 : i32, i32, i32, i32
  }
  func.func @transform_1(%arg0: i32) -> (i32, i32, i32) {
    %c0_i32 = arith.constant 0 : i32
    %c0_i32_0 = arith.constant 0 : i32
    %c0_i32_1 = arith.constant 0 : i32
    %c0_i32_2 = arith.constant 0 : i32
    return %c0_i32, %c0_i32_0, %c0_i32_1 : i32, i32, i32
  }
  func.func @transform_2(%arg0: i32) -> (i32, i32) {
    %c0_i32 = arith.constant 0 : i32
    %c0_i32_0 = arith.constant 0 : i32
    %c0_i32_1 = arith.constant 0 : i32
    return %c0_i32, %c0_i32_0 : i32, i32
  }
  func.func @transform_3(%arg0: i32) -> (i32, i32, i32) {
    %c0_i32 = arith.constant 0 : i32
    %c0_i32_0 = arith.constant 0 : i32
    %c0_i32_1 = arith.constant 0 : i32
    return %arg0, %c0_i32, %c0_i32_0 : i32, i32, i32
  }
}

module attributes {stable_mosaic.version = 11 : i64} {
  func.func @_conv_lrelu_linear_kernel(%arg0: i32, %arg1: memref<2x6x20x64xbf16, #tpu.memory_space<vmem>>, %arg2: memref<9x64x128xbf16, #tpu.memory_space<vmem>>, %arg3: memref<1x128xf32, #tpu.memory_space<vmem>>, %arg4: memref<16x128xf32, #tpu.memory_space<vmem>>, %arg5: memref<1x1xf32, #tpu.memory_space<vmem>>, %arg6: memref<2x1x128xf32, #tpu.memory_space<vmem>>, %arg7: memref<16x128xf32, #tpu.memory_space<vmem>>) attributes {dimension_semantics = [#tpu.dimension_semantics<parallel>], iteration_bounds = array<i64: 1>, scalar_prefetch = 0 : i64, scratch_operands = 1 : i64, tpu.core_type = #tpu.core_type<tc>, window_params = [{transform_indices = @transform_0, window_bounds = array<i64: 2, 6, 20, 64>}, {pipeline_mode = #tpu.pipeline_mode<synchronous>, transform_indices = @transform_1, window_bounds = array<i64: 9, 64, 128>}, {pipeline_mode = #tpu.pipeline_mode<synchronous>, transform_indices = @transform_2, window_bounds = array<i64: 1, 128>}, {pipeline_mode = #tpu.pipeline_mode<synchronous>, transform_indices = @transform_3, window_bounds = array<i64: 16, 128>}, {pipeline_mode = #tpu.pipeline_mode<synchronous>, transform_indices = @transform_4, window_bounds = array<i64: 1, 1>}, {transform_indices = @transform_5, window_bounds = array<i64: 2, 1, 128>}]} {
    %cst = arith.constant 0.000000e+00 : f32
    %0 = vector.broadcast %cst : f32 to vector<16x128xf32>
    %c0 = arith.constant 0 : index
    %c0_0 = arith.constant 0 : index
    %1 = vector.load %arg7[%c0, %c0_0] : memref<16x128xf32, #tpu.memory_space<vmem>>, vector<16x128xf32>
    tpu.vector_store %arg7[%c0, %c0_0], %0 {strides = array<i32>} : memref<16x128xf32, #tpu.memory_space<vmem>>, vector<16x128xf32>,
    %c0_1 = arith.constant 0 : index
    %c0_2 = arith.constant 0 : index
    %c0_3 = arith.constant 0 : index
    %c0_4 = arith.constant 0 : index
    %2 = vector.load %arg1[%c0_1, %c0_2, %c0_3, %c0_4] : memref<2x6x20x64xbf16, #tpu.memory_space<vmem>>, vector<1x1x16x64xbf16>
    %3 = vector.shape_cast %2 : vector<1x1x16x64xbf16> to vector<16x64xbf16>
    %c0_5 = arith.constant 0 : index
    %c0_6 = arith.constant 0 : index
    %4 = vector.load %arg7[%c0_5, %c0_6] : memref<16x128xf32, #tpu.memory_space<vmem>>, vector<16x128xf32>
    %c0_7 = arith.constant 0 : index
    %c0_8 = arith.constant 0 : index
    %c0_9 = arith.constant 0 : index
    %5 = vector.load %arg2[%c0_7, %c0_8, %c0_9] : memref<9x64x128xbf16, #tpu.memory_space<vmem>>, vector<1x64x128xbf16>
    %6 = vector.shape_cast %5 : vector<1x64x128xbf16> to vector<64x128xbf16>
    %cst_10 = arith.constant dense<0.000000e+00> : vector<16x128xf32>
    %7 = tpu.matmul %3, %6, %cst_10 {dimension_numbers = #tpu.dot_dimension_numbers<[1], [0], [0], [1], [0, 0, 1, 1], [], []>} : vector<16x64xbf16>, vector<64x128xbf16>, vector<16x128xf32> -> vector<16x128xf32>
    %8 = arith.addf %4, %7 : vector<16x128xf32>
    %c0_11 = arith.constant 0 : index
    %c0_12 = arith.constant 0 : index
    %9 = vector.load %arg7[%c0_11, %c0_12] : memref<16x128xf32, #tpu.memory_space<vmem>>, vector<16x128xf32>
    tpu.vector_store %arg7[%c0_11, %c0_12], %8 {strides = array<i32>} : memref<16x128xf32, #tpu.memory_space<vmem>>, vector<16x128xf32>,
    %c0_13 = arith.constant 0 : index
    %c1 = arith.constant 1 : index
    %c0_14 = arith.constant 0 : index
    %c0_15 = arith.constant 0 : index
    %10 = vector.load %arg1[%c0_13, %c1, %c0_14, %c0_15] : memref<2x6x20x64xbf16, #tpu.memory_space<vmem>>, vector<1x1x16x64xbf16>
    %11 = vector.shape_cast %10 : vector<1x1x16x64xbf16> to vector<16x64xbf16>
    %c0_16 = arith.constant 0 : index
    %c0_17 = arith.constant 0 : index
    %12 = vector.load %arg7[%c0_16, %c0_17] : memref<16x128xf32, #tpu.memory_space<vmem>>, vector<16x128xf32>
    %c1_18 = arith.constant 1 : index
    %c0_19 = arith.constant 0 : index
    %c0_20 = arith.constant 0 : index
    %13 = vector.load %arg2[%c1_18, %c0_19, %c0_20] : memref<9x64x128xbf16, #tpu.memory_space<vmem>>, vector<1x64x128xbf16>
    %14 = vector.shape_cast %13 : vector<1x64x128xbf16> to vector<64x128xbf16>
    %cst_21 = arith.constant dense<0.000000e+00> : vector<16x128xf32>
    %15 = tpu.matmul %11, %14, %cst_21 {dimension_numbers = #tpu.dot_dimension_numbers<[1], [0], [0], [1], [0, 0, 1, 1], [], []>} : vector<16x64xbf16>, vector<64x128xbf16>, vector<16x128xf32> -> vector<16x128xf32>
    %16 = arith.addf %12, %15 : vector<16x128xf32>
    %c0_22 = arith.constant 0 : index
    %c0_23 = arith.constant 0 : index
    %17 = vector.load %arg7[%c0_22, %c0_23] : memref<16x128xf32, #tpu.memory_space<vmem>>, vector<16x128xf32>
    tpu.vector_store %arg7[%c0_22, %c0_23], %16 {strides = array<i32>} : memref<16x128xf32, #tpu.memory_space<vmem>>, vector<16x128xf32>,
    %c0_24 = arith.constant 0 : index
    %c2 = arith.constant 2 : index
    %c0_25 = arith.constant 0 : index
    %c0_26 = arith.constant 0 : index
    %18 = vector.load %arg1[%c0_24, %c2, %c0_25, %c0_26] : memref<2x6x20x64xbf16, #tpu.memory_space<vmem>>, vector<1x1x16x64xbf16>
    %19 = vector.shape_cast %18 : vector<1x1x16x64xbf16> to vector<16x64xbf16>
    %c0_27 = arith.constant 0 : index
    %c0_28 = arith.constant 0 : index
    %20 = vector.load %arg7[%c0_27, %c0_28] : memref<16x128xf32, #tpu.memory_space<vmem>>, vector<16x128xf32>
    %c2_29 = arith.constant 2 : index
    %c0_30 = arith.constant 0 : index
    %c0_31 = arith.constant 0 : index
    %21 = vector.load %arg2[%c2_29, %c0_30, %c0_31] : memref<9x64x128xbf16, #tpu.memory_space<vmem>>, vector<1x64x128xbf16>
    %22 = vector.shape_cast %21 : vector<1x64x128xbf16> to vector<64x128xbf16>
    %cst_32 = arith.constant dense<0.000000e+00> : vector<16x128xf32>
    %23 = tpu.matmul %19, %22, %cst_32 {dimension_numbers = #tpu.dot_dimension_numbers<[1], [0], [0], [1], [0, 0, 1, 1], [], []>} : vector<16x64xbf16>, vector<64x128xbf16>, vector<16x128xf32> -> vector<16x128xf32>
    %24 = arith.addf %20, %23 : vector<16x128xf32>
    %c0_33 = arith.constant 0 : index
    %c0_34 = arith.constant 0 : index
    %25 = vector.load %arg7[%c0_33, %c0_34] : memref<16x128xf32, #tpu.memory_space<vmem>>, vector<16x128xf32>
    tpu.vector_store %arg7[%c0_33, %c0_34], %24 {strides = array<i32>} : memref<16x128xf32, #tpu.memory_space<vmem>>, vector<16x128xf32>,
    %c0_35 = arith.constant 0 : index
    %c3 = arith.constant 3 : index
    %c0_36 = arith.constant 0 : index
    %c0_37 = arith.constant 0 : index
    %26 = vector.load %arg1[%c0_35, %c3, %c0_36, %c0_37] : memref<2x6x20x64xbf16, #tpu.memory_space<vmem>>, vector<1x1x16x64xbf16>
    %27 = vector.shape_cast %26 : vector<1x1x16x64xbf16> to vector<16x64xbf16>
    %c0_38 = arith.constant 0 : index
    %c0_39 = arith.constant 0 : index
    %28 = vector.load %arg7[%c0_38, %c0_39] : memref<16x128xf32, #tpu.memory_space<vmem>>, vector<16x128xf32>
    %c3_40 = arith.constant 3 : index
    %c0_41 = arith.constant 0 : index
    %c0_42 = arith.constant 0 : index
    %29 = vector.load %arg2[%c3_40, %c0_41, %c0_42] : memref<9x64x128xbf16, #tpu.memory_space<vmem>>, vector<1x64x128xbf16>
    %30 = vector.shape_cast %29 : vector<1x64x128xbf16> to vector<64x128xbf16>
    %cst_43 = arith.constant dense<0.000000e+00> : vector<16x128xf32>
    %31 = tpu.matmul %27, %30, %cst_43 {dimension_numbers = #tpu.dot_dimension_numbers<[1], [0], [0], [1], [0, 0, 1, 1], [], []>} : vector<16x64xbf16>, vector<64x128xbf16>, vector<16x128xf32> -> vector<16x128xf32>
    %32 = arith.addf %28, %31 : vector<16x128xf32>
    %c0_44 = arith.constant 0 : index
    %c0_45 = arith.constant 0 : index
    %33 = vector.load %arg7[%c0_44, %c0_45] : memref<16x128xf32, #tpu.memory_space<vmem>>, vector<16x128xf32>
    tpu.vector_store %arg7[%c0_44, %c0_45], %32 {strides = array<i32>} : memref<16x128xf32, #tpu.memory_space<vmem>>, vector<16x128xf32>,
    %c0_46 = arith.constant 0 : index
    %c4 = arith.constant 4 : index
    %c0_47 = arith.constant 0 : index
    %c0_48 = arith.constant 0 : index
    %34 = vector.load %arg1[%c0_46, %c4, %c0_47, %c0_48] : memref<2x6x20x64xbf16, #tpu.memory_space<vmem>>, vector<1x1x16x64xbf16>
    %35 = vector.shape_cast %34 : vector<1x1x16x64xbf16> to vector<16x64xbf16>
    %c0_49 = arith.constant 0 : index
    %c0_50 = arith.constant 0 : index
    %36 = vector.load %arg7[%c0_49, %c0_50] : memref<16x128xf32, #tpu.memory_space<vmem>>, vector<16x128xf32>
    %c4_51 = arith.constant 4 : index
    %c0_52 = arith.constant 0 : index
    %c0_53 = arith.constant 0 : index
    %37 = vector.load %arg2[%c4_51, %c0_52, %c0_53] : memref<9x64x128xbf16, #tpu.memory_space<vmem>>, vector<1x64x128xbf16>
    %38 = vector.shape_cast %37 : vector<1x64x128xbf16> to vector<64x128xbf16>
    %cst_54 = arith.constant dense<0.000000e+00> : vector<16x128xf32>
    %39 = tpu.matmul %35, %38, %cst_54 {dimension_numbers = #tpu.dot_dimension_numbers<[1], [0], [0], [1], [0, 0, 1, 1], [], []>} : vector<16x64xbf16>, vector<64x128xbf16>, vector<16x128xf32> -> vector<16x128xf32>
    %40 = arith.addf %36, %39 : vector<16x128xf32>
    %c0_55 = arith.constant 0 : index
    %c0_56 = arith.constant 0 : index
    %41 = vector.load %arg7[%c0_55, %c0_56] : memref<16x128xf32, #tpu.memory_space<vmem>>, vector<16x128xf32>
    tpu.vector_store %arg7[%c0_55, %c0_56], %40 {strides = array<i32>} : memref<16x128xf32, #tpu.memory_space<vmem>>, vector<16x128xf32>,
    %c0_57 = arith.constant 0 : index
    %c5 = arith.constant 5 : index
    %c0_58 = arith.constant 0 : index
    %c0_59 = arith.constant 0 : index
    %42 = vector.load %arg1[%c0_57, %c5, %c0_58, %c0_59] : memref<2x6x20x64xbf16, #tpu.memory_space<vmem>>, vector<1x1x16x64xbf16>
    %43 = vector.shape_cast %42 : vector<1x1x16x64xbf16> to vector<16x64xbf16>
    %c0_60 = arith.constant 0 : index
    %c0_61 = arith.constant 0 : index
    %44 = vector.load %arg7[%c0_60, %c0_61] : memref<16x128xf32, #tpu.memory_space<vmem>>, vector<16x128xf32>
    %c5_62 = arith.constant 5 : index
    %c0_63 = arith.constant 0 : index
    %c0_64 = arith.constant 0 : index
    %45 = vector.load %arg2[%c5_62, %c0_63, %c0_64] : memref<9x64x128xbf16, #tpu.memory_space<vmem>>, vector<1x64x128xbf16>
    %46 = vector.shape_cast %45 : vector<1x64x128xbf16> to vector<64x128xbf16>
    %cst_65 = arith.constant dense<0.000000e+00> : vector<16x128xf32>
    %47 = tpu.matmul %43, %46, %cst_65 {dimension_numbers = #tpu.dot_dimension_numbers<[1], [0], [0], [1], [0, 0, 1, 1], [], []>} : vector<16x64xbf16>, vector<64x128xbf16>, vector<16x128xf32> -> vector<16x128xf32>
    %48 = arith.addf %44, %47 : vector<16x128xf32>
    %c0_66 = arith.constant 0 : index
    %c0_67 = arith.constant 0 : index
    %49 = vector.load %arg7[%c0_66, %c0_67] : memref<16x128xf32, #tpu.memory_space<vmem>>, vector<16x128xf32>
    tpu.vector_store %arg7[%c0_66, %c0_67], %48 {strides = array<i32>} : memref<16x128xf32, #tpu.memory_space<vmem>>, vector<16x128xf32>,
    %c0_68 = arith.constant 0 : index
    %c0_69 = arith.constant 0 : index
    %c4_70 = arith.constant 4 : index
    %c0_71 = arith.constant 0 : index
    %50 = vector.load %arg1[%c0_68, %c0_69, %c4_70, %c0_71] : memref<2x6x20x64xbf16, #tpu.memory_space<vmem>>, vector<1x1x16x64xbf16>
    %51 = vector.shape_cast %50 : vector<1x1x16x64xbf16> to vector<16x64xbf16>
    %c0_72 = arith.constant 0 : index
    %c0_73 = arith.constant 0 : index
    %52 = vector.load %arg7[%c0_72, %c0_73] : memref<16x128xf32, #tpu.memory_space<vmem>>, vector<16x128xf32>
    %c6 = arith.constant 6 : index
    %c0_74 = arith.constant 0 : index
    %c0_75 = arith.constant 0 : index
    %53 = vector.load %arg2[%c6, %c0_74, %c0_75] : memref<9x64x128xbf16, #tpu.memory_space<vmem>>, vector<1x64x128xbf16>
    %54 = vector.shape_cast %53 : vector<1x64x128xbf16> to vector<64x128xbf16>
    %cst_76 = arith.constant dense<0.000000e+00> : vector<16x128xf32>
    %55 = tpu.matmul %51, %54, %cst_76 {dimension_numbers = #tpu.dot_dimension_numbers<[1], [0], [0], [1], [0, 0, 1, 1], [], []>} : vector<16x64xbf16>, vector<64x128xbf16>, vector<16x128xf32> -> vector<16x128xf32>
    %56 = arith.addf %52, %55 : vector<16x128xf32>
    %c0_77 = arith.constant 0 : index
    %c0_78 = arith.constant 0 : index
    %57 = vector.load %arg7[%c0_77, %c0_78] : memref<16x128xf32, #tpu.memory_space<vmem>>, vector<16x128xf32>
    tpu.vector_store %arg7[%c0_77, %c0_78], %56 {strides = array<i32>} : memref<16x128xf32, #tpu.memory_space<vmem>>, vector<16x128xf32>,
    %c0_79 = arith.constant 0 : index
    %c1_80 = arith.constant 1 : index
    %c4_81 = arith.constant 4 : index
    %c0_82 = arith.constant 0 : index
    %58 = vector.load %arg1[%c0_79, %c1_80, %c4_81, %c0_82] : memref<2x6x20x64xbf16, #tpu.memory_space<vmem>>, vector<1x1x16x64xbf16>
    %59 = vector.shape_cast %58 : vector<1x1x16x64xbf16> to vector<16x64xbf16>
    %c0_83 = arith.constant 0 : index
    %c0_84 = arith.constant 0 : index
    %60 = vector.load %arg7[%c0_83, %c0_84] : memref<16x128xf32, #tpu.memory_space<vmem>>, vector<16x128xf32>
    %c7 = arith.constant 7 : index
    %c0_85 = arith.constant 0 : index
    %c0_86 = arith.constant 0 : index
    %61 = vector.load %arg2[%c7, %c0_85, %c0_86] : memref<9x64x128xbf16, #tpu.memory_space<vmem>>, vector<1x64x128xbf16>
    %62 = vector.shape_cast %61 : vector<1x64x128xbf16> to vector<64x128xbf16>
    %cst_87 = arith.constant dense<0.000000e+00> : vector<16x128xf32>
    %63 = tpu.matmul %59, %62, %cst_87 {dimension_numbers = #tpu.dot_dimension_numbers<[1], [0], [0], [1], [0, 0, 1, 1], [], []>} : vector<16x64xbf16>, vector<64x128xbf16>, vector<16x128xf32> -> vector<16x128xf32>
    %64 = arith.addf %60, %63 : vector<16x128xf32>
    %c0_88 = arith.constant 0 : index
    %c0_89 = arith.constant 0 : index
    %65 = vector.load %arg7[%c0_88, %c0_89] : memref<16x128xf32, #tpu.memory_space<vmem>>, vector<16x128xf32>
    tpu.vector_store %arg7[%c0_88, %c0_89], %64 {strides = array<i32>} : memref<16x128xf32, #tpu.memory_space<vmem>>, vector<16x128xf32>,
    %c0_90 = arith.constant 0 : index
    %c2_91 = arith.constant 2 : index
    %c4_92 = arith.constant 4 : index
    %c0_93 = arith.constant 0 : index
    %66 = vector.load %arg1[%c0_90, %c2_91, %c4_92, %c0_93] : memref<2x6x20x64xbf16, #tpu.memory_space<vmem>>, vector<1x1x16x64xbf16>
    %67 = vector.shape_cast %66 : vector<1x1x16x64xbf16> to vector<16x64xbf16>
    %c0_94 = arith.constant 0 : index
    %c0_95 = arith.constant 0 : index
    %68 = vector.load %arg7[%c0_94, %c0_95] : memref<16x128xf32, #tpu.memory_space<vmem>>, vector<16x128xf32>
    %c8 = arith.constant 8 : index
    %c0_96 = arith.constant 0 : index
    %c0_97 = arith.constant 0 : index
    %69 = vector.load %arg2[%c8, %c0_96, %c0_97] : memref<9x64x128xbf16, #tpu.memory_space<vmem>>, vector<1x64x128xbf16>
    %70 = vector.shape_cast %69 : vector<1x64x128xbf16> to vector<64x128xbf16>
    %cst_98 = arith.constant dense<0.000000e+00> : vector<16x128xf32>
    %71 = tpu.matmul %67, %70, %cst_98 {dimension_numbers = #tpu.dot_dimension_numbers<[1], [0], [0], [1], [0, 0, 1, 1], [], []>} : vector<16x64xbf16>, vector<64x128xbf16>, vector<16x128xf32> -> vector<16x128xf32>
    %72 = arith.addf %68, %71 : vector<16x128xf32>
    %c0_99 = arith.constant 0 : index
    %c0_100 = arith.constant 0 : index
    %73 = vector.load %arg7[%c0_99, %c0_100] : memref<16x128xf32, #tpu.memory_space<vmem>>, vector<16x128xf32>
    tpu.vector_store %arg7[%c0_99, %c0_100], %72 {strides = array<i32>} : memref<16x128xf32, #tpu.memory_space<vmem>>, vector<16x128xf32>,
    %c0_101 = arith.constant 0 : index
    %c0_102 = arith.constant 0 : index
    %74 = vector.load %arg7[%c0_101, %c0_102] : memref<16x128xf32, #tpu.memory_space<vmem>>, vector<16x128xf32>
    %c0_103 = arith.constant 0 : index
    %c0_104 = arith.constant 0 : index
    %75 = vector.load %arg3[%c0_103, %c0_104] : memref<1x128xf32, #tpu.memory_space<vmem>>, vector<1x128xf32>
    %76 = vector.broadcast %75 : vector<1x128xf32> to vector<16x128xf32>
    %77 = arith.addf %74, %76 : vector<16x128xf32>
    %cst_105 = arith.constant 0.000000e+00 : f32
    %78 = vector.broadcast %cst_105 : f32 to vector<16x128xf32>
    %79 = arith.cmpf oge, %77, %78 : vector<16x128xf32>
    %cst_106 = arith.constant 0.00999999977 : f32
    %80 = vector.broadcast %cst_106 : f32 to vector<16x128xf32>
    %81 = arith.mulf %80, %77 : vector<16x128xf32>
    %82 = arith.select %79, %77, %81 : vector<16x128xi1>, vector<16x128xf32>
    %c0_107 = arith.constant 0 : index
    %c0_108 = arith.constant 0 : index
    %83 = vector.load %arg4[%c0_107, %c0_108] : memref<16x128xf32, #tpu.memory_space<vmem>>, vector<16x128xf32>
    %84 = arith.mulf %82, %83 : vector<16x128xf32>
    %85 = vector.shape_cast %84 : vector<16x128xf32> to vector<1x16x128xf32>
    %cst_109 = arith.constant dense<0.000000e+00> : vector<1xf32>
    %86 = vector.multi_reduction <add>, %85, %cst_109 [1, 2] : vector<1x16x128xf32> to vector<1xf32>
    %87 = vector.shape_cast %86 : vector<1xf32> to vector<1x1x1xf32>
    %88 = vector.extract %87[0, 0, 0] : f32 from vector<1x1x1xf32>
    %89 = vector.broadcast %88 : f32 to vector<1x1xf32>
    %90 = vector.shape_cast %89 : vector<1x1xf32> to vector<1x1xf32>
    %91 = vector.broadcast %90 : vector<1x1xf32> to vector<1x128xf32>
    %c0_110 = arith.constant 0 : index
    %c0_111 = arith.constant 0 : index
    %92 = vector.load %arg5[%c0_110, %c0_111] : memref<1x1xf32, #tpu.memory_space<vmem>>, vector<1x1xf32>
    %93 = vector.broadcast %92 : vector<1x1xf32> to vector<1x128xf32>
    %94 = arith.addf %91, %93 : vector<1x128xf32>
    %c0_112 = arith.constant 0 : index
    %c0_113 = arith.constant 0 : index
    %c0_114 = arith.constant 0 : index
    %95 = vector.load %arg6[%c0_112, %c0_113, %c0_114] : memref<2x1x128xf32, #tpu.memory_space<vmem>>, vector<1x1x128xf32>
    %96 = vector.shape_cast %95 : vector<1x1x128xf32> to vector<1x128xf32>
    %97 = vector.shape_cast %94 : vector<1x128xf32> to vector<1x1x128xf32>
    tpu.vector_store %arg6[%c0_112, %c0_113, %c0_114], %97 {strides = array<i32>} : memref<2x1x128xf32, #tpu.memory_space<vmem>>, vector<1x1x128xf32>,
    %cst_115 = arith.constant 0.000000e+00 : f32
    %98 = vector.broadcast %cst_115 : f32 to vector<16x128xf32>
    %c0_116 = arith.constant 0 : index
    %c0_117 = arith.constant 0 : index
    %99 = vector.load %arg7[%c0_116, %c0_117] : memref<16x128xf32, #tpu.memory_space<vmem>>, vector<16x128xf32>
    tpu.vector_store %arg7[%c0_116, %c0_117], %98 {strides = array<i32>} : memref<16x128xf32, #tpu.memory_space<vmem>>, vector<16x128xf32>,
    %c1_118 = arith.constant 1 : index
    %c0_119 = arith.constant 0 : index
    %c0_120 = arith.constant 0 : index
    %c0_121 = arith.constant 0 : index
    %100 = vector.load %arg1[%c1_118, %c0_119, %c0_120, %c0_121] : memref<2x6x20x64xbf16, #tpu.memory_space<vmem>>, vector<1x1x16x64xbf16>
    %101 = vector.shape_cast %100 : vector<1x1x16x64xbf16> to vector<16x64xbf16>
    %c0_122 = arith.constant 0 : index
    %c0_123 = arith.constant 0 : index
    %102 = vector.load %arg7[%c0_122, %c0_123] : memref<16x128xf32, #tpu.memory_space<vmem>>, vector<16x128xf32>
    %c0_124 = arith.constant 0 : index
    %c0_125 = arith.constant 0 : index
    %c0_126 = arith.constant 0 : index
    %103 = vector.load %arg2[%c0_124, %c0_125, %c0_126] : memref<9x64x128xbf16, #tpu.memory_space<vmem>>, vector<1x64x128xbf16>
    %104 = vector.shape_cast %103 : vector<1x64x128xbf16> to vector<64x128xbf16>
    %cst_127 = arith.constant dense<0.000000e+00> : vector<16x128xf32>
    %105 = tpu.matmul %101, %104, %cst_127 {dimension_numbers = #tpu.dot_dimension_numbers<[1], [0], [0], [1], [0, 0, 1, 1], [], []>} : vector<16x64xbf16>, vector<64x128xbf16>, vector<16x128xf32> -> vector<16x128xf32>
    %106 = arith.addf %102, %105 : vector<16x128xf32>
    %c0_128 = arith.constant 0 : index
    %c0_129 = arith.constant 0 : index
    %107 = vector.load %arg7[%c0_128, %c0_129] : memref<16x128xf32, #tpu.memory_space<vmem>>, vector<16x128xf32>
    tpu.vector_store %arg7[%c0_128, %c0_129], %106 {strides = array<i32>} : memref<16x128xf32, #tpu.memory_space<vmem>>, vector<16x128xf32>,
    %c1_130 = arith.constant 1 : index
    %c1_131 = arith.constant 1 : index
    %c0_132 = arith.constant 0 : index
    %c0_133 = arith.constant 0 : index
    %108 = vector.load %arg1[%c1_130, %c1_131, %c0_132, %c0_133] : memref<2x6x20x64xbf16, #tpu.memory_space<vmem>>, vector<1x1x16x64xbf16>
    %109 = vector.shape_cast %108 : vector<1x1x16x64xbf16> to vector<16x64xbf16>
    %c0_134 = arith.constant 0 : index
    %c0_135 = arith.constant 0 : index
    %110 = vector.load %arg7[%c0_134, %c0_135] : memref<16x128xf32, #tpu.memory_space<vmem>>, vector<16x128xf32>
    %c1_136 = arith.constant 1 : index
    %c0_137 = arith.constant 0 : index
    %c0_138 = arith.constant 0 : index
    %111 = vector.load %arg2[%c1_136, %c0_137, %c0_138] : memref<9x64x128xbf16, #tpu.memory_space<vmem>>, vector<1x64x128xbf16>
    %112 = vector.shape_cast %111 : vector<1x64x128xbf16> to vector<64x128xbf16>
    %cst_139 = arith.constant dense<0.000000e+00> : vector<16x128xf32>
    %113 = tpu.matmul %109, %112, %cst_139 {dimension_numbers = #tpu.dot_dimension_numbers<[1], [0], [0], [1], [0, 0, 1, 1], [], []>} : vector<16x64xbf16>, vector<64x128xbf16>, vector<16x128xf32> -> vector<16x128xf32>
    %114 = arith.addf %110, %113 : vector<16x128xf32>
    %c0_140 = arith.constant 0 : index
    %c0_141 = arith.constant 0 : index
    %115 = vector.load %arg7[%c0_140, %c0_141] : memref<16x128xf32, #tpu.memory_space<vmem>>, vector<16x128xf32>
    tpu.vector_store %arg7[%c0_140, %c0_141], %114 {strides = array<i32>} : memref<16x128xf32, #tpu.memory_space<vmem>>, vector<16x128xf32>,
    %c1_142 = arith.constant 1 : index
    %c2_143 = arith.constant 2 : index
    %c0_144 = arith.constant 0 : index
    %c0_145 = arith.constant 0 : index
    %116 = vector.load %arg1[%c1_142, %c2_143, %c0_144, %c0_145] : memref<2x6x20x64xbf16, #tpu.memory_space<vmem>>, vector<1x1x16x64xbf16>
    %117 = vector.shape_cast %116 : vector<1x1x16x64xbf16> to vector<16x64xbf16>
    %c0_146 = arith.constant 0 : index
    %c0_147 = arith.constant 0 : index
    %118 = vector.load %arg7[%c0_146, %c0_147] : memref<16x128xf32, #tpu.memory_space<vmem>>, vector<16x128xf32>
    %c2_148 = arith.constant 2 : index
    %c0_149 = arith.constant 0 : index
    %c0_150 = arith.constant 0 : index
    %119 = vector.load %arg2[%c2_148, %c0_149, %c0_150] : memref<9x64x128xbf16, #tpu.memory_space<vmem>>, vector<1x64x128xbf16>
    %120 = vector.shape_cast %119 : vector<1x64x128xbf16> to vector<64x128xbf16>
    %cst_151 = arith.constant dense<0.000000e+00> : vector<16x128xf32>
    %121 = tpu.matmul %117, %120, %cst_151 {dimension_numbers = #tpu.dot_dimension_numbers<[1], [0], [0], [1], [0, 0, 1, 1], [], []>} : vector<16x64xbf16>, vector<64x128xbf16>, vector<16x128xf32> -> vector<16x128xf32>
    %122 = arith.addf %118, %121 : vector<16x128xf32>
    %c0_152 = arith.constant 0 : index
    %c0_153 = arith.constant 0 : index
    %123 = vector.load %arg7[%c0_152, %c0_153] : memref<16x128xf32, #tpu.memory_space<vmem>>, vector<16x128xf32>
    tpu.vector_store %arg7[%c0_152, %c0_153], %122 {strides = array<i32>} : memref<16x128xf32, #tpu.memory_space<vmem>>, vector<16x128xf32>,
    %c1_154 = arith.constant 1 : index
    %c3_155 = arith.constant 3 : index
    %c0_156 = arith.constant 0 : index
    %c0_157 = arith.constant 0 : index
    %124 = vector.load %arg1[%c1_154, %c3_155, %c0_156, %c0_157] : memref<2x6x20x64xbf16, #tpu.memory_space<vmem>>, vector<1x1x16x64xbf16>
    %125 = vector.shape_cast %124 : vector<1x1x16x64xbf16> to vector<16x64xbf16>
    %c0_158 = arith.constant 0 : index
    %c0_159 = arith.constant 0 : index
    %126 = vector.load %arg7[%c0_158, %c0_159] : memref<16x128xf32, #tpu.memory_space<vmem>>, vector<16x128xf32>
    %c3_160 = arith.constant 3 : index
    %c0_161 = arith.constant 0 : index
    %c0_162 = arith.constant 0 : index
    %127 = vector.load %arg2[%c3_160, %c0_161, %c0_162] : memref<9x64x128xbf16, #tpu.memory_space<vmem>>, vector<1x64x128xbf16>
    %128 = vector.shape_cast %127 : vector<1x64x128xbf16> to vector<64x128xbf16>
    %cst_163 = arith.constant dense<0.000000e+00> : vector<16x128xf32>
    %129 = tpu.matmul %125, %128, %cst_163 {dimension_numbers = #tpu.dot_dimension_numbers<[1], [0], [0], [1], [0, 0, 1, 1], [], []>} : vector<16x64xbf16>, vector<64x128xbf16>, vector<16x128xf32> -> vector<16x128xf32>
    %130 = arith.addf %126, %129 : vector<16x128xf32>
    %c0_164 = arith.constant 0 : index
    %c0_165 = arith.constant 0 : index
    %131 = vector.load %arg7[%c0_164, %c0_165] : memref<16x128xf32, #tpu.memory_space<vmem>>, vector<16x128xf32>
    tpu.vector_store %arg7[%c0_164, %c0_165], %130 {strides = array<i32>} : memref<16x128xf32, #tpu.memory_space<vmem>>, vector<16x128xf32>,
    %c1_166 = arith.constant 1 : index
    %c4_167 = arith.constant 4 : index
    %c0_168 = arith.constant 0 : index
    %c0_169 = arith.constant 0 : index
    %132 = vector.load %arg1[%c1_166, %c4_167, %c0_168, %c0_169] : memref<2x6x20x64xbf16, #tpu.memory_space<vmem>>, vector<1x1x16x64xbf16>
    %133 = vector.shape_cast %132 : vector<1x1x16x64xbf16> to vector<16x64xbf16>
    %c0_170 = arith.constant 0 : index
    %c0_171 = arith.constant 0 : index
    %134 = vector.load %arg7[%c0_170, %c0_171] : memref<16x128xf32, #tpu.memory_space<vmem>>, vector<16x128xf32>
    %c4_172 = arith.constant 4 : index
    %c0_173 = arith.constant 0 : index
    %c0_174 = arith.constant 0 : index
    %135 = vector.load %arg2[%c4_172, %c0_173, %c0_174] : memref<9x64x128xbf16, #tpu.memory_space<vmem>>, vector<1x64x128xbf16>
    %136 = vector.shape_cast %135 : vector<1x64x128xbf16> to vector<64x128xbf16>
    %cst_175 = arith.constant dense<0.000000e+00> : vector<16x128xf32>
    %137 = tpu.matmul %133, %136, %cst_175 {dimension_numbers = #tpu.dot_dimension_numbers<[1], [0], [0], [1], [0, 0, 1, 1], [], []>} : vector<16x64xbf16>, vector<64x128xbf16>, vector<16x128xf32> -> vector<16x128xf32>
    %138 = arith.addf %134, %137 : vector<16x128xf32>
    %c0_176 = arith.constant 0 : index
    %c0_177 = arith.constant 0 : index
    %139 = vector.load %arg7[%c0_176, %c0_177] : memref<16x128xf32, #tpu.memory_space<vmem>>, vector<16x128xf32>
    tpu.vector_store %arg7[%c0_176, %c0_177], %138 {strides = array<i32>} : memref<16x128xf32, #tpu.memory_space<vmem>>, vector<16x128xf32>,
    %c1_178 = arith.constant 1 : index
    %c5_179 = arith.constant 5 : index
    %c0_180 = arith.constant 0 : index
    %c0_181 = arith.constant 0 : index
    %140 = vector.load %arg1[%c1_178, %c5_179, %c0_180, %c0_181] : memref<2x6x20x64xbf16, #tpu.memory_space<vmem>>, vector<1x1x16x64xbf16>
    %141 = vector.shape_cast %140 : vector<1x1x16x64xbf16> to vector<16x64xbf16>
    %c0_182 = arith.constant 0 : index
    %c0_183 = arith.constant 0 : index
    %142 = vector.load %arg7[%c0_182, %c0_183] : memref<16x128xf32, #tpu.memory_space<vmem>>, vector<16x128xf32>
    %c5_184 = arith.constant 5 : index
    %c0_185 = arith.constant 0 : index
    %c0_186 = arith.constant 0 : index
    %143 = vector.load %arg2[%c5_184, %c0_185, %c0_186] : memref<9x64x128xbf16, #tpu.memory_space<vmem>>, vector<1x64x128xbf16>
    %144 = vector.shape_cast %143 : vector<1x64x128xbf16> to vector<64x128xbf16>
    %cst_187 = arith.constant dense<0.000000e+00> : vector<16x128xf32>
    %145 = tpu.matmul %141, %144, %cst_187 {dimension_numbers = #tpu.dot_dimension_numbers<[1], [0], [0], [1], [0, 0, 1, 1], [], []>} : vector<16x64xbf16>, vector<64x128xbf16>, vector<16x128xf32> -> vector<16x128xf32>
    %146 = arith.addf %142, %145 : vector<16x128xf32>
    %c0_188 = arith.constant 0 : index
    %c0_189 = arith.constant 0 : index
    %147 = vector.load %arg7[%c0_188, %c0_189] : memref<16x128xf32, #tpu.memory_space<vmem>>, vector<16x128xf32>
    tpu.vector_store %arg7[%c0_188, %c0_189], %146 {strides = array<i32>} : memref<16x128xf32, #tpu.memory_space<vmem>>, vector<16x128xf32>,
    %c1_190 = arith.constant 1 : index
    %c0_191 = arith.constant 0 : index
    %c4_192 = arith.constant 4 : index
    %c0_193 = arith.constant 0 : index
    %148 = vector.load %arg1[%c1_190, %c0_191, %c4_192, %c0_193] : memref<2x6x20x64xbf16, #tpu.memory_space<vmem>>, vector<1x1x16x64xbf16>
    %149 = vector.shape_cast %148 : vector<1x1x16x64xbf16> to vector<16x64xbf16>
    %c0_194 = arith.constant 0 : index
    %c0_195 = arith.constant 0 : index
    %150 = vector.load %arg7[%c0_194, %c0_195] : memref<16x128xf32, #tpu.memory_space<vmem>>, vector<16x128xf32>
    %c6_196 = arith.constant 6 : index
    %c0_197 = arith.constant 0 : index
    %c0_198 = arith.constant 0 : index
    %151 = vector.load %arg2[%c6_196, %c0_197, %c0_198] : memref<9x64x128xbf16, #tpu.memory_space<vmem>>, vector<1x64x128xbf16>
    %152 = vector.shape_cast %151 : vector<1x64x128xbf16> to vector<64x128xbf16>
    %cst_199 = arith.constant dense<0.000000e+00> : vector<16x128xf32>
    %153 = tpu.matmul %149, %152, %cst_199 {dimension_numbers = #tpu.dot_dimension_numbers<[1], [0], [0], [1], [0, 0, 1, 1], [], []>} : vector<16x64xbf16>, vector<64x128xbf16>, vector<16x128xf32> -> vector<16x128xf32>
    %154 = arith.addf %150, %153 : vector<16x128xf32>
    %c0_200 = arith.constant 0 : index
    %c0_201 = arith.constant 0 : index
    %155 = vector.load %arg7[%c0_200, %c0_201] : memref<16x128xf32, #tpu.memory_space<vmem>>, vector<16x128xf32>
    tpu.vector_store %arg7[%c0_200, %c0_201], %154 {strides = array<i32>} : memref<16x128xf32, #tpu.memory_space<vmem>>, vector<16x128xf32>,
    %c1_202 = arith.constant 1 : index
    %c1_203 = arith.constant 1 : index
    %c4_204 = arith.constant 4 : index
    %c0_205 = arith.constant 0 : index
    %156 = vector.load %arg1[%c1_202, %c1_203, %c4_204, %c0_205] : memref<2x6x20x64xbf16, #tpu.memory_space<vmem>>, vector<1x1x16x64xbf16>
    %157 = vector.shape_cast %156 : vector<1x1x16x64xbf16> to vector<16x64xbf16>
    %c0_206 = arith.constant 0 : index
    %c0_207 = arith.constant 0 : index
    %158 = vector.load %arg7[%c0_206, %c0_207] : memref<16x128xf32, #tpu.memory_space<vmem>>, vector<16x128xf32>
    %c7_208 = arith.constant 7 : index
    %c0_209 = arith.constant 0 : index
    %c0_210 = arith.constant 0 : index
    %159 = vector.load %arg2[%c7_208, %c0_209, %c0_210] : memref<9x64x128xbf16, #tpu.memory_space<vmem>>, vector<1x64x128xbf16>
    %160 = vector.shape_cast %159 : vector<1x64x128xbf16> to vector<64x128xbf16>
    %cst_211 = arith.constant dense<0.000000e+00> : vector<16x128xf32>
    %161 = tpu.matmul %157, %160, %cst_211 {dimension_numbers = #tpu.dot_dimension_numbers<[1], [0], [0], [1], [0, 0, 1, 1], [], []>} : vector<16x64xbf16>, vector<64x128xbf16>, vector<16x128xf32> -> vector<16x128xf32>
    %162 = arith.addf %158, %161 : vector<16x128xf32>
    %c0_212 = arith.constant 0 : index
    %c0_213 = arith.constant 0 : index
    %163 = vector.load %arg7[%c0_212, %c0_213] : memref<16x128xf32, #tpu.memory_space<vmem>>, vector<16x128xf32>
    tpu.vector_store %arg7[%c0_212, %c0_213], %162 {strides = array<i32>} : memref<16x128xf32, #tpu.memory_space<vmem>>, vector<16x128xf32>,
    %c1_214 = arith.constant 1 : index
    %c2_215 = arith.constant 2 : index
    %c4_216 = arith.constant 4 : index
    %c0_217 = arith.constant 0 : index
    %164 = vector.load %arg1[%c1_214, %c2_215, %c4_216, %c0_217] : memref<2x6x20x64xbf16, #tpu.memory_space<vmem>>, vector<1x1x16x64xbf16>
    %165 = vector.shape_cast %164 : vector<1x1x16x64xbf16> to vector<16x64xbf16>
    %c0_218 = arith.constant 0 : index
    %c0_219 = arith.constant 0 : index
    %166 = vector.load %arg7[%c0_218, %c0_219] : memref<16x128xf32, #tpu.memory_space<vmem>>, vector<16x128xf32>
    %c8_220 = arith.constant 8 : index
    %c0_221 = arith.constant 0 : index
    %c0_222 = arith.constant 0 : index
    %167 = vector.load %arg2[%c8_220, %c0_221, %c0_222] : memref<9x64x128xbf16, #tpu.memory_space<vmem>>, vector<1x64x128xbf16>
    %168 = vector.shape_cast %167 : vector<1x64x128xbf16> to vector<64x128xbf16>
    %cst_223 = arith.constant dense<0.000000e+00> : vector<16x128xf32>
    %169 = tpu.matmul %165, %168, %cst_223 {dimension_numbers = #tpu.dot_dimension_numbers<[1], [0], [0], [1], [0, 0, 1, 1], [], []>} : vector<16x64xbf16>, vector<64x128xbf16>, vector<16x128xf32> -> vector<16x128xf32>
    %170 = arith.addf %166, %169 : vector<16x128xf32>
    %c0_224 = arith.constant 0 : index
    %c0_225 = arith.constant 0 : index
    %171 = vector.load %arg7[%c0_224, %c0_225] : memref<16x128xf32, #tpu.memory_space<vmem>>, vector<16x128xf32>
    tpu.vector_store %arg7[%c0_224, %c0_225], %170 {strides = array<i32>} : memref<16x128xf32, #tpu.memory_space<vmem>>, vector<16x128xf32>,
    %c0_226 = arith.constant 0 : index
    %c0_227 = arith.constant 0 : index
    %172 = vector.load %arg7[%c0_226, %c0_227] : memref<16x128xf32, #tpu.memory_space<vmem>>, vector<16x128xf32>
    %c0_228 = arith.constant 0 : index
    %c0_229 = arith.constant 0 : index
    %173 = vector.load %arg3[%c0_228, %c0_229] : memref<1x128xf32, #tpu.memory_space<vmem>>, vector<1x128xf32>
    %174 = vector.broadcast %173 : vector<1x128xf32> to vector<16x128xf32>
    %175 = arith.addf %172, %174 : vector<16x128xf32>
    %cst_230 = arith.constant 0.000000e+00 : f32
    %176 = vector.broadcast %cst_230 : f32 to vector<16x128xf32>
    %177 = arith.cmpf oge, %175, %176 : vector<16x128xf32>
    %cst_231 = arith.constant 0.00999999977 : f32
    %178 = vector.broadcast %cst_231 : f32 to vector<16x128xf32>
    %179 = arith.mulf %178, %175 : vector<16x128xf32>
    %180 = arith.select %177, %175, %179 : vector<16x128xi1>, vector<16x128xf32>
    %c0_232 = arith.constant 0 : index
    %c0_233 = arith.constant 0 : index
    %181 = vector.load %arg4[%c0_232, %c0_233] : memref<16x128xf32, #tpu.memory_space<vmem>>, vector<16x128xf32>
    %182 = arith.mulf %180, %181 : vector<16x128xf32>
    %183 = vector.shape_cast %182 : vector<16x128xf32> to vector<1x16x128xf32>
    %cst_234 = arith.constant dense<0.000000e+00> : vector<1xf32>
    %184 = vector.multi_reduction <add>, %183, %cst_234 [1, 2] : vector<1x16x128xf32> to vector<1xf32>
    %185 = vector.shape_cast %184 : vector<1xf32> to vector<1x1x1xf32>
    %186 = vector.extract %185[0, 0, 0] : f32 from vector<1x1x1xf32>
    %187 = vector.broadcast %186 : f32 to vector<1x1xf32>
    %188 = vector.shape_cast %187 : vector<1x1xf32> to vector<1x1xf32>
    %189 = vector.broadcast %188 : vector<1x1xf32> to vector<1x128xf32>
    %c0_235 = arith.constant 0 : index
    %c0_236 = arith.constant 0 : index
    %190 = vector.load %arg5[%c0_235, %c0_236] : memref<1x1xf32, #tpu.memory_space<vmem>>, vector<1x1xf32>
    %191 = vector.broadcast %190 : vector<1x1xf32> to vector<1x128xf32>
    %192 = arith.addf %189, %191 : vector<1x128xf32>
    %c1_237 = arith.constant 1 : index
    %c0_238 = arith.constant 0 : index
    %c0_239 = arith.constant 0 : index
    %193 = vector.load %arg6[%c1_237, %c0_238, %c0_239] : memref<2x1x128xf32, #tpu.memory_space<vmem>>, vector<1x1x128xf32>
    %194 = vector.shape_cast %193 : vector<1x1x128xf32> to vector<1x128xf32>
    %195 = vector.shape_cast %192 : vector<1x128xf32> to vector<1x1x128xf32>
    tpu.vector_store %arg6[%c1_237, %c0_238, %c0_239], %195 {strides = array<i32>} : memref<2x1x128xf32, #tpu.memory_space<vmem>>, vector<1x1x128xf32>,
    return
  }
  func.func @transform_0(%arg0: i32) -> (i32, i32, i32, i32) {
    %c0_i32 = arith.constant 0 : i32
    %c0_i32_0 = arith.constant 0 : i32
    %c0_i32_1 = arith.constant 0 : i32
    %c0_i32_2 = arith.constant 0 : i32
    return %arg0, %c0_i32, %c0_i32_0, %c0_i32_1 : i32, i32, i32, i32
  }
  func.func @transform_1(%arg0: i32) -> (i32, i32, i32) {
    %c0_i32 = arith.constant 0 : i32
    %c0_i32_0 = arith.constant 0 : i32
    %c0_i32_1 = arith.constant 0 : i32
    %c0_i32_2 = arith.constant 0 : i32
    return %c0_i32, %c0_i32_0, %c0_i32_1 : i32, i32, i32
  }
  func.func @transform_2(%arg0: i32) -> (i32, i32) {
    %c0_i32 = arith.constant 0 : i32
    %c0_i32_0 = arith.constant 0 : i32
    %c0_i32_1 = arith.constant 0 : i32
    return %c0_i32, %c0_i32_0 : i32, i32
  }
  func.func @transform_3(%arg0: i32) -> (i32, i32) {
    %c0_i32 = arith.constant 0 : i32
    %c0_i32_0 = arith.constant 0 : i32
    %c0_i32_1 = arith.constant 0 : i32
    return %c0_i32, %c0_i32_0 : i32, i32
  }
  func.func @transform_4(%arg0: i32) -> (i32, i32) {
    %c0_i32 = arith.constant 0 : i32
    %c0_i32_0 = arith.constant 0 : i32
    %c0_i32_1 = arith.constant 0 : i32
    return %c0_i32, %c0_i32_0 : i32, i32
  }
  func.func @transform_5(%arg0: i32) -> (i32, i32, i32) {
    %c0_i32 = arith.constant 0 : i32
    %c0_i32_0 = arith.constant 0 : i32
    %c0_i32_1 = arith.constant 0 : i32
    return %arg0, %c0_i32, %c0_i32_0 : i32, i32, i32
  }
}

</mosaic_0001>

<bundles_post_ra>
// kernel: discriminator_forward.4
= control target key start
LH: loop header
LB: loop body
LE: loop exit
PB: predicated region body
PF: predicated region fallthrough
CT: control target
= control target key end

     0   :  { %vm75_vm0 = vcmask 261120   ;;  %s4325_s1 = inlined_call_operand.vmem [shape: bf16[9,32,128], index: 1, kind: input, shape index: {}]   ;;  %s4326_s0 = inlined_call_operand.vmem [shape: bf16[2,6,72,32], index: 0, kind: input, shape index: {}]   ;;  %s4327_s2 = inlined_call_operand.vmem [shape: f32[1,128], index: 2, kind: input, shape index: {}]   ;;  %s4328_s3 = inlined_call_operand.vmem [shape: bf16[2,64,128], index: 3, kind: output, shape index: {}]  }
   0x1   :  { %v3753_v0 = vld [vmem:[%s4325_s1] sm:$0xff]   ;;  %v3755_v2 = vld [vmem:[%s4325_s1 + $0x8] sm:$0xff]   ;;  %v3758_v5 = vld [vmem:[%s4326_s0 + $0xd8] sm:$0xff]  }
   0x2   :  { %v3754_v1 = vld [vmem:[%s4325_s1] sm:$0xff]   ;;  %3409 = vmatprep.subr.bf16.mxu0 %v3753_v0  ;;  %v3756_v3 = vld [vmem:[%s4325_s1 + $0x8] sm:$0xff]   ;;  %3521 = vmatprep.mubr.msk.bf16.mxu1 %vm75_vm0, %v3758_v5  ;;  %v3760_v7 = vld [vmem:[%s4325_s1 + $0x10] sm:$0xff]  }
   0x3   :  { %3517 = vmatprep.subr.bf16.mxu1 %v3754_v1  ;;  %3410 = vmatpush3.bf16.msra.mxu0 %v3753_v0  ;;  %v3757_v4 = vld [vmem:[%s4326_s0] sm:$0xff]   ;;  %v3759_v6 = vld [vmem:[%s4326_s0 + $0x8] sm:$0xff]   ;;  %v3762_v9 = vld [vmem:[%s4325_s1 + $0x10] sm:$0xff]  }
   0x4   :  { %3518 = vmatpush3.bf16.msra.mxu1 %v3754_v1  ;;  %3411 = vmatprep.subr.bf16.mxu0 %v3755_v2  ;;  %v3761_v8 = vld [vmem:[%s4326_s0 + $0xe0] sm:$0xff]   ;;  %v3763_v10 = vld [vmem:[%s4326_s0 + $0x10] sm:$0xff]   ;;  %v3764_v11 = vld [vmem:[%s4326_s0 + $0xe8] sm:$0xff]  }
   0x5   :  { %3519 = vmatprep.subr.bf16.mxu1 %v3756_v3  ;;  %3413 = vmatprep.mubr.msk.bf16.mxu0 %vm75_vm0, %v3757_v4  ;;  %v3765_v12 = vld [vmem:[%s4326_s0 + $0x18] sm:$0xff]   ;;  %v3767_v14 = vld [vmem:[%s4326_s0 + $0xf0] sm:$0xff]   ;;  %v3769_v16 = vld [vmem:[%s4326_s0 + $0x24] sm:$0xff]  }
   0x6   :  { %v3766_v13 = vld [vmem:[%s4325_s1 + $0x18] sm:$0xff]   ;;  %v3772_v18 = vld [vmem:[%s4325_s1 + $0x20] sm:$0xff]   ;;  %v3771_v19 = vld [vmem:[%s4326_s0 + $0x2c] sm:$0xff]  }
   0x7   :  { %3412 = vmatpush3.bf16.msra.mxu0 %v3755_v2  ;;  %v3768_v15 = vld [vmem:[%s4325_s1 + $0x18] sm:$0xff]   ;;  %v3774_v20 = vld [vmem:[%s4325_s1 + $0x20] sm:$0xff]   ;;  %v3776_v23 = vld [vmem:[%s4326_s0 + $0x10c] sm:$0xff]  }
   0x8   :  { %3520 = vmatpush3.bf16.msra.mxu1 %v3756_v3  ;;  %3421 = vmatprep.subr.bf16.mxu0 %v3760_v7  ;;  %v3770_v17 = vld [vmem:[%s4326_s0 + $0xfc] sm:$0xff]   ;;  %v3773_v21 = vld [vmem:[%s4326_s0 + $0x104] sm:$0xff]   ;;  %v3775_v22 = vld [vmem:[%s4326_s0 + $0x34] sm:$0xff]  }
   0x9   :  { %3529 = vmatprep.subr.bf16.mxu1 %v3762_v9  ;;  %v3778_v24 = vld [vmem:[%s4325_s1 + $0x28] sm:$0xff]   ;;  %v3777_v26 = vld [vmem:[%s4326_s0 + $0x3c] sm:$0xff]   ;;  %v3779_v27 = vld [vmem:[%s4326_s0 + $0x114] sm:$0xff]  }
   0xa   :  { %3414 = vmatmul.mubr.msk.bf16.vlgmr.msra.gmra.mrb[0].mxu0 %vm75_vm0, %v3759_v6  ;;  %v3780_v25 = vld [vmem:[%s4325_s1 + $0x28] sm:$0xff]   ;;  %v3784_v29 = vld [vmem:[%s4325_s1 + $0x30] sm:$0xff]   ;;  %v3782_v30 = vld [vmem:[%s4326_s0 + $0x120] sm:$0xff]  }
   0xb   :  { %3522 = vmatmul.mubr.msk.bf16.vlgmr.msra.gmra.mrb[0].mxu1 %vm75_vm0, %v3761_v8  ;;  %3422 = vmatpush3.bf16.msra.mxu0 %v3760_v7  ;;  %v3781_v28 = vld [vmem:[%s4326_s0 + $0x48] sm:$0xff]   ;;  %v3786_v31 = vld [vmem:[%s4325_s1 + $0x30] sm:$0xff]   ;;  %v3787_v34 = vld [vmem:[%s4326_s0 + $0x58] sm:$0xff]  }
   0xc   :  { %3530 = vmatpush3.bf16.msra.mxu1 %v3762_v9  ;;  %3417 = vmatprep.mubr.msk.bf16.mxu0 %vm75_vm0, %v3763_v10  ;;  %v3783_v32 = vld [vmem:[%s4326_s0 + $0x50] sm:$0xff]   ;;  %v3785_v33 = vld [vmem:[%s4326_s0 + $0x128] sm:$0xff]   ;;  %v3790_v36 = vld [vmem:[%s4325_s1 + $0x38] sm:$0xff]  }
   0xd   :  { %3525 = vmatprep.mubr.msk.bf16.mxu1 %vm75_vm0, %v3764_v11  ;;  %3423 = vmatprep.subr.bf16.mxu0 %v3766_v13  ;;  %v3788_v35 = vld [vmem:[%s4326_s0 + $0x130] sm:$0xff]   ;;  %v3792_v37 = vld [vmem:[%s4325_s1 + $0x38] sm:$0xff]   ;;  %v3789_v38 = vld [vmem:[%s4326_s0 + $0x60] sm:$0xff]  }
   0xe   :  { %3531 = vmatprep.subr.bf16.mxu1 %v3768_v15  ;;  %v3796_v39 = vld [vmem:[%s4325_s1 + $0x40] sm:$0xff]   ;;  %v3791_v41 = vld [vmem:[%s4326_s0 + $0x138] sm:$0xff]   ;;  %v3793_v42 = vld [vmem:[%s4326_s0 + $0x6c] sm:$0xff]  }
   0xf   :  { %3424 = vmatpush3.bf16.msra.mxu0 %v3766_v13  ;;  %v3798_v40 = vld [vmem:[%s4325_s1 + $0x40] sm:$0xff]   ;;  %v3795_v44 = vld [vmem:[%s4326_s0 + $0x74] sm:$0xff]   ;;  %v3797_v45 = vld [vmem:[%s4326_s0 + $0x14c] sm:$0xff]  }
  0x10   :  { %3532 = vmatpush3.bf16.msra.mxu1 %v3768_v15  ;;  %3433 = vmatprep.subr.bf16.mxu0 %v3772_v18  ;;  %v3794_v43 = vld [vmem:[%s4326_s0 + $0x144] sm:$0xff]   ;;  %v3799_v46 = vld [vmem:[%s4326_s0 + $0x7c] sm:$0xff]   ;;  %v3800_v47 = vld [vmem:[%s4326_s0 + $0x154] sm:$0xff]  }
  0x11   :  { %3541 = vmatprep.subr.bf16.mxu1 %v3774_v20  ;;  %v3802_v48 = vld [vmem:[%s4325_s1 + $0x48] sm:$0xff]   ;;  %v3808_v51 = vld [vmem:[%s4325_s1 + $0x50] sm:$0xff]   ;;  %v3803_v53 = vld [vmem:[%s4326_s0 + $0x15c] sm:$0xff]  }
  0x12   :  { %3418 = vmatmul.mubr.msk.bf16.gmra.mrb[4].mxu0 %vm75_vm0, %v3765_v12  ;;  %v3804_v49 = vld [vmem:[%s4325_s1 + $0x48] sm:$0xff]   ;;  %v3810_v52 = vld [vmem:[%s4325_s1 + $0x50] sm:$0xff]   ;;  %v3807_v56 = vld [vmem:[%s4326_s0 + $0x98] sm:$0xff]  }
  0x13   :  { %3526 = vmatmul.mubr.msk.bf16.gmra.mrb[4].mxu1 %vm75_vm0, %v3767_v14  ;;  %3425 = vmatprep.mubr.msk.bf16.mxu0 %vm75_vm0, %v3769_v16  ;;  %v3801_v50 = vld [vmem:[%s4326_s0 + $0x84] sm:$0xff]   ;;  %v3805_v54 = vld [vmem:[%s4326_s0 + $0x90] sm:$0xff]   ;;  %v3812_v59 = vld [vmem:[%s4326_s0 + $0x178] sm:$0xff]  }
  0x14   :  { %3533 = vmatprep.mubr.msk.bf16.mxu1 %vm75_vm0, %v3770_v17  ;;  %v3806_v55 = vld [vmem:[%s4326_s0 + $0x168] sm:$0xff]   ;;  %v3809_v57 = vld [vmem:[%s4326_s0 + $0x170] sm:$0xff]   ;;  %v3811_v58 = vld [vmem:[%s4326_s0 + $0xa0] sm:$0xff]  }
  0x15   :  { %v3814_v60 = vld [vmem:[%s4325_s1 + $0x58] sm:$0xff]   ;;  %v3813_v62 = vld [vmem:[%s4326_s0 + $0xa8] sm:$0xff]   ;;  %v3820_v63 = vld [vmem:[%s4325_s1 + $0x60] sm:$0xff]  }
  0x16   :  { %v3816_v61 = vld [vmem:[%s4325_s1 + $0x58] sm:$0xff]   ;;  %v3822_v0 = vld [vmem:[%s4325_s1 + $0x60] sm:$0xff]   ;;  %v3818_v3 = vld [vmem:[%s4326_s0 + $0x18c] sm:$0xff]  }
  0x17   :  { %v3815_v1 = vld [vmem:[%s4326_s0 + $0x180] sm:$0xff]   ;;  %v3817_v2 = vld [vmem:[%s4326_s0 + $0xb4] sm:$0xff]   ;;  %v3826_v8 = vld [vmem:[%s4325_s1 + $0x68] sm:$0xff]  }
  0x18   :  { %v3819_v4 = vld [vmem:[%s4326_s0 + $0xbc] sm:$0xff]   ;;  %v3821_v5 = vld [vmem:[%s4326_s0 + $0x194] sm:$0xff]   ;;  %v3823_v6 = vld [vmem:[%s4326_s0 + $0xc4] sm:$0xff]  }
  0x19   :  { %v3824_v7 = vld [vmem:[%s4326_s0 + $0x19c] sm:$0xff]   ;;  %v3828_v9 = vld [vmem:[%s4325_s1 + $0x68] sm:$0xff]   ;;  %v3832_v11 = vld [vmem:[%s4325_s1 + $0x70] sm:$0xff]  }
  0x1a   :  { %3426 = vmatmul.mubr.msk.bf16.vlgmr.msra.gmra.mrb[0].mxu0 %vm75_vm0, %v3771_v19  ;;  %v3825_v10 = vld [vmem:[%s4326_s0 + $0xcc] sm:$0xff]   ;;  %v3827_v13 = vld [vmem:[%s4326_s0 + $0x1a4] sm:$0xff]   ;;  %v3830_v15 = vld [vmem:[%s4326_s0 + $0xdc] sm:$0xff]  }
  0x1b   :  { %3534 = vmatmul.mubr.msk.bf16.vlgmr.msra.gmra.mrb[0].mxu1 %vm75_vm0, %v3773_v21  ;;  %3434 = vmatpush3.bf16.msra.mxu0 %v3772_v18  ;;  %v3834_v12 = vld [vmem:[%s4325_s1 + $0x70] sm:$0xff]   ;;  %v3829_v14 = vld [vmem:[%s4326_s0 + $0x4] sm:$0xff]   ;;  %v3840_v21 = vld [vmem:[%s4325_s1 + $0x78] sm:$0xff]  }
  0x1c   :  { %3542 = vmatpush3.bf16.msra.mxu1 %v3774_v20  ;;  %3429 = vmatprep.mubr.msk.bf16.mxu0 %vm75_vm0, %v3775_v22  ;;  %v3831_v16 = vld [vmem:[%s4326_s0 + $0xc] sm:$0xff]   ;;  %v3833_v17 = vld [vmem:[%s4326_s0 + $0xe4] sm:$0xff]   ;;  %v3835_v18 = vld [vmem:[%s4326_s0 + $0x14] sm:$0xff]  }
  0x1d   :  { %3537 = vmatprep.mubr.msk.bf16.mxu1 %vm75_vm0, %v3776_v23  ;;  %3435 = vmatprep.subr.bf16.mxu0 %v3778_v24  ;;  %v3836_v19 = vld [vmem:[%s4326_s0 + $0xec] sm:$0xff]   ;;  %v3838_v20 = vld [vmem:[%s4325_s1 + $0x78] sm:$0xff]   ;;  %v3844_v22 = vld [vmem:[%s4325_s1 + $0x80] sm:$0xff]  }
  0x1e   :  { %3543 = vmatprep.subr.bf16.mxu1 %v3780_v25  ;;  %v3846_v23 = vld [vmem:[%s4325_s1 + $0x80] sm:$0xff]  }
  0x1f   :  { %3436 = vmatpush3.bf16.msra.mxu0 %v3778_v24  ;;  %v3837_v24 = vld [vmem:[%s4326_s0 + $0x1c] sm:$0xff]  }
  0x20   :  { %3544 = vmatpush3.bf16.msra.mxu1 %v3780_v25  ;;  %3445 = vmatprep.subr.bf16.mxu0 %v3784_v29  ;;  %v3839_v25 = vld [vmem:[%s4326_s0 + $0xf4] sm:$0xff]  }
  0x21   :  { %3553 = vmatprep.subr.bf16.mxu1 %v3786_v31 }
  0x22   :  { %3430 = vmatmul.mubr.msk.bf16.gmra.mrb[4].mxu0 %vm75_vm0, %v3777_v26  ;;  %v3841_v26 = vld [vmem:[%s4326_s0 + $0x28] sm:$0xff]  }
  0x23   :  { %3538 = vmatmul.mubr.msk.bf16.gmra.mrb[4].mxu1 %vm75_vm0, %v3779_v27  ;;  %3437 = vmatprep.mubr.msk.bf16.mxu0 %vm75_vm0, %v3781_v28  ;;  %v3842_v27 = vld [vmem:[%s4326_s0 + $0x100] sm:$0xff]   ;;  %v3843_v28 = vld [vmem:[%s4326_s0 + $0x30] sm:$0xff]  }
  0x24   :  { %3545 = vmatprep.mubr.msk.bf16.mxu1 %vm75_vm0, %v3782_v30  ;;  %v3847_v30 = vld [vmem:[%s4326_s0 + $0x38] sm:$0xff]  }
  0x2a   :  { %3438 = vmatmul.mubr.msk.bf16.vlgmr.msra.gmra.mrb[0].mxu0 %vm75_vm0, %v3783_v32  ;;  %v3850_v32 = vld [vmem:[%s4325_s1 + $0x88] sm:$0xff]  }
  0x2b   :  { %3546 = vmatmul.mubr.msk.bf16.vlgmr.msra.gmra.mrb[0].mxu1 %vm75_vm0, %v3785_v33  ;;  %3446 = vmatpush3.bf16.msra.mxu0 %v3784_v29  ;;  %v3845_v29 = vld [vmem:[%s4326_s0 + $0x108] sm:$0xff]  }
  0x2c   :  { %3554 = vmatpush3.bf16.msra.mxu1 %v3786_v31  ;;  %3441 = vmatprep.mubr.msk.bf16.mxu0 %vm75_vm0, %v3787_v34  ;;  %v3848_v31 = vld [vmem:[%s4326_s0 + $0x110] sm:$0xff]   ;;  %v3852_v33 = vld [vmem:[%s4325_s1 + $0x88] sm:$0xff]   ;;  %v3849_v34 = vld [vmem:[%s4326_s0 + $0x40] sm:$0xff]  }
  0x2d   :  { %3549 = vmatprep.mubr.msk.bf16.mxu1 %vm75_vm0, %v3788_v35  ;;  %3447 = vmatprep.subr.bf16.mxu0 %v3790_v36  ;;  %v3851_v35 = vld [vmem:[%s4326_s0 + $0x118] sm:$0xff]  }
  0x2e   :  { %3555 = vmatprep.subr.bf16.mxu1 %v3792_v37 }
  0x2f   :  { %3448 = vmatpush3.bf16.msra.mxu0 %v3790_v36  ;;  %v3853_v36 = vld [vmem:[%s4326_s0 + $0x4c] sm:$0xff]  }
  0x30   :  { %3556 = vmatpush3.bf16.msra.mxu1 %v3792_v37  ;;  %3457 = vmatprep.subr.bf16.mxu0 %v3796_v39  ;;  %v3854_v37 = vld [vmem:[%s4326_s0 + $0x124] sm:$0xff]  }
  0x31   :  { %3565 = vmatprep.subr.bf16.mxu1 %v3798_v40 }
  0x32   :  { %3442 = vmatmul.mubr.msk.bf16.gmra.mrb[4].mxu0 %vm75_vm0, %v3789_v38  ;;  %v3855_v38 = vld [vmem:[%s4326_s0 + $0x54] sm:$0xff]  }
  0x33   :  { %3550 = vmatmul.mubr.msk.bf16.gmra.mrb[4].mxu1 %vm75_vm0, %v3791_v41  ;;  %3449 = vmatprep.mubr.msk.bf16.mxu0 %vm75_vm0, %v3793_v42  ;;  %v3858_v41 = vld [vmem:[%s4326_s0 + $0x134] sm:$0xff]   ;;  %v3859_v42 = vld [vmem:[%s4326_s0 + $0x64] sm:$0xff]  }
  0x34   :  { %3557 = vmatprep.mubr.msk.bf16.mxu1 %vm75_vm0, %v3794_v43  ;;  %v3860_v43 = vld [vmem:[%s4326_s0 + $0x13c] sm:$0xff]  }
  0x3a   :  { %3450 = vmatmul.mubr.msk.bf16.vlgmr.msra.gmra.mrb[0].mxu0 %vm75_vm0, %v3795_v44  ;;  %v4280_v44 = vld [vmem:[%s4327_s2] ss:$0 sm:$0xff] }
  0x3b   :  { %3558 = vmatmul.mubr.msk.bf16.vlgmr.msra.gmra.mrb[0].mxu1 %vm75_vm0, %v3797_v45  ;;  %3458 = vmatpush3.bf16.msra.mxu0 %v3796_v39  ;;  %v3856_v39 = vld [vmem:[%s4326_s0 + $0x12c] sm:$0xff]  }
  0x3c   :  { %3566 = vmatpush3.bf16.msra.mxu1 %v3798_v40  ;;  %3453 = vmatprep.mubr.msk.bf16.mxu0 %vm75_vm0, %v3799_v46  ;;  %v3857_v40 = vld [vmem:[%s4326_s0 + $0x5c] sm:$0xff]  }
  0x3d   :  { %3561 = vmatprep.mubr.msk.bf16.mxu1 %vm75_vm0, %v3800_v47  ;;  %3459 = vmatprep.subr.bf16.mxu0 %v3802_v48 }
  0x3e   :  { %3567 = vmatprep.subr.bf16.mxu1 %v3804_v49 }
  0x3f   :  { %3460 = vmatpush3.bf16.msra.mxu0 %v3802_v48 }
  0x40   :  { %3568 = vmatpush3.bf16.msra.mxu1 %v3804_v49  ;;  %3469 = vmatprep.subr.bf16.mxu0 %v3808_v51 }
  0x41   :  { %3577 = vmatprep.subr.bf16.mxu1 %v3810_v52 }
  0x42   :  { %3454 = vmatmul.mubr.msk.bf16.gmra.mrb[4].mxu0 %vm75_vm0, %v3801_v50 }
  0x43   :  { %3562 = vmatmul.mubr.msk.bf16.gmra.mrb[4].mxu1 %vm75_vm0, %v3803_v53  ;;  %3461 = vmatprep.mubr.msk.bf16.mxu0 %vm75_vm0, %v3805_v54 }
  0x44   :  { %3569 = vmatprep.mubr.msk.bf16.mxu1 %vm75_vm0, %v3806_v55 }
  0x4a   :  { %3462 = vmatmul.mubr.msk.bf16.vlgmr.msra.gmra.mrb[0].mxu0 %vm75_vm0, %v3807_v56 }
  0x4b   :  { %3570 = vmatmul.mubr.msk.bf16.vlgmr.msra.gmra.mrb[0].mxu1 %vm75_vm0, %v3809_v57  ;;  %3470 = vmatpush3.bf16.msra.mxu0 %v3808_v51 }
  0x4c   :  { %3578 = vmatpush3.bf16.msra.mxu1 %v3810_v52  ;;  %3465 = vmatprep.mubr.msk.bf16.mxu0 %vm75_vm0, %v3811_v58 }
  0x4d   :  { %3573 = vmatprep.mubr.msk.bf16.mxu1 %vm75_vm0, %v3812_v59  ;;  %3471 = vmatprep.subr.bf16.mxu0 %v3814_v60 }
  0x4e   :  { %3579 = vmatprep.subr.bf16.mxu1 %v3816_v61 }
  0x4f   :  { %3472 = vmatpush3.bf16.msra.mxu0 %v3814_v60 }
  0x50   :  { %3580 = vmatpush3.bf16.msra.mxu1 %v3816_v61  ;;  %3481 = vmatprep.subr.bf16.mxu0 %v3820_v63 }
  0x51   :  { %3589 = vmatprep.subr.bf16.mxu1 %v3822_v0 }
  0x52   :  { %3466 = vmatmul.mubr.msk.bf16.gmra.mrb[4].mxu0 %vm75_vm0, %v3813_v62 }
  0x53   :  { %3574 = vmatmul.mubr.msk.bf16.gmra.mrb[4].mxu1 %vm75_vm0, %v3815_v1  ;;  %3473 = vmatprep.mubr.msk.bf16.mxu0 %vm75_vm0, %v3817_v2 }
  0x54   :  { %3581 = vmatprep.mubr.msk.bf16.mxu1 %vm75_vm0, %v3818_v3 }
  0x5a   :  { %3474 = vmatmul.mubr.msk.bf16.vlgmr.msra.gmra.mrb[0].mxu0 %vm75_vm0, %v3819_v4 }
  0x5b   :  { %3582 = vmatmul.mubr.msk.bf16.vlgmr.msra.gmra.mrb[0].mxu1 %vm75_vm0, %v3821_v5  ;;  %3482 = vmatpush3.bf16.msra.mxu0 %v3820_v63 }
  0x5c   :  { %3590 = vmatpush3.bf16.msra.mxu1 %v3822_v0  ;;  %3477 = vmatprep.mubr.msk.bf16.mxu0 %vm75_vm0, %v3823_v6 }
  0x5d   :  { %3585 = vmatprep.mubr.msk.bf16.mxu1 %vm75_vm0, %v3824_v7  ;;  %3483 = vmatprep.subr.bf16.mxu0 %v3826_v8 }
  0x5e   :  { %3591 = vmatprep.subr.bf16.mxu1 %v3828_v9 }
  0x5f   :  { %3484 = vmatpush3.bf16.msra.mxu0 %v3826_v8 }
  0x60   :  { %3592 = vmatpush3.bf16.msra.mxu1 %v3828_v9  ;;  %3493 = vmatprep.subr.bf16.mxu0 %v3832_v11 }
  0x61   :  { %3601 = vmatprep.subr.bf16.mxu1 %v3834_v12 }
  0x62   :  { %3478 = vmatmul.mubr.msk.bf16.gmra.mrb[4].mxu0 %vm75_vm0, %v3825_v10 }
  0x63   :  { %3586 = vmatmul.mubr.msk.bf16.gmra.mrb[4].mxu1 %vm75_vm0, %v3827_v13  ;;  %3485 = vmatprep.mubr.msk.bf16.mxu0 %vm75_vm0, %v3829_v14 }
  0x64   :  { %3593 = vmatprep.mubr.msk.bf16.mxu1 %vm75_vm0, %v3830_v15 }
  0x6a   :  { %3486 = vmatmul.mubr.msk.bf16.vlgmr.msra.gmra.mrb[0].mxu0 %vm75_vm0, %v3831_v16 }
  0x6b   :  { %3594 = vmatmul.mubr.msk.bf16.vlgmr.msra.gmra.mrb[0].mxu1 %vm75_vm0, %v3833_v17  ;;  %3494 = vmatpush3.bf16.msra.mxu0 %v3832_v11 }
  0x6c   :  { %3602 = vmatpush3.bf16.msra.mxu1 %v3834_v12  ;;  %3489 = vmatprep.mubr.msk.bf16.mxu0 %vm75_vm0, %v3835_v18 }
  0x6d   :  { %3597 = vmatprep.mubr.msk.bf16.mxu1 %vm75_vm0, %v3836_v19  ;;  %3495 = vmatprep.subr.bf16.mxu0 %v3838_v20 }
  0x6e   :  { %3603 = vmatprep.subr.bf16.mxu1 %v3840_v21 }
  0x6f   :  { %3496 = vmatpush3.bf16.msra.mxu0 %v3838_v20 }
  0x70   :  { %3604 = vmatpush3.bf16.msra.mxu1 %v3840_v21  ;;  %3505 = vmatprep.subr.bf16.mxu0 %v3844_v22 }
  0x71   :  { %3613 = vmatprep.subr.bf16.mxu1 %v3846_v23 }
  0x72   :  { %3490 = vmatmul.mubr.msk.bf16.gmra.mrb[4].mxu0 %vm75_vm0, %v3837_v24 }
  0x73   :  { %3598 = vmatmul.mubr.msk.bf16.gmra.mrb[4].mxu1 %vm75_vm0, %v3839_v25  ;;  %3497 = vmatprep.mubr.msk.bf16.mxu0 %vm75_vm0, %v3841_v26 }
  0x74   :  { %3605 = vmatprep.mubr.msk.bf16.mxu1 %vm75_vm0, %v3842_v27 }
  0x7a   :  { %3498 = vmatmul.mubr.msk.bf16.vlgmr.msra.gmra.mrb[0].mxu0 %vm75_vm0, %v3843_v28 }
  0x7b   :  { %3606 = vmatmul.mubr.msk.bf16.vlgmr.msra.gmra.mrb[0].mxu1 %vm75_vm0, %v3845_v29  ;;  %3506 = vmatpush3.bf16.msra.mxu0 %v3844_v22 }
  0x7c   :  { %3614 = vmatpush3.bf16.msra.mxu1 %v3846_v23  ;;  %3501 = vmatprep.mubr.msk.bf16.mxu0 %vm75_vm0, %v3847_v30 }
  0x7d   :  { %3609 = vmatprep.mubr.msk.bf16.mxu1 %vm75_vm0, %v3848_v31  ;;  %3507 = vmatprep.subr.bf16.mxu0 %v3850_v32 }
  0x7e   :  { %3615 = vmatprep.subr.bf16.mxu1 %v3852_v33 }
  0x7f   :  { %3508 = vmatpush3.bf16.msra.mxu0 %v3850_v32 }
  0x80   :  { %3616 = vmatpush3.bf16.msra.mxu1 %v3852_v33 }
  0x82   :  { %3502 = vmatmul.mubr.msk.bf16.gmra.mrb[4].mxu0 %vm75_vm0, %v3849_v34 }
  0x83   :  { %3610 = vmatmul.mubr.msk.bf16.gmra.mrb[4].mxu1 %vm75_vm0, %v3851_v35  ;;  %3509 = vmatprep.mubr.msk.bf16.mxu0 %vm75_vm0, %v3853_v36 }
  0x84   :  { %3617 = vmatprep.mubr.msk.bf16.mxu1 %vm75_vm0, %v3854_v37 }
  0x8a   :  { %3510 = vmatmul.mubr.msk.bf16.vlgmr.msra.gmra.mrb[0].mxu0 %vm75_vm0, %v3855_v38 }
  0x8b   :  { %3618 = vmatmul.mubr.msk.bf16.vlgmr.msra.gmra.mrb[0].mxu1 %vm75_vm0, %v3856_v39  ;;  %3513 = vmatprep.mubr.msk.bf16.mxu0 %vm75_vm0, %v3857_v40 }
  0x8c   :  { %3621 = vmatprep.mubr.msk.bf16.mxu1 %vm75_vm0, %v3858_v41 }
  0x92   :  { %3514 = vmatmul.mubr.msk.bf16.gmra.mrb[4].mxu0 %vm75_vm0, %v3859_v42 }
  0x93   :  { %3622 = vmatmul.mubr.msk.bf16.gmra.mrb[4].mxu1 %vm75_vm0, %v3860_v43 }
 0x15d   :  { %v3511_v45 = vpop.f32.mrb[0].mxu0 }
 0x15e   :  { %v1359_v46 = vadd.f32 %v3511_v45, %v4280_v44  ;;  %v3619_v47 = vpop.f32.mrb[0].mxu1  ;;  %v1295_v48 = vpop.f32.mrb[1].mxu0 }
 0x15f   :  { %v2765_v49 = vadd.f32 %v3619_v47, %v4280_v44  ;;  %v1357_v50 = vadd.f32 %v4280_v44, %v1295_v48  ;;  %v2701_v51 = vpop.f32.mrb[1].mxu1  ;;  %v3512_v52 = vpop.f32.mrb[2].mxu0 }
 0x160   :  { %vm1367_vm1 = vcmp.ge.f32.partialorder %v1359_v46, 0.0  ;;  %v1375_v53 = vmul.f32 0.01, %v1359_v46  ;;  %v2763_v54 = vadd.f32 %v4280_v44, %v2701_v51  ;;  %v1360_v55 = vadd.f32 %v3512_v52, %v4280_v44  ;;  %v3620_v56 = vpop.f32.mrb[2].mxu1  ;;  %v1298_v57 = vpop.f32.mrb[3].mxu0 }
 0x161   :  { %vm2773_vm2 = vcmp.ge.f32.partialorder %v2765_v49, 0.0  ;;  %v2781_v58 = vmul.f32 0.01, %v2765_v49  ;;  %v1373_v59 = vmul.f32 0.01, %v1357_v50  ;;  %vm1365_vm3 = vcmp.ge.f32.partialorder %v1357_v50, 0.0 }
 0x162   :  { %vm1368_vm4 = vcmp.ge.f32.partialorder %v1360_v55, 0.0  ;;  %v2704_v60 = vpop.f32.mrb[3].mxu1  ;;  %v1383_v61 = vsel %vm1367_vm1, %v1359_v46, %v1375_v53  ;;  %vm2771_vm5 = vcmp.ge.f32.partialorder %v2763_v54, 0.0  ;;  %v1376_v62 = vmul.f32 0.01, %v1360_v55 }
 0x163   :  { %v2766_v63 = vadd.f32 %v3620_v56, %v4280_v44  ;;  %v2789_v0 = vsel %vm2773_vm2, %v2765_v49, %v2781_v58  ;;  %v2779_v1 = vmul.f32 0.01, %v2763_v54  ;;  %v1358_v2 = vadd.f32 %v4280_v44, %v1298_v57 }
 0x164   :  { %v2764_v3 = vadd.f32 %v4280_v44, %v2704_v60  ;;  %v1381_v4 = vsel %vm1365_vm3, %v1357_v50, %v1373_v59  ;;  %v1384_v5 = vsel %vm1368_vm4, %v1360_v55, %v1376_v62 }
 0x165   :  { %vm2774_vm6 = vcmp.ge.f32.partialorder %v2766_v63, 0.0  ;;  %v2782_v6 = vmul.f32 0.01, %v2766_v63  ;;  %v3515_v7 = vpop.f32.mrb[4].mxu0  ;;  %v3262_v8 = vpack.c.bf16 %v1384_v5, %v1383_v61  ;;  %vm1366_vm7 = vcmp.ge.f32.partialorder %v1358_v2, 0.0 }
 0x166   :  { %v1374_v9 = vmul.f32 0.01, %v1358_v2  ;;  %vm2772_vm8 = vcmp.ge.f32.partialorder %v2764_v3, 0.0  ;;  %v3623_v10 = vpop.f32.mrb[4].mxu1  ;;  %v1311_v11 = vpop.f32.mrb[5].mxu0  ;;  %v1363_v14 = vadd.f32 %v3515_v7, %v4280_v44  ;;  %v2787_v24 = vsel %vm2771_vm5, %v2763_v54, %v2779_v1 }
 0x167   :  { %v2790_v12 = vsel %vm2774_vm6, %v2766_v63, %v2782_v6  ;;  %v2780_v13 = vmul.f32 0.01, %v2764_v3  ;;  %v2769_v15 = vadd.f32 %v3623_v10, %v4280_v44  ;;  %v2717_v16 = vpop.f32.mrb[5].mxu1  ;;  %v3516_v17 = vpop.f32.mrb[6].mxu0  ;;  %3294 = vst [vmem:[%s4328_s3 + $0x8] sm:$0xff] %v3262_v8   ;;  %v1361_v20 = vadd.f32 %v4280_v44, %v1311_v11 }
 0x168   :  { %v3282_v18 = vpack.c.bf16 %v2790_v12, %v2789_v0  ;;  %v1382_v19 = vsel %vm1366_vm7, %v1358_v2, %v1374_v9  ;;  %v2767_v21 = vadd.f32 %v4280_v44, %v2717_v16  ;;  %v3624_v22 = vpop.f32.mrb[6].mxu1  ;;  %v1314_v23 = vpop.f32.mrb[7].mxu0  ;;  %v1379_v27 = vmul.f32 0.01, %v1363_v14 }
 0x169   :  { %v3257_v25 = vpack.c.bf16 %v1382_v19, %v1381_v4  ;;  %v2788_v26 = vsel %vm2772_vm8, %v2764_v3, %v2780_v13  ;;  %v2720_v28 = vpop.f32.mrb[7].mxu1  ;;  %vm1371_vm9 = vcmp.ge.f32.partialorder %v1363_v14, 0.0  ;;  %vm2777_vm10 = vcmp.ge.f32.partialorder %v2769_v15, 0.0 }
 0x16a   :  { %3298 = vst [vmem:[%s4328_s3 + $0x28] sm:$0xff] %v3282_v18   ;;  %v3277_v29 = vpack.c.bf16 %v2788_v26, %v2787_v24  ;;  %v2785_v30 = vmul.f32 0.01, %v2769_v15  ;;  %vm1369_vm11 = vcmp.ge.f32.partialorder %v1361_v20, 0.0  ;;  %v1377_v31 = vmul.f32 0.01, %v1361_v20 }
 0x16b   :  { %3258 = vst [vmem:[%s4328_s3] sm:$0xff] %v3257_v25   ;;  %v2783_v32 = vmul.f32 0.01, %v2767_v21  ;;  %v1364_v33 = vadd.f32 %v3516_v17, %v4280_v44  ;;  %v2770_v34 = vadd.f32 %v3624_v22, %v4280_v44  ;;  %v1362_v35 = vadd.f32 %v4280_v44, %v1314_v23 }
 0x16c   :  { %3297 = vst [vmem:[%s4328_s3 + $0x20] sm:$0xff] %v3277_v29   ;;  %v1387_v36 = vsel %vm1371_vm9, %v1363_v14, %v1379_v27  ;;  %v2793_v37 = vsel %vm2777_vm10, %v2769_v15, %v2785_v30  ;;  %vm2775_vm12 = vcmp.ge.f32.partialorder %v2767_v21, 0.0  ;;  %v2768_v38 = vadd.f32 %v4280_v44, %v2720_v28 }
 0x16d   :  { %vm1372_vm13 = vcmp.ge.f32.partialorder %v1364_v33, 0.0  ;;  %v1380_v39 = vmul.f32 0.01, %v1364_v33  ;;  %vm2778_vm14 = vcmp.ge.f32.partialorder %v2770_v34, 0.0  ;;  %v2786_v40 = vmul.f32 0.01, %v2770_v34 }
 0x16e   :  { %vm1370_vm15 = vcmp.ge.f32.partialorder %v1362_v35, 0.0  ;;  %v1378_v41 = vmul.f32 0.01, %v1362_v35  ;;  %vm2776_vm0 = vcmp.ge.f32.partialorder %v2768_v38, 0.0  ;;  %v2784_v42 = vmul.f32 0.01, %v2768_v38 }
 0x16f   :  { %v1385_v43 = vsel %vm1369_vm11, %v1361_v20, %v1377_v31  ;;  %v2791_v45 = vsel %vm2775_vm12, %v2767_v21, %v2783_v32  ;;  %v1388_v46 = vsel %vm1372_vm13, %v1364_v33, %v1380_v39  ;;  %v2794_v47 = vsel %vm2778_vm14, %v2770_v34, %v2786_v40 }
 0x170   :  { %v3272_v48 = vpack.c.bf16 %v1388_v46, %v1387_v36  ;;  %v3292_v49 = vpack.c.bf16 %v2794_v47, %v2793_v37  ;;  %v1386_v50 = vsel %vm1370_vm15, %v1362_v35, %v1378_v41  ;;  %v2792_v51 = vsel %vm2776_vm0, %v2768_v38, %v2784_v42 }
 0x171   :  { %v3267_v52 = vpack.c.bf16 %v1386_v50, %v1385_v43  ;;  %v3287_v53 = vpack.c.bf16 %v2792_v51, %v2791_v45 }
 0x172   :  { %3296 = vst [vmem:[%s4328_s3 + $0x18] sm:$0xff] %v3272_v48   ;;  %3300 = vst [vmem:[%s4328_s3 + $0x38] sm:$0xff] %v3292_v49  }
 0x173   :  { %3295 = vst [vmem:[%s4328_s3 + $0x10] sm:$0xff] %v3267_v52   ;;  %3299 = vst [vmem:[%s4328_s3 + $0x30] sm:$0xff] %v3287_v53  }

// kernel: discriminator_forward.5
= control target key start
LH: loop header
LB: loop body
LE: loop exit
PB: predicated region body
PF: predicated region fallthrough
CT: control target
= control target key end

     0   :  { %v2478_v0 = vmov 0.0   ;;  %vm2479_vm0 = vmmov 0   ;;  %vm66_vm1 = vcmask 523264   ;;  %vm592_vm2 = vcmask 1045504   ;;  %s2963_s1 = inlined_call_operand.vmem [shape: bf16[9,64,128], index: 1, kind: input, shape index: {}]   ;;  %s2964_s0 = inlined_call_operand.vmem [shape: bf16[2,6,20,64], index: 0, kind: input, shape index: {}]   ;;  %s2965_s4 = inlined_call_operand.<no memory space> [shape: f32[1,1], index: 4, kind: input, shape index: {}]   ;;  %s2966_s2 = inlined_call_operand.vmem [shape: f32[1,128], index: 2, kind: input, shape index: {}]   ;;  %s2967_s3 = inlined_call_operand.vmem [shape: f32[16,128], index: 3, kind: input, shape index: {}]   ;;  %s2968_s5 = inlined_call_operand.vmem [shape: f32[2,1,128], index: 5, kind: output, shape index: {}]  }
   0x1   :  { %2157 = vmatprep.subr.bf16.mxu0 %v2478_v0  ;;  %2169 = vmatprep.subr.bf16.mxu1 %v2478_v0  ;;  %v2382_v1 = vld [vmem:[%s2963_s1] sm:$0xff]   ;;  %v2384_v3 = vld [vmem:[%s2963_s1 + $0x8] sm:$0xff]   ;;  %v2386_v5 = vld [vmem:[%s2963_s1 + $0x10] sm:$0xff]  }
   0x2   :  { %v2383_v2 = vld [vmem:[%s2963_s1 + $0x20] sm:$0xff]   ;;  %2165 = vmatprep.mubr.msk.bf16.mxu0 %vm2479_vm0, %v2478_v0  ;;  %2177 = vmatprep.mubr.msk.bf16.mxu1 %vm2479_vm0, %v2478_v0  ;;  %v2385_v4 = vld [vmem:[%s2963_s1 + $0x28] sm:$0xff]   ;;  %v2387_v6 = vld [vmem:[%s2963_s1 + $0x30] sm:$0xff]  }
   0x3   :  { %2158 = vmatpush3.bf16.msra.mxu0 %v2382_v1  ;;  %2170 = vmatpush3.bf16.msra.mxu1 %v2383_v2  ;;  %v2388_v7 = vld [vmem:[%s2963_s1 + $0x18] sm:$0xff]   ;;  %v2390_v9 = vld [vmem:[%s2964_s0] sm:$0xff]   ;;  %v2391_v10 = vld [vmem:[%s2964_s0 + $0xc] sm:$0xff]  }
   0x4   :  { %2159 = vmatprep.subr.bf16.mxu0 %v2478_v0  ;;  %2171 = vmatprep.subr.bf16.mxu1 %v2478_v0  ;;  %v2389_v8 = vld [vmem:[%s2963_s1 + $0x38] sm:$0xff]   ;;  %v2392_v11 = vld [vmem:[%s2963_s1 + $0x40] sm:$0xff]   ;;  %v2394_v13 = vld [vmem:[%s2963_s1 + $0x48] sm:$0xff]  }
   0x5   :  { %v2393_v12 = vld [vmem:[%s2963_s1 + $0x60] sm:$0xff]   ;;  %v2395_v14 = vld [vmem:[%s2963_s1 + $0x68] sm:$0xff]   ;;  %v2396_v15 = vld [vmem:[%s2963_s1 + $0x50] sm:$0xff]  }
   0x6   :  { %v2397_v16 = vld [vmem:[%s2963_s1 + $0x70] sm:$0xff]   ;;  %v2398_v17 = vld [vmem:[%s2963_s1 + $0x58] sm:$0xff]   ;;  %v2401_v20 = vld [vmem:[%s2964_s0 + $0x24] sm:$0xff]  }
   0x7   :  { %2160 = vmatpush3.bf16.msra.mxu0 %v2384_v3  ;;  %2172 = vmatpush3.bf16.msra.mxu1 %v2385_v4  ;;  %v2399_v18 = vld [vmem:[%s2963_s1 + $0x78] sm:$0xff]   ;;  %v2402_v21 = vld [vmem:[%s2963_s1 + $0x80] sm:$0xff]   ;;  %v2404_v23 = vld [vmem:[%s2963_s1 + $0x88] sm:$0xff]  }
   0x8   :  { %2161 = vmatprep.subr.bf16.mxu0 %v2478_v0  ;;  %2173 = vmatprep.subr.bf16.mxu1 %v2478_v0  ;;  %v2400_v19 = vld [vmem:[%s2964_s0 + $0x18] sm:$0xff]   ;;  %v2403_v22 = vld [vmem:[%s2963_s1 + $0xa0] sm:$0xff]   ;;  %v2405_v24 = vld [vmem:[%s2963_s1 + $0xa8] sm:$0xff]  }
   0x9   :  { %v2406_v25 = vld [vmem:[%s2963_s1 + $0x90] sm:$0xff]   ;;  %v2408_v27 = vld [vmem:[%s2963_s1 + $0x98] sm:$0xff]   ;;  %v2412_v31 = vld [vmem:[%s2963_s1 + $0xc0] sm:$0xff]  }
   0xa   :  { %v2407_v26 = vld [vmem:[%s2963_s1 + $0xb0] sm:$0xff]   ;;  %v2409_v28 = vld [vmem:[%s2963_s1 + $0xb8] sm:$0xff]   ;;  %v2413_v32 = vld [vmem:[%s2963_s1 + $0xe0] sm:$0xff]  }
   0xb   :  { %2162 = vmatpush3.bf16.msra.mxu0 %v2386_v5  ;;  %2174 = vmatpush3.bf16.msra.mxu1 %v2387_v6  ;;  %v2410_v29 = vld [vmem:[%s2964_s0 + $0x30] sm:$0xff]   ;;  %v2411_v30 = vld [vmem:[%s2964_s0 + $0x3c] sm:$0xff]   ;;  %v2414_v33 = vld [vmem:[%s2963_s1 + $0xc8] sm:$0xff]  }
   0xc   :  { %2163 = vmatprep.subr.bf16.mxu0 %v2478_v0  ;;  %2175 = vmatprep.subr.bf16.mxu1 %v2478_v0  ;;  %v2415_v34 = vld [vmem:[%s2963_s1 + $0xe8] sm:$0xff]   ;;  %v2416_v35 = vld [vmem:[%s2963_s1 + $0xd0] sm:$0xff]   ;;  %v2420_v38 = vld [vmem:[%s2964_s0] sm:$0xfc]  }
   0xd   :  { %v2421_v36 = vld [vmem:[%s2964_s0 + $0x8] ss:$0 sps:$4 sm:$0x33]   ;;  %v2417_v37 = vld [vmem:[%s2963_s1 + $0xf0] sm:$0xff]   ;;  %v2418_v41 = vld [vmem:[%s2963_s1 + $0xd8] sm:$0xff]   ;;  %v593_v43 = vrot.slane %v2420_v38, 2 }
   0xe   :  { %v2423_v39 = vld [vmem:[%s2964_s0 + $0x14] ss:$0 sps:$4 sm:$0x33]   ;;  %v2422_v40 = vld [vmem:[%s2964_s0 + $0xc] sm:$0xfc]   ;;  %v2419_v42 = vld [vmem:[%s2963_s1 + $0xf8] sm:$0xff]  }
   0xf   :  { %2164 = vmatpush3.bf16.msra.mxu0 %v2388_v7  ;;  %2176 = vmatpush3.bf16.msra.mxu1 %v2389_v8  ;;  %v594_v44 = vrot.slane %v2421_v36, 2  ;;  %v690_v45 = vrot.slane %v2422_v40, 2  ;;  %v691_v46 = vrot.slane %v2423_v39, 2  ;;  %v2424_v48 = vld [vmem:[%s2963_s1 + $0x100] sm:$0xff]   ;;  %v2426_v51 = vld [vmem:[%s2963_s1 + $0x108] sm:$0xff]   ;;  %v2428_v54 = vld [vmem:[%s2963_s1 + $0x110] sm:$0xff]  }
  0x10   :  { %2181 = vmatprep.subr.bf16.mxu0 %v2478_v0  ;;  %2193 = vmatprep.subr.bf16.mxu1 %v2478_v0  ;;  %v2425_v50 = vld [vmem:[%s2963_s1] sm:$0xff]   ;;  %v2427_v52 = vld [vmem:[%s2963_s1 + $0x8] sm:$0xff]   ;;  %v2432_v55 = vld [vmem:[%s2964_s0 + $0x18] sm:$0xfc]  }
  0x11   :  { %v595_v47 = vsel %vm592_vm2, %v593_v43, %v594_v44  ;;  %v692_v49 = vsel %vm592_vm2, %v690_v45, %v691_v46  ;;  %v2433_v53 = vld [vmem:[%s2964_s0 + $0x20] ss:$0 sps:$4 sm:$0x33]   ;;  %v2429_v56 = vld [vmem:[%s2963_s1 + $0x10] sm:$0xff]   ;;  %v2430_v57 = vld [vmem:[%s2963_s1 + $0x118] sm:$0xff]   ;;  %v787_v58 = vrot.slane %v2432_v55, 2 }
  0x12   :  { %2166 = vmatmul.mubr.msk.bf16.vlgmr.msra.gmra.mrb[0].mxu0 %vm66_vm1, %v2390_v9  ;;  %2178 = vmatmul.mubr.msk.bf16.vlgmr.msra.gmra.mrb[0].mxu1 %vm66_vm1, %v2391_v10  ;;  %v788_v59 = vrot.slane %v2433_v53, 2  ;;  %v2431_v60 = vld [vmem:[%s2963_s1 + $0x18] sm:$0xff]   ;;  %v2434_v61 = vld [vmem:[%s2964_s0 + $0x48] sm:$0xff]   ;;  %v2435_v63 = vld [vmem:[%s2963_s1 + $0x20] sm:$0xff]  }
  0x13   :  { %2182 = vmatpush3.bf16.msra.mxu0 %v2392_v11  ;;  %2194 = vmatpush3.bf16.msra.mxu1 %v2393_v12  ;;  %v2436_v1 = vld [vmem:[%s2963_s1 + $0x40] sm:$0xff]   ;;  %v2437_v2 = vld [vmem:[%s2963_s1 + $0x28] sm:$0xff]   ;;  %v2439_v4 = vld [vmem:[%s2963_s1 + $0x30] sm:$0xff]  }
  0x14   :  { %2183 = vmatprep.subr.bf16.mxu0 %v2478_v0  ;;  %2195 = vmatprep.subr.bf16.mxu1 %v2478_v0  ;;  %v789_v62 = vsel %vm592_vm2, %v787_v58, %v788_v59  ;;  %v2438_v3 = vld [vmem:[%s2963_s1 + $0x48] sm:$0xff]   ;;  %v2440_v5 = vld [vmem:[%s2963_s1 + $0x50] sm:$0xff]   ;;  %v2441_v6 = vld [vmem:[%s2963_s1 + $0x38] sm:$0xff]  }
  0x15   :  { %2189 = vmatprep.mubr.msk.bf16.mxu0 %vm2479_vm0, %v2478_v0  ;;  %2201 = vmatprep.mubr.msk.bf16.mxu1 %vm2479_vm0, %v2478_v0  ;;  %v2442_v7 = vld [vmem:[%s2963_s1 + $0x58] sm:$0xff]   ;;  %v2444_v9 = vld [vmem:[%s2964_s0 + $0x60] sm:$0xff]   ;;  %v2447_v12 = vld [vmem:[%s2963_s1 + $0x68] sm:$0xff]  }
  0x16   :  { %v2443_v8 = vld [vmem:[%s2964_s0 + $0x54] sm:$0xff]   ;;  %v2445_v10 = vld [vmem:[%s2963_s1 + $0x60] sm:$0xff]   ;;  %v2468_v36 = vld [vmem:[%s2963_s1 + $0xe8] sm:$0xff]  }
  0x17   :  { %2184 = vmatpush3.bf16.msra.mxu0 %v2394_v13  ;;  %2196 = vmatpush3.bf16.msra.mxu1 %v2395_v14  ;;  %v2446_v11 = vld [vmem:[%s2963_s1 + $0x80] sm:$0xff]   ;;  %v2448_v13 = vld [vmem:[%s2963_s1 + $0x88] sm:$0xff]   ;;  %v2449_v14 = vld [vmem:[%s2963_s1 + $0x70] sm:$0xff]  }
  0x18   :  { %2185 = vmatprep.subr.bf16.mxu0 %v2478_v0  ;;  %2197 = vmatprep.subr.bf16.mxu1 %v2478_v0  ;;  %v2470_v38 = vld [vmem:[%s2963_s1 + $0xf0] sm:$0xff]   ;;  %v2475_v40 = vld [vmem:[%s2964_s0 + $0x5c] ss:$0 sps:$4 sm:$0x33]  }
  0x19   :  { %v2474_v39 = vld [vmem:[%s2964_s0 + $0x54] sm:$0xfc]   ;;  %v2477_v43 = vld [vmem:[%s2964_s0 + $0x68] ss:$0 sps:$4 sm:$0x33]   ;;  %v1566_v46 = vrot.slane %v2475_v40, 2 }
  0x1a   :  { %v2472_v44 = vld [vmem:[%s2963_s1 + $0xf8] sm:$0xff]   ;;  %v1565_v45 = vrot.slane %v2474_v39, 2  ;;  %v2937_v39 = vld [vmem:[%s2966_s2] ss:$0 sm:$0xff] }
  0x1b   :  { %2186 = vmatpush3.bf16.msra.mxu0 %v2396_v15  ;;  %2198 = vmatpush3.bf16.msra.mxu1 %v2397_v16  ;;  %v2450_v15 = vld [vmem:[%s2963_s1 + $0x90] sm:$0xff]   ;;  %v2451_v16 = vld [vmem:[%s2963_s1 + $0x78] sm:$0xff]  }
  0x1c   :  { %2187 = vmatprep.subr.bf16.mxu0 %v2478_v0  ;;  %2199 = vmatprep.subr.bf16.mxu1 %v2478_v0 }
  0x1f   :  { %2188 = vmatpush3.bf16.msra.mxu0 %v2398_v17  ;;  %2200 = vmatpush3.bf16.msra.mxu1 %v2399_v18  ;;  %v2452_v17 = vld [vmem:[%s2963_s1 + $0x98] sm:$0xff]   ;;  %v2453_v18 = vld [vmem:[%s2964_s0 + $0x6c] sm:$0xff]  }
  0x20   :  { %2205 = vmatprep.subr.bf16.mxu0 %v2478_v0  ;;  %2217 = vmatprep.subr.bf16.mxu1 %v2478_v0 }
  0x22   :  { %2190 = vmatmul.mubr.msk.bf16.vlgmr.msra.gmra.mrb[4].mxu0 %vm66_vm1, %v2400_v19  ;;  %2202 = vmatmul.mubr.msk.bf16.vlgmr.msra.gmra.mrb[4].mxu1 %vm66_vm1, %v2401_v20  ;;  %v2454_v19 = vld [vmem:[%s2964_s0 + $0x78] sm:$0xff]   ;;  %v2455_v20 = vld [vmem:[%s2963_s1 + $0xa0] sm:$0xff]  }
  0x23   :  { %2206 = vmatpush3.bf16.msra.mxu0 %v2402_v21  ;;  %2218 = vmatpush3.bf16.msra.mxu1 %v2403_v22  ;;  %v2456_v21 = vld [vmem:[%s2963_s1 + $0xc0] sm:$0xff]   ;;  %v2457_v22 = vld [vmem:[%s2963_s1 + $0xa8] sm:$0xff]  }
  0x24   :  { %2207 = vmatprep.subr.bf16.mxu0 %v2478_v0  ;;  %2219 = vmatprep.subr.bf16.mxu1 %v2478_v0 }
  0x25   :  { %2213 = vmatprep.mubr.msk.bf16.mxu0 %vm2479_vm0, %v2478_v0  ;;  %2225 = vmatprep.mubr.msk.bf16.mxu1 %vm2479_vm0, %v2478_v0 }
  0x27   :  { %2208 = vmatpush3.bf16.msra.mxu0 %v2404_v23  ;;  %2220 = vmatpush3.bf16.msra.mxu1 %v2405_v24  ;;  %v2458_v23 = vld [vmem:[%s2963_s1 + $0xc8] sm:$0xff]   ;;  %v2459_v24 = vld [vmem:[%s2963_s1 + $0xb0] sm:$0xff]  }
  0x28   :  { %2209 = vmatprep.subr.bf16.mxu0 %v2478_v0  ;;  %2221 = vmatprep.subr.bf16.mxu1 %v2478_v0 }
  0x2b   :  { %2210 = vmatpush3.bf16.msra.mxu0 %v2406_v25  ;;  %2222 = vmatpush3.bf16.msra.mxu1 %v2407_v26  ;;  %v2460_v25 = vld [vmem:[%s2963_s1 + $0xd0] sm:$0xff]   ;;  %v2464_v26 = vld [vmem:[%s2964_s0 + $0x48] sm:$0xfc]  }
  0x2c   :  { %2211 = vmatprep.subr.bf16.mxu0 %v2478_v0  ;;  %2223 = vmatprep.subr.bf16.mxu1 %v2478_v0 }
  0x2f   :  { %2212 = vmatpush3.bf16.msra.mxu0 %v2408_v27  ;;  %2224 = vmatpush3.bf16.msra.mxu1 %v2409_v28  ;;  %v2465_v27 = vld [vmem:[%s2964_s0 + $0x50] ss:$0 sps:$4 sm:$0x33]   ;;  %v2461_v28 = vld [vmem:[%s2963_s1 + $0xb8] sm:$0xff]  }
  0x30   :  { %2229 = vmatprep.subr.bf16.mxu0 %v2478_v0  ;;  %2241 = vmatprep.subr.bf16.mxu1 %v2478_v0 }
  0x32   :  { %2214 = vmatmul.mubr.msk.bf16.vlgmr.msra.gmra.mrb[8].mxu0 %vm66_vm1, %v2410_v29  ;;  %2226 = vmatmul.mubr.msk.bf16.vlgmr.msra.gmra.mrb[8].mxu1 %vm66_vm1, %v2411_v30  ;;  %v2462_v29 = vld [vmem:[%s2963_s1 + $0xd8] sm:$0xff]   ;;  %v1469_v30 = vrot.slane %v2464_v26, 2 }
  0x33   :  { %2230 = vmatpush3.bf16.msra.mxu0 %v2412_v31  ;;  %2242 = vmatpush3.bf16.msra.mxu1 %v2413_v32  ;;  %v1470_v31 = vrot.slane %v2465_v27, 2  ;;  %v2463_v32 = vld [vmem:[%s2964_s0 + $0x84] sm:$0xff]  }
  0x34   :  { %2231 = vmatprep.subr.bf16.mxu0 %v2478_v0  ;;  %2243 = vmatprep.subr.bf16.mxu1 %v2478_v0 }
  0x35   :  { %2237 = vmatprep.mubr.msk.bf16.mxu0 %vm2479_vm0, %v2478_v0  ;;  %2249 = vmatprep.mubr.msk.bf16.mxu1 %vm2479_vm0, %v2478_v0 }
  0x37   :  { %2232 = vmatpush3.bf16.msra.mxu0 %v2414_v33  ;;  %2244 = vmatpush3.bf16.msra.mxu1 %v2415_v34  ;;  %v2466_v33 = vld [vmem:[%s2963_s1 + $0xe0] sm:$0xff]   ;;  %v1471_v34 = vsel %vm592_vm2, %v1469_v30, %v1470_v31 }
  0x38   :  { %2233 = vmatprep.subr.bf16.mxu0 %v2478_v0  ;;  %2245 = vmatprep.subr.bf16.mxu1 %v2478_v0 }
  0x3b   :  { %2234 = vmatpush3.bf16.msra.mxu0 %v2416_v35  ;;  %2246 = vmatpush3.bf16.msra.mxu1 %v2417_v37  ;;  %v2467_v35 = vld [vmem:[%s2963_s1 + $0x100] sm:$0xff]   ;;  %v2469_v37 = vld [vmem:[%s2963_s1 + $0x108] sm:$0xff]  }
  0x3c   :  { %2235 = vmatprep.subr.bf16.mxu0 %v2478_v0  ;;  %2247 = vmatprep.subr.bf16.mxu1 %v2478_v0 }
  0x3f   :  { %2236 = vmatpush3.bf16.msra.mxu0 %v2418_v41  ;;  %2248 = vmatpush3.bf16.msra.mxu1 %v2419_v42  ;;  %v2471_v41 = vld [vmem:[%s2963_s1 + $0x110] sm:$0xff]   ;;  %v2476_v42 = vld [vmem:[%s2964_s0 + $0x60] sm:$0xfc]  }
  0x40   :  { %2253 = vmatprep.subr.bf16.mxu0 %v2478_v0  ;;  %2265 = vmatprep.subr.bf16.mxu1 %v2478_v0 }
  0x42   :  { %2238 = vmatmul.mubr.msk.bf16.vlgmr.msra.gmra.mrb[12].mxu0 %vm66_vm1, %v595_v47  ;;  %2250 = vmatmul.mubr.msk.bf16.vlgmr.msra.gmra.mrb[12].mxu1 %vm66_vm1, %v692_v49  ;;  %v2473_v47 = vld [vmem:[%s2963_s1 + $0x118] sm:$0xff]   ;;  %v1662_v49 = vrot.slane %v2477_v43, 2 }
  0x43   :  { %2254 = vmatpush3.bf16.msra.mxu0 %v2424_v48  ;;  %2266 = vmatpush3.bf16.msra.mxu1 %v2425_v50  ;;  %v1661_v48 = vrot.slane %v2476_v42, 2  ;;  %v1567_v50 = vsel %vm592_vm2, %v1565_v45, %v1566_v46 }
  0x44   :  { %2255 = vmatprep.subr.bf16.mxu0 %v2478_v0  ;;  %2267 = vmatprep.subr.bf16.mxu1 %v2478_v0 }
  0x45   :  { %2261 = vmatprep.mubr.msk.bf16.mxu0 %vm2479_vm0, %v2478_v0  ;;  %2273 = vmatprep.mubr.msk.bf16.mxu1 %vm2479_vm0, %v2478_v0 }
  0x47   :  { %2256 = vmatpush3.bf16.msra.mxu0 %v2426_v51  ;;  %2268 = vmatpush3.bf16.msra.mxu1 %v2427_v52  ;;  %v1663_v51 = vsel %vm592_vm2, %v1661_v48, %v1662_v49 }
  0x48   :  { %2257 = vmatprep.subr.bf16.mxu0 %v2478_v0  ;;  %2269 = vmatprep.subr.bf16.mxu1 %v2478_v0 }
  0x4b   :  { %2258 = vmatpush3.bf16.msra.mxu0 %v2428_v54  ;;  %2270 = vmatpush3.bf16.msra.mxu1 %v2429_v56 }
  0x4c   :  { %2259 = vmatprep.subr.bf16.mxu0 %v2478_v0  ;;  %2271 = vmatprep.subr.bf16.mxu1 %v2478_v0 }
  0x4f   :  { %2260 = vmatpush3.bf16.msra.mxu0 %v2430_v57  ;;  %2272 = vmatpush3.bf16.msra.mxu1 %v2431_v60 }
  0x50   :  { %2277 = vmatprep.subr.bf16.mxu0 %v2478_v0  ;;  %2289 = vmatprep.subr.bf16.mxu1 %v2478_v0 }
  0x52   :  { %2262 = vmatmul.mubr.msk.bf16.vlgmr.msra.gmra.mrb[16].mxu0 %vm66_vm1, %v789_v62  ;;  %2274 = vmatmul.mubr.msk.bf16.vlgmr.msra.gmra.mrb[16].mxu1 %vm66_vm1, %v2434_v61 }
  0x53   :  { %2278 = vmatpush3.bf16.msra.mxu0 %v2435_v63  ;;  %2290 = vmatpush3.bf16.msra.mxu1 %v2436_v1 }
  0x54   :  { %2279 = vmatprep.subr.bf16.mxu0 %v2478_v0  ;;  %2291 = vmatprep.subr.bf16.mxu1 %v2478_v0 }
  0x55   :  { %2285 = vmatprep.mubr.msk.bf16.mxu0 %vm2479_vm0, %v2478_v0  ;;  %2297 = vmatprep.mubr.msk.bf16.mxu1 %vm2479_vm0, %v2478_v0 }
  0x57   :  { %2280 = vmatpush3.bf16.msra.mxu0 %v2437_v2  ;;  %2292 = vmatpush3.bf16.msra.mxu1 %v2438_v3  ;;  %v2480_v2 = vmov 0   ;;  %v10_v3 = vstv %s2965_s4 }
  0x58   :  { %2281 = vmatprep.subr.bf16.mxu0 %v2478_v0  ;;  %2293 = vmatprep.subr.bf16.mxu1 %v2478_v0  ;;  %11 = vst [vmem:[#allocation3] sm:$0x1] %v10_v3 }
  0x59   :  { %2380 = vset.pattern.permute.xlu1 %v2480_v2  ;;  %2381 = vset.pattern.permute.xlu0 %v2480_v2 }
  0x5b   :  { %2282 = vmatpush3.bf16.msra.mxu0 %v2439_v4  ;;  %2294 = vmatpush3.bf16.msra.mxu1 %v2440_v5 }
  0x5c   :  { %2283 = vmatprep.subr.bf16.mxu0 %v2478_v0  ;;  %2295 = vmatprep.subr.bf16.mxu1 %v2478_v0 }
  0x5f   :  { %2284 = vmatpush3.bf16.msra.mxu0 %v2441_v6  ;;  %2296 = vmatpush3.bf16.msra.mxu1 %v2442_v7 }
  0x60   :  { %2301 = vmatprep.subr.bf16.mxu0 %v2478_v0  ;;  %2313 = vmatprep.subr.bf16.mxu1 %v2478_v0 }
  0x62   :  { %2286 = vmatmul.mubr.msk.bf16.vlgmr.msra.gmra.mrb[20].mxu0 %vm66_vm1, %v2443_v8  ;;  %2298 = vmatmul.mubr.msk.bf16.vlgmr.msra.gmra.mrb[20].mxu1 %vm66_vm1, %v2444_v9 }
  0x63   :  { %2302 = vmatpush3.bf16.msra.mxu0 %v2445_v10  ;;  %2314 = vmatpush3.bf16.msra.mxu1 %v2446_v11 }
  0x64   :  { %2303 = vmatprep.subr.bf16.mxu0 %v2478_v0  ;;  %2315 = vmatprep.subr.bf16.mxu1 %v2478_v0 }
  0x65   :  { %2309 = vmatprep.mubr.msk.bf16.mxu0 %vm2479_vm0, %v2478_v0  ;;  %2321 = vmatprep.mubr.msk.bf16.mxu1 %vm2479_vm0, %v2478_v0 }
  0x67   :  { %2304 = vmatpush3.bf16.msra.mxu0 %v2447_v12  ;;  %2316 = vmatpush3.bf16.msra.mxu1 %v2448_v13  ;;  %v894_v12 = vld [vmem:[#allocation3] sm:$0x1] }
  0x68   :  { %2305 = vmatprep.subr.bf16.mxu0 %v2478_v0  ;;  %2317 = vmatprep.subr.bf16.mxu1 %v2478_v0  ;;  %v1768_v13 = vld [vmem:[#allocation3] sm:$0x1] }
  0x69   :  { %897 = vperm.xlu1 %2380, %v894_v12  }
  0x6b   :  { %2306 = vmatpush3.bf16.msra.mxu0 %v2449_v14  ;;  %2318 = vmatpush3.bf16.msra.mxu1 %v2450_v15 }
  0x6c   :  { %2307 = vmatprep.subr.bf16.mxu0 %v2478_v0  ;;  %2319 = vmatprep.subr.bf16.mxu1 %v2478_v0 }
  0x6d   :  { %1771 = vperm.xlu1 %2380, %v1768_v13  }
  0x6f   :  { %2308 = vmatpush3.bf16.msra.mxu0 %v2451_v16  ;;  %2320 = vmatpush3.bf16.msra.mxu1 %v2452_v17 }
  0x70   :  { %2325 = vmatprep.subr.bf16.mxu0 %v2478_v0  ;;  %2337 = vmatprep.subr.bf16.mxu1 %v2478_v0 }
  0x72   :  { %2310 = vmatmul.mubr.msk.bf16.vlgmr.msra.gmra.mrb[24].mxu0 %vm66_vm1, %v2453_v18  ;;  %2322 = vmatmul.mubr.msk.bf16.vlgmr.msra.gmra.mrb[24].mxu1 %vm66_vm1, %v2454_v19 }
  0x73   :  { %2326 = vmatpush3.bf16.msra.mxu0 %v2455_v20  ;;  %2338 = vmatpush3.bf16.msra.mxu1 %v2456_v21 }
  0x74   :  { %2327 = vmatprep.subr.bf16.mxu0 %v2478_v0  ;;  %2339 = vmatprep.subr.bf16.mxu1 %v2478_v0 }
  0x75   :  { %2333 = vmatprep.mubr.msk.bf16.mxu0 %vm2479_vm0, %v2478_v0  ;;  %2345 = vmatprep.mubr.msk.bf16.mxu1 %vm2479_vm0, %v2478_v0 }
  0x77   :  { %2328 = vmatpush3.bf16.msra.mxu0 %v2457_v22  ;;  %2340 = vmatpush3.bf16.msra.mxu1 %v2458_v23 }
  0x78   :  { %2329 = vmatprep.subr.bf16.mxu0 %v2478_v0  ;;  %2341 = vmatprep.subr.bf16.mxu1 %v2478_v0 }
  0x7b   :  { %2330 = vmatpush3.bf16.msra.mxu0 %v2459_v24  ;;  %2342 = vmatpush3.bf16.msra.mxu1 %v2460_v25 }
  0x7c   :  { %2331 = vmatprep.subr.bf16.mxu0 %v2478_v0  ;;  %2343 = vmatprep.subr.bf16.mxu1 %v2478_v0 }
  0x7f   :  { %2332 = vmatpush3.bf16.msra.mxu0 %v2461_v28  ;;  %2344 = vmatpush3.bf16.msra.mxu1 %v2462_v29 }
  0x80   :  { %2349 = vmatprep.subr.bf16.mxu0 %v2478_v0  ;;  %2361 = vmatprep.subr.bf16.mxu1 %v2478_v0 }
  0x82   :  { %2334 = vmatmul.mubr.msk.bf16.vlgmr.msra.gmra.mrb[28].mxu0 %vm66_vm1, %v2463_v32  ;;  %2346 = vmatmul.mubr.msk.bf16.vlgmr.msra.gmra.mrb[28].mxu1 %vm66_vm1, %v1471_v34 }
  0x83   :  { %2350 = vmatpush3.bf16.msra.mxu0 %v2466_v33  ;;  %2362 = vmatpush3.bf16.msra.mxu1 %v2467_v35 }
  0x84   :  { %2351 = vmatprep.subr.bf16.mxu0 %v2478_v0  ;;  %2363 = vmatprep.subr.bf16.mxu1 %v2478_v0 }
  0x85   :  { %2357 = vmatprep.mubr.msk.bf16.mxu0 %vm2479_vm0, %v2478_v0  ;;  %2369 = vmatprep.mubr.msk.bf16.mxu1 %vm2479_vm0, %v2478_v0 }
  0x87   :  { %2352 = vmatpush3.bf16.msra.mxu0 %v2468_v36  ;;  %2364 = vmatpush3.bf16.msra.mxu1 %v2469_v37 }
  0x88   :  { %2353 = vmatprep.subr.bf16.mxu0 %v2478_v0  ;;  %2365 = vmatprep.subr.bf16.mxu1 %v2478_v0 }
  0x8b   :  { %2354 = vmatpush3.bf16.msra.mxu0 %v2470_v38  ;;  %2366 = vmatpush3.bf16.msra.mxu1 %v2471_v41 }
  0x8c   :  { %2355 = vmatprep.subr.bf16.mxu0 %v2478_v0  ;;  %2367 = vmatprep.subr.bf16.mxu1 %v2478_v0 }
  0x8f   :  { %2356 = vmatpush3.bf16.msra.mxu0 %v2472_v44  ;;  %2368 = vmatpush3.bf16.msra.mxu1 %v2473_v47 }
  0x92   :  { %2358 = vmatmul.mubr.msk.bf16.vlgmr.msra.gmra.mrb[32].mxu0 %vm66_vm1, %v1567_v50  ;;  %2370 = vmatmul.mubr.msk.bf16.vlgmr.msra.gmra.mrb[32].mxu1 %vm66_vm1, %v1663_v51 }
  0xe5   :  { %v104_v52 = vpop.f32.mrb[0].mxu0  ;;  %v195_v53 = vpop.f32.mrb[0].mxu1 }
  0xe6   :  { %v2167_v54 = vpop.f32.mrb[1].mxu0  ;;  %v202_v55 = vadd.f32 %v195_v53, %v104_v52  ;;  %v2179_v56 = vpop.f32.mrb[1].mxu1 }
  0xe7   :  { %v107_v57 = vpop.f32.mrb[2].mxu0  ;;  %v198_v58 = vpop.f32.mrb[2].mxu1  ;;  %v2944_v54 = vld [vmem:[%s2967_s3] sm:$0xff] }
  0xe8   :  { %v2168_v59 = vpop.f32.mrb[3].mxu0  ;;  %v203_v60 = vadd.f32 %v198_v58, %v107_v57  ;;  %v2180_v0 = vpop.f32.mrb[3].mxu1 }
  0xf5   :  { %v286_v61 = vpop.f32.mrb[4].mxu0  ;;  %v377_v63 = vpop.f32.mrb[4].mxu1 }
  0xf6   :  { %v293_v62 = vadd.f32 %v286_v61, %v202_v55  ;;  %v2191_v1 = vpop.f32.mrb[5].mxu0  ;;  %v2203_v4 = vpop.f32.mrb[5].mxu1  ;;  %v2949_v55 = vld [vmem:[%s2967_s3 + $0x8] sm:$0xff] }
  0xf7   :  { %v289_v5 = vpop.f32.mrb[6].mxu0  ;;  %v380_v8 = vpop.f32.mrb[6].mxu1 }
  0xf8   :  { %v384_v6 = vadd.f32 %v377_v63, %v293_v62  ;;  %v294_v7 = vadd.f32 %v289_v5, %v203_v60  ;;  %v2192_v9 = vpop.f32.mrb[7].mxu0  ;;  %v2204_v10 = vpop.f32.mrb[7].mxu1 }
  0xfa   :  { %v385_v11 = vadd.f32 %v380_v8, %v294_v7 }
 0x105   :  { %v468_v14 = vpop.f32.mrb[8].mxu0  ;;  %v559_v16 = vpop.f32.mrb[8].mxu1 }
 0x106   :  { %v475_v15 = vadd.f32 %v468_v14, %v384_v6  ;;  %v2215_v17 = vpop.f32.mrb[9].mxu0  ;;  %v2227_v18 = vpop.f32.mrb[9].mxu1 }
 0x107   :  { %v471_v19 = vpop.f32.mrb[10].mxu0  ;;  %v562_v22 = vpop.f32.mrb[10].mxu1 }
 0x108   :  { %v566_v20 = vadd.f32 %v559_v16, %v475_v15  ;;  %v476_v21 = vadd.f32 %v471_v19, %v385_v11  ;;  %v2216_v23 = vpop.f32.mrb[11].mxu0  ;;  %v2228_v24 = vpop.f32.mrb[11].mxu1 }
 0x10a   :  { %v567_v25 = vadd.f32 %v562_v22, %v476_v21 }
 0x115   :  { %v657_v26 = vpop.f32.mrb[12].mxu0  ;;  %v754_v28 = vpop.f32.mrb[12].mxu1 }
 0x116   :  { %v664_v27 = vadd.f32 %v657_v26, %v566_v20  ;;  %v2239_v29 = vpop.f32.mrb[13].mxu0  ;;  %v2251_v30 = vpop.f32.mrb[13].mxu1 }
 0x117   :  { %v660_v31 = vpop.f32.mrb[14].mxu0  ;;  %v757_v34 = vpop.f32.mrb[14].mxu1 }
 0x118   :  { %v761_v32 = vadd.f32 %v754_v28, %v664_v27  ;;  %v665_v33 = vadd.f32 %v660_v31, %v567_v25  ;;  %v2240_v35 = vpop.f32.mrb[15].mxu0  ;;  %v2252_v36 = vpop.f32.mrb[15].mxu1 }
 0x11a   :  { %v762_v37 = vadd.f32 %v757_v34, %v665_v33 }
 0x125   :  { %v851_v38 = vpop.f32.mrb[16].mxu0  ;;  %v987_v41 = vpop.f32.mrb[16].mxu1 }
 0x126   :  { %v858_v40 = vadd.f32 %v851_v38, %v761_v32  ;;  %v2263_v42 = vpop.f32.mrb[17].mxu0  ;;  %v2275_v43 = vpop.f32.mrb[17].mxu1 }
 0x127   :  { %v854_v44 = vpop.f32.mrb[18].mxu0  ;;  %v990_v47 = vpop.f32.mrb[18].mxu1 }
 0x128   :  { %v871_v45 = vadd.f32 %v2937_v39, %v858_v40  ;;  %v859_v46 = vadd.f32 %v854_v44, %v762_v37  ;;  %v2264_v48 = vpop.f32.mrb[19].mxu0  ;;  %v2276_v49 = vpop.f32.mrb[19].mxu1 }
 0x12a   :  { %v875_v50 = vmul.f32 0.01, %v871_v45  ;;  %v872_v51 = vadd.f32 %v2937_v39, %v859_v46  ;;  %vm873_vm3 = vcmp.ge.f32.partialorder %v871_v45, 0.0 }
 0x12c   :  { %v876_v52 = vmul.f32 0.01, %v872_v51  ;;  %vm874_vm4 = vcmp.ge.f32.partialorder %v872_v51, 0.0  ;;  %v877_v53 = vsel %vm873_vm3, %v871_v45, %v875_v50 }
 0x12d   :  { %v881_v57 = vmul.f32 %v2944_v54, %v877_v53 }
 0x12e   :  { %v878_v56 = vsel %vm874_vm4, %v872_v51, %v876_v52 }
 0x12f   :  { %v882_v58 = vmul.f32 %v2949_v55, %v878_v56 }
 0x131   :  { %v883_v59 = vadd.f32 %v882_v58, %v881_v57 }
 0x133   :  { %884 = vadd.xlane.f32.xlu0 %v883_v59 }
 0x135   :  { %v1077_v60 = vpop.f32.mrb[20].mxu0  ;;  %v1167_v61 = vpop.f32.mrb[20].mxu1 }
 0x136   :  { %v1084_v0 = vadd.f32 %v1077_v60, %v987_v41  ;;  %v2287_v62 = vpop.f32.mrb[21].mxu0  ;;  %v2299_v63 = vpop.f32.mrb[21].mxu1 }
 0x137   :  { %v1080_v1 = vpop.f32.mrb[22].mxu0  ;;  %v1170_v4 = vpop.f32.mrb[22].mxu1 }
 0x138   :  { %v1174_v2 = vadd.f32 %v1167_v61, %v1084_v0  ;;  %v1085_v3 = vadd.f32 %v1080_v1, %v990_v47  ;;  %v2288_v5 = vpop.f32.mrb[23].mxu0  ;;  %v2300_v6 = vpop.f32.mrb[23].mxu1 }
 0x139   :  { %v898_v1 = vpop.permute.xlu1 %897 }
 0x13a   :  { %v1175_v7 = vadd.f32 %v1170_v4, %v1085_v3 }
 0x145   :  { %v1257_v8 = vpop.f32.mrb[24].mxu0  ;;  %v1347_v10 = vpop.f32.mrb[24].mxu1 }
 0x146   :  { %v1264_v9 = vadd.f32 %v1257_v8, %v1174_v2  ;;  %v2311_v11 = vpop.f32.mrb[25].mxu0  ;;  %v2323_v12 = vpop.f32.mrb[25].mxu1 }
 0x147   :  { %v1260_v13 = vpop.f32.mrb[26].mxu0  ;;  %v1350_v16 = vpop.f32.mrb[26].mxu1 }
 0x148   :  { %v1354_v14 = vadd.f32 %v1347_v10, %v1264_v9  ;;  %v1265_v15 = vadd.f32 %v1260_v13, %v1175_v7  ;;  %v2312_v17 = vpop.f32.mrb[27].mxu0  ;;  %v2324_v18 = vpop.f32.mrb[27].mxu1 }
 0x149   :  { %v1772_v10 = vpop.permute.xlu1 %1771 }
 0x14a   :  { %v1355_v19 = vadd.f32 %v1350_v16, %v1265_v15 }
 0x155   :  { %v1437_v20 = vpop.f32.mrb[28].mxu0  ;;  %v1533_v22 = vpop.f32.mrb[28].mxu1 }
 0x156   :  { %v1444_v21 = vadd.f32 %v1437_v20, %v1354_v14  ;;  %v2335_v23 = vpop.f32.mrb[29].mxu0  ;;  %v2347_v24 = vpop.f32.mrb[29].mxu1 }
 0x157   :  { %v1440_v25 = vpop.f32.mrb[30].mxu0  ;;  %v1536_v28 = vpop.f32.mrb[30].mxu1 }
 0x158   :  { %v1540_v26 = vadd.f32 %v1533_v22, %v1444_v21  ;;  %v1445_v27 = vadd.f32 %v1440_v25, %v1355_v19  ;;  %v2336_v29 = vpop.f32.mrb[31].mxu0  ;;  %v2348_v30 = vpop.f32.mrb[31].mxu1 }
 0x15a   :  { %v1541_v31 = vadd.f32 %v1536_v28, %v1445_v27 }
 0x165   :  { %v1629_v32 = vpop.f32.mrb[32].mxu0  ;;  %v1725_v34 = vpop.f32.mrb[32].mxu1 }
 0x166   :  { %v1636_v33 = vadd.f32 %v1629_v32, %v1540_v26  ;;  %v2359_v35 = vpop.f32.mrb[33].mxu0  ;;  %v2371_v36 = vpop.f32.mrb[33].mxu1 }
 0x167   :  { %v1632_v37 = vpop.f32.mrb[34].mxu0  ;;  %v1728_v41 = vpop.f32.mrb[34].mxu1 }
 0x168   :  { %v1732_v38 = vadd.f32 %v1725_v34, %v1636_v33  ;;  %v1637_v40 = vadd.f32 %v1632_v37, %v1541_v31  ;;  %v2360_v42 = vpop.f32.mrb[35].mxu0  ;;  %v2372_v43 = vpop.f32.mrb[35].mxu1 }
 0x16a   :  { %v1745_v44 = vadd.f32 %v2937_v39, %v1732_v38  ;;  %v1733_v45 = vadd.f32 %v1728_v41, %v1637_v40 }
 0x16c   :  { %v1749_v46 = vmul.f32 0.01, %v1745_v44  ;;  %v1746_v47 = vadd.f32 %v2937_v39, %v1733_v45  ;;  %vm1747_vm5 = vcmp.ge.f32.partialorder %v1745_v44, 0.0  ;;  %v900_v39 = vlaneseq }
 0x16e   :  { %v1750_v48 = vmul.f32 0.01, %v1746_v47  ;;  %vm1748_vm6 = vcmp.ge.f32.partialorder %v1746_v47, 0.0  ;;  %v1751_v49 = vsel %vm1747_vm5, %v1745_v44, %v1749_v46  ;;  %v901_v62 = vshrl.u32 %v900_v39, 7 }
 0x16f   :  { %v1755_v51 = vmul.f32 %v1751_v49, %v2944_v54 }
 0x170   :  { %v1752_v50 = vsel %vm1748_vm6, %v1746_v47, %v1750_v48  ;;  %v902_v63 = vsub.s32 0, %v901_v62 }
 0x171   :  { %v1756_v52 = vmul.f32 %v1752_v50, %v2949_v55 }
 0x172   :  { %v903_v2 = vrot.slane %v898_v1, %v902_v63  ;;  %v1777_v11 = vrot.slane %v1772_v10, %v902_v63 }
 0x173   :  { %v1757_v53 = vadd.f32 %v1756_v52, %v1755_v51 }
 0x175   :  { %1758 = vadd.xlane.f32.xlu0 %v1757_v53 }
 0x1c0   :  { %v885_v56 = vpop.xlane.xlu0 %884 }
 0x1c1   :  { %v886_v57 = vrot.slane %v885_v56, 4 }
 0x1c3   :  { %v887_v58 = vadd.f32 %v886_v57, %v885_v56 }
 0x1c5   :  { %v888_v59 = vrot.slane %v887_v58, 2 }
 0x1c7   :  { %v889_v60 = vadd.f32 %v888_v59, %v887_v58 }
 0x1c9   :  { %v890_v0 = vrot.slane %v889_v60, 1 }
 0x1cb   :  { %v891_v61 = vadd.f32 %v890_v0, %v889_v60 }
 0x1cd   :  { %2373 = vpush %v891_v61 }
 0x1fe   :  { %s2374_s3 = spop %2373 }
 0x1ff   :  { %v893_v3 = vstv %s2374_s3 }
 0x200   :  { %v904_v54 = vadd.f32 %v903_v2, %v893_v3 }
 0x202   :  { %905 = vst [vmem:[%s2968_s5] sm:$0x1] %v904_v54  ;;  %v1759_v55 = vpop.xlane.xlu0 %1758 }
 0x203   :  { %v1760_v4 = vrot.slane %v1759_v55, 4 }
 0x205   :  { %v1761_v5 = vadd.f32 %v1760_v4, %v1759_v55 }
 0x207   :  { %v1762_v6 = vrot.slane %v1761_v5, 2 }
 0x209   :  { %v1763_v7 = vadd.f32 %v1762_v6, %v1761_v5 }
 0x20b   :  { %v1764_v8 = vrot.slane %v1763_v7, 1 }
 0x20d   :  { %v1765_v9 = vadd.f32 %v1764_v8, %v1763_v7 }
 0x20f   :  { %2375 = vpush %v1765_v9 }
 0x240   :  { %s2376_s16 = spop %2375 }
 0x241   :  { %v1767_v12 = vstv %s2376_s16 }
 0x242   :  { %v1778_v13 = vadd.f32 %v1777_v11, %v1767_v12 }
 0x244   :  { %2066 = vst [vmem:[%s2968_s5 + $0x1] sm:$0x1] %v1778_v13 }

// kernel: discriminator_forward.3
= control target key start
LH: loop header
LB: loop body
LE: loop exit
PB: predicated region body
PF: predicated region fallthrough
CT: control target
= control target key end

     0   :  { %vm241_vm0 = vcmask 1040384   ;;  %vm242_vm1 = vcmask 1041408   ;;  %vm192_vm2 = vcmask 23552   ;;  %v11516_v1 = vmov 65535   ;;  %s12985_s1 = inlined_call_operand.vmem [shape: bf16[9,3,128], index: 1, kind: input, shape index: {}]   ;;  %s12986_s0 = inlined_call_operand.vmem [shape: bf16[2,6,272,3], index: 0, kind: input, shape index: {}]   ;;  %s12987_s2 = inlined_call_operand.vmem [shape: f32[1,128], index: 2, kind: input, shape index: {}]   ;;  %s12988_s3 = inlined_call_operand.vmem [shape: bf16[2,256,128], index: 3, kind: output, shape index: {}]  }
   0x1   :  { %v111_v0 = vld [vmem:[%s12985_s1] sm:$0x3]  ;;  %v243_v2 = vsel %vm241_vm0, 4294967295, %v11516_v1  ;;  %v11229_v6 = vld [vmem:[%s12986_s0 + $0x330] sm:$0xff]   ;;  %v11230_v9 = vld [vmem:[%s12986_s0 + $0x8] sm:$0xff]  }
   0x2   :  { %v4278_v3 = vld [vmem:[%s12985_s1] sm:$0x3]  ;;  %v11546_v5 = vsel %vm242_vm1, %v243_v2, 0  ;;  %10411 = vmatprep.mubr.msk.bf16.mxu1 %vm192_vm2, %v11229_v6  ;;  %v8404_v10 = vld [vmem:[%s12985_s1 + $0x2] sm:$0x3]  ;;  %v11231_v12 = vld [vmem:[%s12986_s0 + $0x338] sm:$0xff]  }
   0x3   :  { %v11228_v4 = vld [vmem:[%s12986_s0] sm:$0xff]   ;;  %v246_v7 = vand.u32 %v11546_v5, %v111_v0  ;;  %v4408_v8 = vand.u32 %v4278_v3, %v11546_v5  ;;  %v669_v11 = vand.u32 %v8404_v10, %v11546_v5  ;;  %v11232_v15 = vld [vmem:[%s12986_s0 + $0x10] sm:$0xff]   ;;  %v11234_v17 = vld [vmem:[%s12986_s0 + $0x18] sm:$0xff]  }
   0x4   :  { %10105 = vmatprep.mubr.msk.bf16.mxu0 %vm192_vm2, %v11228_v4  ;;  %v8989_v13 = vld [vmem:[%s12985_s1 + $0x2] sm:$0x3]  ;;  %v11235_v18 = vld [vmem:[%s12986_s0 + $0x348] sm:$0xff]   ;;  %v11237_v20 = vld [vmem:[%s12986_s0 + $0x350] sm:$0xff]  }
   0x5   :  { %10103 = vmatprep.subr.bf16.mxu0 %v246_v7  ;;  %10409 = vmatprep.subr.bf16.mxu1 %v4408_v8  ;;  %v4830_v14 = vand.u32 %v8989_v13, %v11546_v5  ;;  %v11233_v16 = vld [vmem:[%s12986_s0 + $0x340] sm:$0xff]   ;;  %v11238_v21 = vld [vmem:[%s12986_s0 + $0x28] sm:$0xff]   ;;  %v11239_v22 = vld [vmem:[%s12986_s0 + $0x358] sm:$0xff]  }
   0x6   :  { %10104 = vmatpush3.bf16.msra.mxu0 %v246_v7  ;;  %10410 = vmatpush3.bf16.msra.mxu1 %v4408_v8  ;;  %v11236_v19 = vld [vmem:[%s12986_s0 + $0x20] sm:$0xff]   ;;  %v11240_v23 = vld [vmem:[%s12986_s0 + $0x30] sm:$0xff]   ;;  %v11242_v25 = vld [vmem:[%s12986_s0 + $0x38] sm:$0xff]  }
   0x7   :  { %10137 = vmatprep.subr.bf16.mxu0 %v669_v11  ;;  %10443 = vmatprep.subr.bf16.mxu1 %v4830_v14  ;;  %v11241_v24 = vld [vmem:[%s12986_s0 + $0x360] sm:$0xff]   ;;  %v11243_v26 = vld [vmem:[%s12986_s0 + $0x368] sm:$0xff]   ;;  %v11245_v28 = vld [vmem:[%s12986_s0 + $0x370] sm:$0xff]  }
   0x8   :  { %v11244_v27 = vld [vmem:[%s12986_s0 + $0x40] sm:$0xff]   ;;  %v11246_v29 = vld [vmem:[%s12986_s0 + $0x48] sm:$0xff]   ;;  %v11247_v30 = vld [vmem:[%s12986_s0 + $0x378] sm:$0xff]  }
   0x9   :  { %10106 = vmatmul.mubr.msk.bf16.vlgmr.msra.gmra.mrb[0].mxu0 %vm192_vm2, %v11230_v9  ;;  %10412 = vmatmul.mubr.msk.bf16.vlgmr.msra.gmra.mrb[0].mxu1 %vm192_vm2, %v11231_v12  ;;  %v11248_v31 = vld [vmem:[%s12986_s0 + $0x50] sm:$0xff]   ;;  %v8469_v32 = vld [vmem:[%s12985_s1 + $0x4] sm:$0x3]  ;;  %v11250_v37 = vld [vmem:[%s12986_s0 + $0x58] sm:$0xff]  }
   0xa   :  { %10138 = vmatpush3.bf16.msra.mxu0 %v669_v11  ;;  %10444 = vmatpush3.bf16.msra.mxu1 %v4830_v14  ;;  %v11249_v33 = vld [vmem:[%s12986_s0 + $0x380] sm:$0xff]   ;;  %v1092_v34 = vand.u32 %v8469_v32, %v11546_v5  ;;  %v11251_v38 = vld [vmem:[%s12986_s0 + $0x388] sm:$0xff]   ;;  %v11253_v40 = vld [vmem:[%s12986_s0 + $0x390] sm:$0xff]  }
   0xb   :  { %10109 = vmatprep.mubr.msk.bf16.mxu0 %vm192_vm2, %v11232_v15  ;;  %10415 = vmatprep.mubr.msk.bf16.mxu1 %vm192_vm2, %v11233_v16  ;;  %v9054_v35 = vld [vmem:[%s12985_s1 + $0x4] sm:$0x3]  ;;  %v11254_v41 = vld [vmem:[%s12986_s0 + $0x68] sm:$0xff]   ;;  %v11255_v42 = vld [vmem:[%s12986_s0 + $0x398] sm:$0xff]  }
   0xc   :  { %v5252_v36 = vand.u32 %v9054_v35, %v11546_v5  ;;  %10171 = vmatprep.subr.bf16.mxu0 %v1092_v34  ;;  %v11252_v39 = vld [vmem:[%s12986_s0 + $0x60] sm:$0xff]   ;;  %v11256_v43 = vld [vmem:[%s12986_s0 + $0x70] sm:$0xff]   ;;  %v11258_v45 = vld [vmem:[%s12986_s0 + $0x78] sm:$0xff]  }
   0xd   :  { %v11257_v44 = vld [vmem:[%s12986_s0 + $0x3a0] sm:$0xff]   ;;  %v11259_v46 = vld [vmem:[%s12986_s0 + $0x3a8] sm:$0xff]   ;;  %v11261_v48 = vld [vmem:[%s12986_s0 + $0x3b8] sm:$0xff]  }
   0xe   :  { %10477 = vmatprep.subr.bf16.mxu1 %v5252_v36  ;;  %v11260_v47 = vld [vmem:[%s12986_s0 + $0x88] sm:$0xff]   ;;  %v11262_v49 = vld [vmem:[%s12986_s0 + $0x90] sm:$0xff]   ;;  %v11263_v50 = vld [vmem:[%s12986_s0 + $0x3c0] sm:$0xff]  }
   0xf   :  { %v11264_v51 = vld [vmem:[%s12986_s0 + $0x98] sm:$0xff]   ;;  %v8534_v52 = vld [vmem:[%s12985_s1 + $0x6] sm:$0x3]  ;;  %v11265_v53 = vld [vmem:[%s12986_s0 + $0x3c8] sm:$0xff]  }
  0x10   :  { %v9119_v54 = vld [vmem:[%s12985_s1 + $0x6] sm:$0x3]  ;;  %v11718_v55 = vand.u32 %v8534_v52, %v11546_v5  ;;  %v11267_v58 = vld [vmem:[%s12986_s0 + $0x3d0] sm:$0xff]   ;;  %v11268_v59 = vld [vmem:[%s12986_s0 + $0xa8] sm:$0xff]  }
  0x11   :  { %10110 = vmatmul.mubr.msk.bf16.gmra.mrb[4].mxu0 %vm192_vm2, %v11234_v17  ;;  %10416 = vmatmul.mubr.msk.bf16.gmra.mrb[4].mxu1 %vm192_vm2, %v11235_v18  ;;  %v11721_v56 = vand.u32 %v9119_v54, %v11546_v5  ;;  %v11266_v57 = vld [vmem:[%s12986_s0 + $0xa0] sm:$0xff]   ;;  %v11269_v60 = vld [vmem:[%s12986_s0 + $0x3d8] sm:$0xff]   ;;  %v11270_v61 = vld [vmem:[%s12986_s0 + $0xb0] sm:$0xff]  }
  0x12   :  { %10113 = vmatprep.mubr.msk.bf16.mxu0 %vm192_vm2, %v11236_v19  ;;  %10419 = vmatprep.mubr.msk.bf16.mxu1 %vm192_vm2, %v11237_v20  ;;  %v11271_v62 = vld [vmem:[%s12986_s0 + $0x3e0] sm:$0xff]   ;;  %v11272_v63 = vld [vmem:[%s12986_s0 + $0xb8] sm:$0xff]   ;;  %v11273_v0 = vld [vmem:[%s12986_s0 + $0x3e8] sm:$0xff]  }
  0x13   :  { %v11274_v1 = vld [vmem:[%s12986_s0 + $0xc0] sm:$0xff]   ;;  %v11275_v2 = vld [vmem:[%s12986_s0 + $0x3f0] sm:$0xff]   ;;  %v11276_v3 = vld [vmem:[%s12986_s0 + $0xc8] sm:$0xff]  }
  0x14   :  { %v11277_v4 = vld [vmem:[%s12986_s0 + $0x3f8] sm:$0xff]   ;;  %v11278_v6 = vld [vmem:[%s12986_s0 + $0xd0] sm:$0xff]   ;;  %v11279_v7 = vld [vmem:[%s12986_s0 + $0x400] sm:$0xff]  }
  0x15   :  { %v11280_v8 = vld [vmem:[%s12986_s0 + $0xd8] sm:$0xff]   ;;  %v11281_v9 = vld [vmem:[%s12986_s0 + $0x408] sm:$0xff]   ;;  %v11282_v10 = vld [vmem:[%s12986_s0 + $0xe0] sm:$0xff]  }
  0x16   :  { %v11283_v11 = vld [vmem:[%s12986_s0 + $0x410] sm:$0xff]   ;;  %v11284_v12 = vld [vmem:[%s12986_s0 + $0xe8] sm:$0xff]   ;;  %v11285_v13 = vld [vmem:[%s12986_s0 + $0x418] sm:$0xff]  }
  0x17   :  { %v11286_v14 = vld [vmem:[%s12986_s0 + $0xf0] sm:$0xff]   ;;  %v11287_v15 = vld [vmem:[%s12986_s0 + $0x420] sm:$0xff]   ;;  %v11288_v16 = vld [vmem:[%s12986_s0 + $0xf8] sm:$0xff]  }
  0x18   :  { %v11289_v17 = vld [vmem:[%s12986_s0 + $0x428] sm:$0xff]   ;;  %v11290_v18 = vld [vmem:[%s12986_s0 + $0x100] sm:$0xff]   ;;  %v11291_v19 = vld [vmem:[%s12986_s0 + $0x430] sm:$0xff]  }
  0x19   :  { %10114 = vmatmul.mubr.msk.bf16.gmra.mrb[8].mxu0 %vm192_vm2, %v11238_v21  ;;  %10420 = vmatmul.mubr.msk.bf16.gmra.mrb[8].mxu1 %vm192_vm2, %v11239_v22  ;;  %v11292_v20 = vld [vmem:[%s12986_s0 + $0x110] sm:$0xff]   ;;  %v11293_v21 = vld [vmem:[%s12986_s0 + $0x440] sm:$0xff]   ;;  %v11294_v22 = vld [vmem:[%s12986_s0 + $0x118] sm:$0xff]  }
  0x1a   :  { %10117 = vmatprep.mubr.msk.bf16.mxu0 %vm192_vm2, %v11240_v23  ;;  %10423 = vmatprep.mubr.msk.bf16.mxu1 %vm192_vm2, %v11241_v24  ;;  %v11295_v23 = vld [vmem:[%s12986_s0 + $0x448] sm:$0xff]   ;;  %v11300_v32 = vld [vmem:[%s12986_s0 + $0x130] sm:$0xff]   ;;  %v11320_v52 = vld [vmem:[%s12986_s0 + $0x180] sm:$0xff]  }
  0x1b   :  { %v8599_v24 = vld [vmem:[%s12985_s1 + $0x8] sm:$0x3] }
  0x1c   :  { %v11303_v35 = vld [vmem:[%s12986_s0 + $0x468] sm:$0xff]  }
  0x1d   :  { %v11322_v54 = vld [vmem:[%s12986_s0 + $0x188] sm:$0xff]  }
  0x21   :  { %10118 = vmatmul.mubr.msk.bf16.gmra.mrb[12].mxu0 %vm192_vm2, %v11242_v25  ;;  %10424 = vmatmul.mubr.msk.bf16.gmra.mrb[12].mxu1 %vm192_vm2, %v11243_v26  ;;  %v9184_v25 = vld [vmem:[%s12985_s1 + $0x8] sm:$0x3]  ;;  %v11296_v26 = vld [vmem:[%s12986_s0 + $0x120] sm:$0xff]  }
  0x22   :  { %10121 = vmatprep.mubr.msk.bf16.mxu0 %vm192_vm2, %v11244_v27  ;;  %10427 = vmatprep.mubr.msk.bf16.mxu1 %vm192_vm2, %v11245_v28  ;;  %v11297_v27 = vld [vmem:[%s12986_s0 + $0x450] sm:$0xff]   ;;  %v11860_v28 = vand.u32 %v8599_v24, %v11546_v5 }
  0x23   :  { %v11351_v24 = vld [vmem:[%s12986_s0 + $0x530] sm:$0xff]  }
  0x29   :  { %10122 = vmatmul.mubr.msk.bf16.gmra.mrb[16].mxu0 %vm192_vm2, %v11246_v29  ;;  %10428 = vmatmul.mubr.msk.bf16.gmra.mrb[16].mxu1 %vm192_vm2, %v11247_v30  ;;  %v11863_v29 = vand.u32 %v9184_v25, %v11546_v5  ;;  %v11298_v30 = vld [vmem:[%s12986_s0 + $0x128] sm:$0xff]  }
  0x2a   :  { %10125 = vmatprep.mubr.msk.bf16.mxu0 %vm192_vm2, %v11248_v31  ;;  %10431 = vmatprep.mubr.msk.bf16.mxu1 %vm192_vm2, %v11249_v33  ;;  %v11299_v31 = vld [vmem:[%s12986_s0 + $0x458] sm:$0xff]   ;;  %v11301_v33 = vld [vmem:[%s12986_s0 + $0x460] sm:$0xff]   ;;  %v11352_v25 = vld [vmem:[%s12986_s0 + $0x208] sm:$0xff]  }
  0x31   :  { %10126 = vmatmul.mubr.msk.bf16.gmra.mrb[20].mxu0 %vm192_vm2, %v11250_v37  ;;  %10432 = vmatmul.mubr.msk.bf16.gmra.mrb[20].mxu1 %vm192_vm2, %v11251_v38  ;;  %v11305_v37 = vld [vmem:[%s12986_s0 + $0x470] sm:$0xff]   ;;  %v11306_v38 = vld [vmem:[%s12986_s0 + $0x148] sm:$0xff]  }
  0x32   :  { %10129 = vmatprep.mubr.msk.bf16.mxu0 %vm192_vm2, %v11252_v39  ;;  %10435 = vmatprep.mubr.msk.bf16.mxu1 %vm192_vm2, %v11253_v40  ;;  %v11307_v39 = vld [vmem:[%s12986_s0 + $0x478] sm:$0xff]   ;;  %v11308_v40 = vld [vmem:[%s12986_s0 + $0x150] sm:$0xff]  }
  0x39   :  { %10130 = vmatmul.mubr.msk.bf16.gmra.mrb[24].mxu0 %vm192_vm2, %v11254_v41  ;;  %10436 = vmatmul.mubr.msk.bf16.gmra.mrb[24].mxu1 %vm192_vm2, %v11255_v42  ;;  %v11309_v41 = vld [vmem:[%s12986_s0 + $0x480] sm:$0xff]   ;;  %v11310_v42 = vld [vmem:[%s12986_s0 + $0x158] sm:$0xff]  }
  0x3a   :  { %10133 = vmatprep.mubr.msk.bf16.mxu0 %vm192_vm2, %v11256_v43  ;;  %10439 = vmatprep.mubr.msk.bf16.mxu1 %vm192_vm2, %v11257_v44  ;;  %v11311_v43 = vld [vmem:[%s12986_s0 + $0x488] sm:$0xff]   ;;  %v11312_v44 = vld [vmem:[%s12986_s0 + $0x160] sm:$0xff]  }
  0x41   :  { %10134 = vmatmul.mubr.msk.bf16.gmra.mrb[28].mxu0 %vm192_vm2, %v11258_v45  ;;  %10440 = vmatmul.mubr.msk.bf16.gmra.mrb[28].mxu1 %vm192_vm2, %v11259_v46  ;;  %v11313_v45 = vld [vmem:[%s12986_s0 + $0x490] sm:$0xff]   ;;  %v11314_v46 = vld [vmem:[%s12986_s0 + $0x168] sm:$0xff]  }
  0x42   :  { %10139 = vmatprep.mubr.msk.bf16.mxu0 %vm192_vm2, %v11260_v47  ;;  %10445 = vmatprep.mubr.msk.bf16.mxu1 %vm192_vm2, %v11261_v48  ;;  %v11315_v47 = vld [vmem:[%s12986_s0 + $0x498] sm:$0xff]   ;;  %v11316_v48 = vld [vmem:[%s12986_s0 + $0x170] sm:$0xff]  }
  0x49   :  { %10140 = vmatmul.mubr.msk.bf16.vlgmr.msra.gmra.mrb[0].mxu0 %vm192_vm2, %v11262_v49  ;;  %10446 = vmatmul.mubr.msk.bf16.vlgmr.msra.gmra.mrb[0].mxu1 %vm192_vm2, %v11263_v50  ;;  %v11317_v49 = vld [vmem:[%s12986_s0 + $0x4a0] sm:$0xff]   ;;  %v11318_v50 = vld [vmem:[%s12986_s0 + $0x178] sm:$0xff]  }
  0x4a   :  { %10172 = vmatpush3.bf16.msra.mxu0 %v1092_v34  ;;  %10478 = vmatpush3.bf16.msra.mxu1 %v5252_v36  ;;  %v11302_v34 = vld [vmem:[%s12986_s0 + $0x138] sm:$0xff]   ;;  %v11304_v36 = vld [vmem:[%s12986_s0 + $0x140] sm:$0xff]  }
  0x4b   :  { %10143 = vmatprep.mubr.msk.bf16.mxu0 %vm192_vm2, %v11264_v51  ;;  %10449 = vmatprep.mubr.msk.bf16.mxu1 %vm192_vm2, %v11265_v53  ;;  %v11319_v51 = vld [vmem:[%s12986_s0 + $0x4a8] sm:$0xff]   ;;  %v11321_v53 = vld [vmem:[%s12986_s0 + $0x4b0] sm:$0xff]  }
  0x4c   :  { %10205 = vmatprep.subr.bf16.mxu0 %v11718_v55  ;;  %10511 = vmatprep.subr.bf16.mxu1 %v11721_v56 }
  0x51   :  { %10144 = vmatmul.mubr.msk.bf16.gmra.mrb[4].mxu0 %vm192_vm2, %v11266_v57  ;;  %10450 = vmatmul.mubr.msk.bf16.gmra.mrb[4].mxu1 %vm192_vm2, %v11267_v58  ;;  %v11325_v57 = vld [vmem:[%s12986_s0 + $0x4c8] sm:$0xff]   ;;  %v11326_v58 = vld [vmem:[%s12986_s0 + $0x1a0] sm:$0xff]  }
  0x52   :  { %10147 = vmatprep.mubr.msk.bf16.mxu0 %vm192_vm2, %v11268_v59  ;;  %10453 = vmatprep.mubr.msk.bf16.mxu1 %vm192_vm2, %v11269_v60  ;;  %v11327_v59 = vld [vmem:[%s12986_s0 + $0x4d0] sm:$0xff]   ;;  %v8664_v60 = vld [vmem:[%s12985_s1 + $0xa] sm:$0x3] }
  0x59   :  { %10148 = vmatmul.mubr.msk.bf16.gmra.mrb[8].mxu0 %vm192_vm2, %v11270_v61  ;;  %10454 = vmatmul.mubr.msk.bf16.gmra.mrb[8].mxu1 %vm192_vm2, %v11271_v62  ;;  %v9249_v61 = vld [vmem:[%s12985_s1 + $0xa] sm:$0x3] }
  0x5a   :  { %10151 = vmatprep.mubr.msk.bf16.mxu0 %vm192_vm2, %v11272_v63  ;;  %10457 = vmatprep.mubr.msk.bf16.mxu1 %vm192_vm2, %v11273_v0  ;;  %v11328_v62 = vld [vmem:[%s12986_s0 + $0x1a8] sm:$0xff]   ;;  %v11329_v63 = vld [vmem:[%s12986_s0 + $0x4d8] sm:$0xff]   ;;  %v12004_v0 = vand.u32 %v8664_v60, %v11546_v5 }
  0x5b   :  { %v11383_v60 = vld [vmem:[%s12986_s0 + $0x5b8] sm:$0xff]  }
  0x61   :  { %10152 = vmatmul.mubr.msk.bf16.gmra.mrb[12].mxu0 %vm192_vm2, %v11274_v1  ;;  %10458 = vmatmul.mubr.msk.bf16.gmra.mrb[12].mxu1 %vm192_vm2, %v11275_v2  ;;  %v12007_v1 = vand.u32 %v9249_v61, %v11546_v5  ;;  %v11330_v2 = vld [vmem:[%s12986_s0 + $0x1b0] sm:$0xff]  }
  0x62   :  { %10155 = vmatprep.mubr.msk.bf16.mxu0 %vm192_vm2, %v11276_v3  ;;  %10461 = vmatprep.mubr.msk.bf16.mxu1 %vm192_vm2, %v11277_v4  ;;  %v11331_v3 = vld [vmem:[%s12986_s0 + $0x4e0] sm:$0xff]   ;;  %v11332_v4 = vld [vmem:[%s12986_s0 + $0x1b8] sm:$0xff]   ;;  %v11384_v61 = vld [vmem:[%s12986_s0 + $0x290] sm:$0xff]  }
  0x69   :  { %10156 = vmatmul.mubr.msk.bf16.gmra.mrb[16].mxu0 %vm192_vm2, %v11278_v6  ;;  %10462 = vmatmul.mubr.msk.bf16.gmra.mrb[16].mxu1 %vm192_vm2, %v11279_v7  ;;  %v11333_v6 = vld [vmem:[%s12986_s0 + $0x4e8] sm:$0xff]   ;;  %v11334_v7 = vld [vmem:[%s12986_s0 + $0x1c0] sm:$0xff]  }
  0x6a   :  { %10159 = vmatprep.mubr.msk.bf16.mxu0 %vm192_vm2, %v11280_v8  ;;  %10465 = vmatprep.mubr.msk.bf16.mxu1 %vm192_vm2, %v11281_v9  ;;  %v11335_v8 = vld [vmem:[%s12986_s0 + $0x4f0] sm:$0xff]   ;;  %v11336_v9 = vld [vmem:[%s12986_s0 + $0x1c8] sm:$0xff]  }
  0x71   :  { %10160 = vmatmul.mubr.msk.bf16.gmra.mrb[20].mxu0 %vm192_vm2, %v11282_v10  ;;  %10466 = vmatmul.mubr.msk.bf16.gmra.mrb[20].mxu1 %vm192_vm2, %v11283_v11  ;;  %v11337_v10 = vld [vmem:[%s12986_s0 + $0x4f8] sm:$0xff]   ;;  %v11338_v11 = vld [vmem:[%s12986_s0 + $0x1d0] sm:$0xff]  }
  0x72   :  { %10163 = vmatprep.mubr.msk.bf16.mxu0 %vm192_vm2, %v11284_v12  ;;  %10469 = vmatprep.mubr.msk.bf16.mxu1 %vm192_vm2, %v11285_v13  ;;  %v11339_v12 = vld [vmem:[%s12986_s0 + $0x500] sm:$0xff]   ;;  %v11340_v13 = vld [vmem:[%s12986_s0 + $0x1d8] sm:$0xff]  }
  0x79   :  { %10164 = vmatmul.mubr.msk.bf16.gmra.mrb[24].mxu0 %vm192_vm2, %v11286_v14  ;;  %10470 = vmatmul.mubr.msk.bf16.gmra.mrb[24].mxu1 %vm192_vm2, %v11287_v15  ;;  %v11341_v14 = vld [vmem:[%s12986_s0 + $0x508] sm:$0xff]   ;;  %v11342_v15 = vld [vmem:[%s12986_s0 + $0x1e0] sm:$0xff]  }
  0x7a   :  { %10167 = vmatprep.mubr.msk.bf16.mxu0 %vm192_vm2, %v11288_v16  ;;  %10473 = vmatprep.mubr.msk.bf16.mxu1 %vm192_vm2, %v11289_v17  ;;  %v11343_v16 = vld [vmem:[%s12986_s0 + $0x510] sm:$0xff]   ;;  %v11344_v17 = vld [vmem:[%s12986_s0 + $0x1e8] sm:$0xff]  }
  0x81   :  { %10168 = vmatmul.mubr.msk.bf16.gmra.mrb[28].mxu0 %vm192_vm2, %v11290_v18  ;;  %10474 = vmatmul.mubr.msk.bf16.gmra.mrb[28].mxu1 %vm192_vm2, %v11291_v19  ;;  %v11345_v18 = vld [vmem:[%s12986_s0 + $0x518] sm:$0xff]   ;;  %v11346_v19 = vld [vmem:[%s12986_s0 + $0x1f0] sm:$0xff]  }
  0x82   :  { %10173 = vmatprep.mubr.msk.bf16.mxu0 %vm192_vm2, %v11292_v20  ;;  %10479 = vmatprep.mubr.msk.bf16.mxu1 %vm192_vm2, %v11293_v21  ;;  %v11347_v20 = vld [vmem:[%s12986_s0 + $0x520] sm:$0xff]   ;;  %v11348_v21 = vld [vmem:[%s12986_s0 + $0x1f8] sm:$0xff]  }
  0x89   :  { %10174 = vmatmul.mubr.msk.bf16.vlgmr.msra.gmra.mrb[0].mxu0 %vm192_vm2, %v11294_v22  ;;  %10480 = vmatmul.mubr.msk.bf16.vlgmr.msra.gmra.mrb[0].mxu1 %vm192_vm2, %v11295_v23  ;;  %v11349_v22 = vld [vmem:[%s12986_s0 + $0x528] sm:$0xff]   ;;  %v11350_v23 = vld [vmem:[%s12986_s0 + $0x200] sm:$0xff]  }
  0x8a   :  { %10206 = vmatpush3.bf16.msra.mxu0 %v11718_v55  ;;  %10512 = vmatpush3.bf16.msra.mxu1 %v11721_v56  ;;  %v11323_v55 = vld [vmem:[%s12986_s0 + $0x4b8] sm:$0xff]  }
  0x8b   :  { %10177 = vmatprep.mubr.msk.bf16.mxu0 %vm192_vm2, %v11296_v26  ;;  %10483 = vmatprep.mubr.msk.bf16.mxu1 %vm192_vm2, %v11297_v27  ;;  %v11324_v56 = vld [vmem:[%s12986_s0 + $0x198] sm:$0xff]   ;;  %v11354_v27 = vld [vmem:[%s12986_s0 + $0x210] sm:$0xff]  }
  0x8c   :  { %10239 = vmatprep.subr.bf16.mxu0 %v11860_v28  ;;  %10545 = vmatprep.subr.bf16.mxu1 %v11863_v29  ;;  %v11353_v26 = vld [vmem:[%s12986_s0 + $0x538] sm:$0xff]  }
  0x91   :  { %10178 = vmatmul.mubr.msk.bf16.gmra.mrb[4].mxu0 %vm192_vm2, %v11298_v30  ;;  %10484 = vmatmul.mubr.msk.bf16.gmra.mrb[4].mxu1 %vm192_vm2, %v11299_v31  ;;  %v11357_v30 = vld [vmem:[%s12986_s0 + $0x550] sm:$0xff]   ;;  %v11358_v31 = vld [vmem:[%s12986_s0 + $0x228] sm:$0xff]  }
  0x92   :  { %10181 = vmatprep.mubr.msk.bf16.mxu0 %vm192_vm2, %v11300_v32  ;;  %10487 = vmatprep.mubr.msk.bf16.mxu1 %vm192_vm2, %v11301_v33  ;;  %v11359_v32 = vld [vmem:[%s12986_s0 + $0x558] sm:$0xff]   ;;  %v8697_v33 = vld [vmem:[%s12985_s1 + $0xc] sm:$0x3] }
  0x99   :  { %10182 = vmatmul.mubr.msk.bf16.gmra.mrb[8].mxu0 %vm192_vm2, %v11302_v34  ;;  %10488 = vmatmul.mubr.msk.bf16.gmra.mrb[8].mxu1 %vm192_vm2, %v11303_v35  ;;  %v9314_v34 = vld [vmem:[%s12985_s1 + $0xc] sm:$0x3]  ;;  %v11360_v35 = vld [vmem:[%s12986_s0 + $0x230] sm:$0xff]  }
  0x9a   :  { %10185 = vmatprep.mubr.msk.bf16.mxu0 %vm192_vm2, %v11304_v36  ;;  %10491 = vmatprep.mubr.msk.bf16.mxu1 %vm192_vm2, %v11305_v37  ;;  %v11361_v36 = vld [vmem:[%s12986_s0 + $0x560] sm:$0xff]   ;;  %v12148_v37 = vand.u32 %v8697_v33, %v11546_v5 }
  0x9b   :  { %v11415_v33 = vld [vmem:[%s12986_s0 + $0x640] sm:$0xff]  }
  0xa1   :  { %10186 = vmatmul.mubr.msk.bf16.gmra.mrb[12].mxu0 %vm192_vm2, %v11306_v38  ;;  %10492 = vmatmul.mubr.msk.bf16.gmra.mrb[12].mxu1 %vm192_vm2, %v11307_v39  ;;  %v12151_v38 = vand.u32 %v9314_v34, %v11546_v5  ;;  %v11362_v39 = vld [vmem:[%s12986_s0 + $0x238] sm:$0xff]  }
  0xa2   :  { %10189 = vmatprep.mubr.msk.bf16.mxu0 %vm192_vm2, %v11308_v40  ;;  %10495 = vmatprep.mubr.msk.bf16.mxu1 %vm192_vm2, %v11309_v41  ;;  %v11363_v40 = vld [vmem:[%s12986_s0 + $0x568] sm:$0xff]   ;;  %v11364_v41 = vld [vmem:[%s12986_s0 + $0x240] sm:$0xff]   ;;  %v11416_v34 = vld [vmem:[%s12986_s0 + $0x318] sm:$0xff]  }
  0xa9   :  { %10190 = vmatmul.mubr.msk.bf16.gmra.mrb[16].mxu0 %vm192_vm2, %v11310_v42  ;;  %10496 = vmatmul.mubr.msk.bf16.gmra.mrb[16].mxu1 %vm192_vm2, %v11311_v43  ;;  %v11365_v42 = vld [vmem:[%s12986_s0 + $0x570] sm:$0xff]   ;;  %v11366_v43 = vld [vmem:[%s12986_s0 + $0x248] sm:$0xff]  }
  0xaa   :  { %10193 = vmatprep.mubr.msk.bf16.mxu0 %vm192_vm2, %v11312_v44  ;;  %10499 = vmatprep.mubr.msk.bf16.mxu1 %vm192_vm2, %v11313_v45  ;;  %v11367_v44 = vld [vmem:[%s12986_s0 + $0x578] sm:$0xff]   ;;  %v11368_v45 = vld [vmem:[%s12986_s0 + $0x250] sm:$0xff]  }
  0xb1   :  { %10194 = vmatmul.mubr.msk.bf16.gmra.mrb[20].mxu0 %vm192_vm2, %v11314_v46  ;;  %10500 = vmatmul.mubr.msk.bf16.gmra.mrb[20].mxu1 %vm192_vm2, %v11315_v47  ;;  %v11369_v46 = vld [vmem:[%s12986_s0 + $0x580] sm:$0xff]   ;;  %v11370_v47 = vld [vmem:[%s12986_s0 + $0x258] sm:$0xff]  }
  0xb2   :  { %10197 = vmatprep.mubr.msk.bf16.mxu0 %vm192_vm2, %v11316_v48  ;;  %10503 = vmatprep.mubr.msk.bf16.mxu1 %vm192_vm2, %v11317_v49  ;;  %v11371_v48 = vld [vmem:[%s12986_s0 + $0x588] sm:$0xff]   ;;  %v11372_v49 = vld [vmem:[%s12986_s0 + $0x260] sm:$0xff]  }
  0xb9   :  { %10198 = vmatmul.mubr.msk.bf16.gmra.mrb[24].mxu0 %vm192_vm2, %v11318_v50  ;;  %10504 = vmatmul.mubr.msk.bf16.gmra.mrb[24].mxu1 %vm192_vm2, %v11319_v51  ;;  %v11373_v50 = vld [vmem:[%s12986_s0 + $0x590] sm:$0xff]   ;;  %v11374_v51 = vld [vmem:[%s12986_s0 + $0x268] sm:$0xff]  }
  0xba   :  { %10201 = vmatprep.mubr.msk.bf16.mxu0 %vm192_vm2, %v11320_v52  ;;  %10507 = vmatprep.mubr.msk.bf16.mxu1 %vm192_vm2, %v11321_v53  ;;  %v11375_v52 = vld [vmem:[%s12986_s0 + $0x598] sm:$0xff]   ;;  %v11376_v53 = vld [vmem:[%s12986_s0 + $0x270] sm:$0xff]  }
  0xc1   :  { %10202 = vmatmul.mubr.msk.bf16.gmra.mrb[28].mxu0 %vm192_vm2, %v11322_v54  ;;  %10508 = vmatmul.mubr.msk.bf16.gmra.mrb[28].mxu1 %vm192_vm2, %v11323_v55  ;;  %v11377_v54 = vld [vmem:[%s12986_s0 + $0x5a0] sm:$0xff]   ;;  %v11378_v55 = vld [vmem:[%s12986_s0 + $0x278] sm:$0xff]  }
  0xc2   :  { %10207 = vmatprep.mubr.msk.bf16.mxu0 %vm192_vm2, %v11324_v56  ;;  %10513 = vmatprep.mubr.msk.bf16.mxu1 %vm192_vm2, %v11325_v57  ;;  %v11379_v56 = vld [vmem:[%s12986_s0 + $0x5a8] sm:$0xff]   ;;  %v11380_v57 = vld [vmem:[%s12986_s0 + $0x280] sm:$0xff]  }
  0xc9   :  { %10208 = vmatmul.mubr.msk.bf16.vlgmr.msra.gmra.mrb[0].mxu0 %vm192_vm2, %v11326_v58  ;;  %10514 = vmatmul.mubr.msk.bf16.vlgmr.msra.gmra.mrb[0].mxu1 %vm192_vm2, %v11327_v59  ;;  %v11381_v58 = vld [vmem:[%s12986_s0 + $0x5b0] sm:$0xff]   ;;  %v11382_v59 = vld [vmem:[%s12986_s0 + $0x288] sm:$0xff]  }
  0xca   :  { %10240 = vmatpush3.bf16.msra.mxu0 %v11860_v28  ;;  %10546 = vmatpush3.bf16.msra.mxu1 %v11863_v29  ;;  %v11355_v28 = vld [vmem:[%s12986_s0 + $0x540] sm:$0xff]  }
  0xcb   :  { %10211 = vmatprep.mubr.msk.bf16.mxu0 %vm192_vm2, %v11328_v62  ;;  %10517 = vmatprep.mubr.msk.bf16.mxu1 %vm192_vm2, %v11329_v63  ;;  %v11356_v29 = vld [vmem:[%s12986_s0 + $0x220] sm:$0xff]   ;;  %v11386_v63 = vld [vmem:[%s12986_s0 + $0x298] sm:$0xff]  }
  0xcc   :  { %10273 = vmatprep.subr.bf16.mxu0 %v12004_v0  ;;  %10579 = vmatprep.subr.bf16.mxu1 %v12007_v1  ;;  %v11385_v62 = vld [vmem:[%s12986_s0 + $0x5c0] sm:$0xff]  }
  0xd1   :  { %10212 = vmatmul.mubr.msk.bf16.gmra.mrb[4].mxu0 %vm192_vm2, %v11330_v2  ;;  %10518 = vmatmul.mubr.msk.bf16.gmra.mrb[4].mxu1 %vm192_vm2, %v11331_v3  ;;  %v11389_v2 = vld [vmem:[%s12986_s0 + $0x5d8] sm:$0xff]   ;;  %v11390_v3 = vld [vmem:[%s12986_s0 + $0x2b0] sm:$0xff]  }
  0xd2   :  { %10215 = vmatprep.mubr.msk.bf16.mxu0 %vm192_vm2, %v11332_v4  ;;  %10521 = vmatprep.mubr.msk.bf16.mxu1 %vm192_vm2, %v11333_v6  ;;  %v11391_v4 = vld [vmem:[%s12986_s0 + $0x5e0] sm:$0xff]   ;;  %v8762_v6 = vld [vmem:[%s12985_s1 + $0xe] sm:$0x3] }
  0xd9   :  { %10216 = vmatmul.mubr.msk.bf16.gmra.mrb[8].mxu0 %vm192_vm2, %v11334_v7  ;;  %10522 = vmatmul.mubr.msk.bf16.gmra.mrb[8].mxu1 %vm192_vm2, %v11335_v8  ;;  %v9379_v7 = vld [vmem:[%s12985_s1 + $0xe] sm:$0x3]  ;;  %v11392_v8 = vld [vmem:[%s12986_s0 + $0x2b8] sm:$0xff]  }
  0xda   :  { %10219 = vmatprep.mubr.msk.bf16.mxu0 %vm192_vm2, %v11336_v9  ;;  %10525 = vmatprep.mubr.msk.bf16.mxu1 %vm192_vm2, %v11337_v10  ;;  %v11393_v9 = vld [vmem:[%s12986_s0 + $0x5e8] sm:$0xff]   ;;  %v12292_v10 = vand.u32 %v8762_v6, %v11546_v5  ;;  %v11448_v6 = vld [vmem:[%s12986_s0 + $0x78] sm:$0xff]  }
  0xe1   :  { %10220 = vmatmul.mubr.msk.bf16.gmra.mrb[12].mxu0 %vm192_vm2, %v11338_v11  ;;  %10526 = vmatmul.mubr.msk.bf16.gmra.mrb[12].mxu1 %vm192_vm2, %v11339_v12  ;;  %v12295_v11 = vand.u32 %v9379_v7, %v11546_v5  ;;  %v11394_v12 = vld [vmem:[%s12986_s0 + $0x2c0] sm:$0xff]   ;;  %v11449_v7 = vld [vmem:[%s12986_s0 + $0x3a8] sm:$0xff]  }
  0xe2   :  { %10223 = vmatprep.mubr.msk.bf16.mxu0 %vm192_vm2, %v11340_v13  ;;  %10529 = vmatprep.mubr.msk.bf16.mxu1 %vm192_vm2, %v11341_v14  ;;  %v11395_v13 = vld [vmem:[%s12986_s0 + $0x5f0] sm:$0xff]   ;;  %v11396_v14 = vld [vmem:[%s12986_s0 + $0x2c8] sm:$0xff]  }
  0xe9   :  { %10224 = vmatmul.mubr.msk.bf16.gmra.mrb[16].mxu0 %vm192_vm2, %v11342_v15  ;;  %10530 = vmatmul.mubr.msk.bf16.gmra.mrb[16].mxu1 %vm192_vm2, %v11343_v16  ;;  %v11397_v15 = vld [vmem:[%s12986_s0 + $0x5f8] sm:$0xff]   ;;  %v11398_v16 = vld [vmem:[%s12986_s0 + $0x2d0] sm:$0xff]  }
  0xea   :  { %10227 = vmatprep.mubr.msk.bf16.mxu0 %vm192_vm2, %v11344_v17  ;;  %10533 = vmatprep.mubr.msk.bf16.mxu1 %vm192_vm2, %v11345_v18  ;;  %v11399_v17 = vld [vmem:[%s12986_s0 + $0x600] sm:$0xff]   ;;  %v11400_v18 = vld [vmem:[%s12986_s0 + $0x2d8] sm:$0xff]  }
  0xf1   :  { %10228 = vmatmul.mubr.msk.bf16.gmra.mrb[20].mxu0 %vm192_vm2, %v11346_v19  ;;  %10534 = vmatmul.mubr.msk.bf16.gmra.mrb[20].mxu1 %vm192_vm2, %v11347_v20  ;;  %v11401_v19 = vld [vmem:[%s12986_s0 + $0x608] sm:$0xff]   ;;  %v11402_v20 = vld [vmem:[%s12986_s0 + $0x2e0] sm:$0xff]  }
  0xf2   :  { %10231 = vmatprep.mubr.msk.bf16.mxu0 %vm192_vm2, %v11348_v21  ;;  %10537 = vmatprep.mubr.msk.bf16.mxu1 %vm192_vm2, %v11349_v22  ;;  %v11403_v21 = vld [vmem:[%s12986_s0 + $0x610] sm:$0xff]   ;;  %v11404_v22 = vld [vmem:[%s12986_s0 + $0x2e8] sm:$0xff]  }
  0xf9   :  { %10232 = vmatmul.mubr.msk.bf16.gmra.mrb[24].mxu0 %vm192_vm2, %v11350_v23  ;;  %10538 = vmatmul.mubr.msk.bf16.gmra.mrb[24].mxu1 %vm192_vm2, %v11351_v24  ;;  %v11405_v23 = vld [vmem:[%s12986_s0 + $0x618] sm:$0xff]   ;;  %v11406_v24 = vld [vmem:[%s12986_s0 + $0x2f0] sm:$0xff]  }
  0xfa   :  { %10235 = vmatprep.mubr.msk.bf16.mxu0 %vm192_vm2, %v11352_v25  ;;  %10541 = vmatprep.mubr.msk.bf16.mxu1 %vm192_vm2, %v11353_v26  ;;  %v11407_v25 = vld [vmem:[%s12986_s0 + $0x620] sm:$0xff]   ;;  %v11408_v26 = vld [vmem:[%s12986_s0 + $0x2f8] sm:$0xff]  }
 0x101   :  { %10236 = vmatmul.mubr.msk.bf16.gmra.mrb[28].mxu0 %vm192_vm2, %v11354_v27  ;;  %10542 = vmatmul.mubr.msk.bf16.gmra.mrb[28].mxu1 %vm192_vm2, %v11355_v28  ;;  %v11409_v27 = vld [vmem:[%s12986_s0 + $0x628] sm:$0xff]   ;;  %v11410_v28 = vld [vmem:[%s12986_s0 + $0x300] sm:$0xff]  }
 0x102   :  { %10241 = vmatprep.mubr.msk.bf16.mxu0 %vm192_vm2, %v11356_v29  ;;  %10547 = vmatprep.mubr.msk.bf16.mxu1 %vm192_vm2, %v11357_v30  ;;  %v11411_v29 = vld [vmem:[%s12986_s0 + $0x630] sm:$0xff]   ;;  %v11412_v30 = vld [vmem:[%s12986_s0 + $0x308] sm:$0xff]  }
 0x109   :  { %10242 = vmatmul.mubr.msk.bf16.vlgmr.msra.gmra.mrb[0].mxu0 %vm192_vm2, %v11358_v31  ;;  %10548 = vmatmul.mubr.msk.bf16.vlgmr.msra.gmra.mrb[0].mxu1 %vm192_vm2, %v11359_v32  ;;  %v11413_v31 = vld [vmem:[%s12986_s0 + $0x638] sm:$0xff]   ;;  %v11414_v32 = vld [vmem:[%s12986_s0 + $0x310] sm:$0xff]  }
 0x10a   :  { %10274 = vmatpush3.bf16.msra.mxu0 %v12004_v0  ;;  %10580 = vmatpush3.bf16.msra.mxu1 %v12007_v1  ;;  %v11387_v0 = vld [vmem:[%s12986_s0 + $0x5c8] sm:$0xff]  }
 0x10b   :  { %10245 = vmatprep.mubr.msk.bf16.mxu0 %vm192_vm2, %v11360_v35  ;;  %10551 = vmatprep.mubr.msk.bf16.mxu1 %vm192_vm2, %v11361_v36  ;;  %v11388_v1 = vld [vmem:[%s12986_s0 + $0x2a8] sm:$0xff]   ;;  %v11418_v36 = vld [vmem:[%s12986_s0 + $0x320] sm:$0xff]  }
 0x10c   :  { %10307 = vmatprep.subr.bf16.mxu0 %v12148_v37  ;;  %10613 = vmatprep.subr.bf16.mxu1 %v12151_v38  ;;  %v11417_v35 = vld [vmem:[%s12986_s0 + $0x648] sm:$0xff]  }
 0x111   :  { %10246 = vmatmul.mubr.msk.bf16.gmra.mrb[4].mxu0 %vm192_vm2, %v11362_v39  ;;  %10552 = vmatmul.mubr.msk.bf16.gmra.mrb[4].mxu1 %vm192_vm2, %v11363_v40  ;;  %v11421_v39 = vld [vmem:[%s12986_s0 + $0x338] sm:$0xff]   ;;  %v11422_v40 = vld [vmem:[%s12986_s0 + $0x10] sm:$0xff]  }
 0x112   :  { %10249 = vmatprep.mubr.msk.bf16.mxu0 %vm192_vm2, %v11364_v41  ;;  %10555 = vmatprep.mubr.msk.bf16.mxu1 %vm192_vm2, %v11365_v42  ;;  %v11423_v41 = vld [vmem:[%s12986_s0 + $0x340] sm:$0xff]   ;;  %v8827_v42 = vld [vmem:[%s12985_s1 + $0x10] sm:$0x3] }
 0x119   :  { %10250 = vmatmul.mubr.msk.bf16.gmra.mrb[8].mxu0 %vm192_vm2, %v11366_v43  ;;  %10556 = vmatmul.mubr.msk.bf16.gmra.mrb[8].mxu1 %vm192_vm2, %v11367_v44  ;;  %v9444_v43 = vld [vmem:[%s12985_s1 + $0x10] sm:$0x3]  ;;  %v11424_v44 = vld [vmem:[%s12986_s0 + $0x18] sm:$0xff]  }
 0x11a   :  { %10253 = vmatprep.mubr.msk.bf16.mxu0 %vm192_vm2, %v11368_v45  ;;  %10559 = vmatprep.mubr.msk.bf16.mxu1 %vm192_vm2, %v11369_v46  ;;  %v11425_v45 = vld [vmem:[%s12986_s0 + $0x348] sm:$0xff]   ;;  %v12436_v46 = vand.u32 %v8827_v42, %v11546_v5  ;;  %v11484_v42 = vld [vmem:[%s12986_s0 + $0x118] sm:$0xff]  }
 0x121   :  { %10254 = vmatmul.mubr.msk.bf16.gmra.mrb[12].mxu0 %vm192_vm2, %v11370_v47  ;;  %10560 = vmatmul.mubr.msk.bf16.gmra.mrb[12].mxu1 %vm192_vm2, %v11371_v48  ;;  %v12439_v47 = vand.u32 %v9444_v43, %v11546_v5  ;;  %v11426_v5 = vld [vmem:[%s12986_s0 + $0x20] sm:$0xff]   ;;  %v11427_v48 = vld [vmem:[%s12986_s0 + $0x350] sm:$0xff]   ;;  %v11485_v43 = vld [vmem:[%s12986_s0 + $0x448] sm:$0xff]  }
 0x122   :  { %10257 = vmatprep.mubr.msk.bf16.mxu0 %vm192_vm2, %v11372_v49  ;;  %10563 = vmatprep.mubr.msk.bf16.mxu1 %vm192_vm2, %v11373_v50  ;;  %v11428_v49 = vld [vmem:[%s12986_s0 + $0x28] sm:$0xff]   ;;  %v11429_v50 = vld [vmem:[%s12986_s0 + $0x358] sm:$0xff]  }
 0x129   :  { %10258 = vmatmul.mubr.msk.bf16.gmra.mrb[16].mxu0 %vm192_vm2, %v11374_v51  ;;  %10564 = vmatmul.mubr.msk.bf16.gmra.mrb[16].mxu1 %vm192_vm2, %v11375_v52  ;;  %v11430_v51 = vld [vmem:[%s12986_s0 + $0x30] sm:$0xff]   ;;  %v11431_v52 = vld [vmem:[%s12986_s0 + $0x360] sm:$0xff]  }
 0x12a   :  { %10261 = vmatprep.mubr.msk.bf16.mxu0 %vm192_vm2, %v11376_v53  ;;  %10567 = vmatprep.mubr.msk.bf16.mxu1 %vm192_vm2, %v11377_v54  ;;  %v11432_v53 = vld [vmem:[%s12986_s0 + $0x38] sm:$0xff]   ;;  %v11433_v54 = vld [vmem:[%s12986_s0 + $0x368] sm:$0xff]  }
 0x131   :  { %10262 = vmatmul.mubr.msk.bf16.gmra.mrb[20].mxu0 %vm192_vm2, %v11378_v55  ;;  %10568 = vmatmul.mubr.msk.bf16.gmra.mrb[20].mxu1 %vm192_vm2, %v11379_v56  ;;  %v11434_v55 = vld [vmem:[%s12986_s0 + $0x40] sm:$0xff]   ;;  %v11435_v56 = vld [vmem:[%s12986_s0 + $0x370] sm:$0xff]  }
 0x132   :  { %10265 = vmatprep.mubr.msk.bf16.mxu0 %vm192_vm2, %v11380_v57  ;;  %10571 = vmatprep.mubr.msk.bf16.mxu1 %vm192_vm2, %v11381_v58  ;;  %v11436_v57 = vld [vmem:[%s12986_s0 + $0x48] sm:$0xff]   ;;  %v11437_v58 = vld [vmem:[%s12986_s0 + $0x378] sm:$0xff]  }
 0x139   :  { %10266 = vmatmul.mubr.msk.bf16.gmra.mrb[24].mxu0 %vm192_vm2, %v11382_v59  ;;  %10572 = vmatmul.mubr.msk.bf16.gmra.mrb[24].mxu1 %vm192_vm2, %v11383_v60  ;;  %v11438_v59 = vld [vmem:[%s12986_s0 + $0x50] sm:$0xff]   ;;  %v11439_v60 = vld [vmem:[%s12986_s0 + $0x380] sm:$0xff]  }
 0x13a   :  { %10269 = vmatprep.mubr.msk.bf16.mxu0 %vm192_vm2, %v11384_v61  ;;  %10575 = vmatprep.mubr.msk.bf16.mxu1 %vm192_vm2, %v11385_v62  ;;  %v11440_v61 = vld [vmem:[%s12986_s0 + $0x58] sm:$0xff]   ;;  %v11441_v62 = vld [vmem:[%s12986_s0 + $0x388] sm:$0xff]  }
 0x141   :  { %10270 = vmatmul.mubr.msk.bf16.gmra.mrb[28].mxu0 %vm192_vm2, %v11386_v63  ;;  %10576 = vmatmul.mubr.msk.bf16.gmra.mrb[28].mxu1 %vm192_vm2, %v11387_v0  ;;  %v11442_v63 = vld [vmem:[%s12986_s0 + $0x60] sm:$0xff]   ;;  %v11443_v0 = vld [vmem:[%s12986_s0 + $0x390] sm:$0xff]  }
 0x142   :  { %10275 = vmatprep.mubr.msk.bf16.mxu0 %vm192_vm2, %v11388_v1  ;;  %10581 = vmatprep.mubr.msk.bf16.mxu1 %vm192_vm2, %v11389_v2  ;;  %v11444_v1 = vld [vmem:[%s12986_s0 + $0x68] sm:$0xff]   ;;  %v11445_v2 = vld [vmem:[%s12986_s0 + $0x398] sm:$0xff]  }
 0x149   :  { %10276 = vmatmul.mubr.msk.bf16.vlgmr.msra.gmra.mrb[0].mxu0 %vm192_vm2, %v11390_v3  ;;  %10582 = vmatmul.mubr.msk.bf16.vlgmr.msra.gmra.mrb[0].mxu1 %vm192_vm2, %v11391_v4  ;;  %v11446_v3 = vld [vmem:[%s12986_s0 + $0x70] sm:$0xff]   ;;  %v11447_v4 = vld [vmem:[%s12986_s0 + $0x3a0] sm:$0xff]  }
 0x14a   :  { %10308 = vmatpush3.bf16.msra.mxu0 %v12148_v37  ;;  %10614 = vmatpush3.bf16.msra.mxu1 %v12151_v38  ;;  %v11419_v37 = vld [vmem:[%s12986_s0 + $0x650] sm:$0xff]   ;;  %v11420_v38 = vld [vmem:[%s12986_s0 + $0x8] sm:$0xff]  }
 0x14b   :  { %10279 = vmatprep.mubr.msk.bf16.mxu0 %vm192_vm2, %v11392_v8  ;;  %10585 = vmatprep.mubr.msk.bf16.mxu1 %vm192_vm2, %v11393_v9  ;;  %v11450_v8 = vld [vmem:[%s12986_s0 + $0x80] sm:$0xff]   ;;  %v11451_v9 = vld [vmem:[%s12986_s0 + $0x3b0] sm:$0xff]  }
 0x14c   :  { %10341 = vmatprep.subr.bf16.mxu0 %v12292_v10  ;;  %10647 = vmatprep.subr.bf16.mxu1 %v12295_v11 }
 0x151   :  { %10280 = vmatmul.mubr.msk.bf16.gmra.mrb[4].mxu0 %vm192_vm2, %v11394_v12  ;;  %10586 = vmatmul.mubr.msk.bf16.gmra.mrb[4].mxu1 %vm192_vm2, %v11395_v13  ;;  %v11454_v12 = vld [vmem:[%s12986_s0 + $0x98] sm:$0xff]   ;;  %v11455_v13 = vld [vmem:[%s12986_s0 + $0x3c8] sm:$0xff]  }
 0x152   :  { %10283 = vmatprep.mubr.msk.bf16.mxu0 %vm192_vm2, %v11396_v14  ;;  %10589 = vmatprep.mubr.msk.bf16.mxu1 %vm192_vm2, %v11397_v15  ;;  %v11456_v14 = vld [vmem:[%s12986_s0 + $0xa0] sm:$0xff]   ;;  %v11457_v15 = vld [vmem:[%s12986_s0 + $0x3d0] sm:$0xff]  }
 0x159   :  { %10284 = vmatmul.mubr.msk.bf16.gmra.mrb[8].mxu0 %vm192_vm2, %v11398_v16  ;;  %10590 = vmatmul.mubr.msk.bf16.gmra.mrb[8].mxu1 %vm192_vm2, %v11399_v17  ;;  %v11458_v16 = vld [vmem:[%s12986_s0 + $0xa8] sm:$0xff]   ;;  %v11459_v17 = vld [vmem:[%s12986_s0 + $0x3d8] sm:$0xff]  }
 0x15a   :  { %10287 = vmatprep.mubr.msk.bf16.mxu0 %vm192_vm2, %v11400_v18  ;;  %10593 = vmatprep.mubr.msk.bf16.mxu1 %vm192_vm2, %v11401_v19  ;;  %v11460_v18 = vld [vmem:[%s12986_s0 + $0xb0] sm:$0xff]   ;;  %v11461_v19 = vld [vmem:[%s12986_s0 + $0x3e0] sm:$0xff]  }
 0x161   :  { %10288 = vmatmul.mubr.msk.bf16.gmra.mrb[12].mxu0 %vm192_vm2, %v11402_v20  ;;  %10594 = vmatmul.mubr.msk.bf16.gmra.mrb[12].mxu1 %vm192_vm2, %v11403_v21  ;;  %v11462_v20 = vld [vmem:[%s12986_s0 + $0xb8] sm:$0xff]   ;;  %v11463_v21 = vld [vmem:[%s12986_s0 + $0x3e8] sm:$0xff]  }
 0x162   :  { %10291 = vmatprep.mubr.msk.bf16.mxu0 %vm192_vm2, %v11404_v22  ;;  %10597 = vmatprep.mubr.msk.bf16.mxu1 %vm192_vm2, %v11405_v23  ;;  %v11464_v22 = vld [vmem:[%s12986_s0 + $0xc0] sm:$0xff]   ;;  %v11465_v23 = vld [vmem:[%s12986_s0 + $0x3f0] sm:$0xff]  }
 0x169   :  { %10292 = vmatmul.mubr.msk.bf16.gmra.mrb[16].mxu0 %vm192_vm2, %v11406_v24  ;;  %10598 = vmatmul.mubr.msk.bf16.gmra.mrb[16].mxu1 %vm192_vm2, %v11407_v25  ;;  %v11466_v24 = vld [vmem:[%s12986_s0 + $0xc8] sm:$0xff]   ;;  %v11467_v25 = vld [vmem:[%s12986_s0 + $0x3f8] sm:$0xff]  }
 0x16a   :  { %10295 = vmatprep.mubr.msk.bf16.mxu0 %vm192_vm2, %v11408_v26  ;;  %10601 = vmatprep.mubr.msk.bf16.mxu1 %vm192_vm2, %v11409_v27  ;;  %v11468_v26 = vld [vmem:[%s12986_s0 + $0xd0] sm:$0xff]   ;;  %v11469_v27 = vld [vmem:[%s12986_s0 + $0x400] sm:$0xff]  }
 0x171   :  { %10296 = vmatmul.mubr.msk.bf16.gmra.mrb[20].mxu0 %vm192_vm2, %v11410_v28  ;;  %10602 = vmatmul.mubr.msk.bf16.gmra.mrb[20].mxu1 %vm192_vm2, %v11411_v29  ;;  %v11470_v28 = vld [vmem:[%s12986_s0 + $0xd8] sm:$0xff]   ;;  %v11471_v29 = vld [vmem:[%s12986_s0 + $0x408] sm:$0xff]  }
 0x172   :  { %10299 = vmatprep.mubr.msk.bf16.mxu0 %vm192_vm2, %v11412_v30  ;;  %10605 = vmatprep.mubr.msk.bf16.mxu1 %vm192_vm2, %v11413_v31  ;;  %v11472_v30 = vld [vmem:[%s12986_s0 + $0xe0] sm:$0xff]   ;;  %v11473_v31 = vld [vmem:[%s12986_s0 + $0x410] sm:$0xff]  }
 0x179   :  { %10300 = vmatmul.mubr.msk.bf16.gmra.mrb[24].mxu0 %vm192_vm2, %v11414_v32  ;;  %10606 = vmatmul.mubr.msk.bf16.gmra.mrb[24].mxu1 %vm192_vm2, %v11415_v33  ;;  %v11474_v32 = vld [vmem:[%s12986_s0 + $0xe8] sm:$0xff]   ;;  %v11475_v33 = vld [vmem:[%s12986_s0 + $0x418] sm:$0xff]  }
 0x17a   :  { %10303 = vmatprep.mubr.msk.bf16.mxu0 %vm192_vm2, %v11416_v34  ;;  %10609 = vmatprep.mubr.msk.bf16.mxu1 %vm192_vm2, %v11417_v35  ;;  %v11476_v34 = vld [vmem:[%s12986_s0 + $0xf0] sm:$0xff]   ;;  %v11477_v35 = vld [vmem:[%s12986_s0 + $0x420] sm:$0xff]  }
 0x181   :  { %10304 = vmatmul.mubr.msk.bf16.gmra.mrb[28].mxu0 %vm192_vm2, %v11418_v36  ;;  %10610 = vmatmul.mubr.msk.bf16.gmra.mrb[28].mxu1 %vm192_vm2, %v11419_v37  ;;  %v11478_v36 = vld [vmem:[%s12986_s0 + $0xf8] sm:$0xff]   ;;  %v11479_v37 = vld [vmem:[%s12986_s0 + $0x428] sm:$0xff]  }
 0x182   :  { %10309 = vmatprep.mubr.msk.bf16.mxu0 %vm192_vm2, %v11420_v38  ;;  %10615 = vmatprep.mubr.msk.bf16.mxu1 %vm192_vm2, %v11421_v39  ;;  %v11480_v38 = vld [vmem:[%s12986_s0 + $0x100] sm:$0xff]   ;;  %v11481_v39 = vld [vmem:[%s12986_s0 + $0x430] sm:$0xff]  }
 0x189   :  { %10310 = vmatmul.mubr.msk.bf16.vlgmr.msra.gmra.mrb[0].mxu0 %vm192_vm2, %v11422_v40  ;;  %10616 = vmatmul.mubr.msk.bf16.vlgmr.msra.gmra.mrb[0].mxu1 %vm192_vm2, %v11423_v41  ;;  %v11482_v40 = vld [vmem:[%s12986_s0 + $0x108] sm:$0xff]   ;;  %v11483_v41 = vld [vmem:[%s12986_s0 + $0x438] sm:$0xff]  }
 0x18a   :  { %10342 = vmatpush3.bf16.msra.mxu0 %v12292_v10  ;;  %10648 = vmatpush3.bf16.msra.mxu1 %v12295_v11  ;;  %v11452_v10 = vld [vmem:[%s12986_s0 + $0x90] sm:$0xff]   ;;  %v11453_v11 = vld [vmem:[%s12986_s0 + $0x3c0] sm:$0xff]  }
 0x18b   :  { %10313 = vmatprep.mubr.msk.bf16.mxu0 %vm192_vm2, %v11424_v44  ;;  %10619 = vmatprep.mubr.msk.bf16.mxu1 %vm192_vm2, %v11425_v45  ;;  %v11486_v44 = vld [vmem:[%s12986_s0 + $0x120] sm:$0xff]   ;;  %v11487_v45 = vld [vmem:[%s12986_s0 + $0x450] sm:$0xff]  }
 0x18c   :  { %10375 = vmatprep.subr.bf16.mxu0 %v12436_v46  ;;  %10681 = vmatprep.subr.bf16.mxu1 %v12439_v47 }
 0x191   :  { %10314 = vmatmul.mubr.msk.bf16.gmra.mrb[4].mxu0 %vm192_vm2, %v11426_v5  ;;  %10620 = vmatmul.mubr.msk.bf16.gmra.mrb[4].mxu1 %vm192_vm2, %v11427_v48  ;;  %v11490_v5 = vld [vmem:[%s12986_s0 + $0x130] sm:$0xff]   ;;  %v11491_v48 = vld [vmem:[%s12986_s0 + $0x460] sm:$0xff]  }
 0x192   :  { %10317 = vmatprep.mubr.msk.bf16.mxu0 %vm192_vm2, %v11428_v49  ;;  %10623 = vmatprep.mubr.msk.bf16.mxu1 %vm192_vm2, %v11429_v50  ;;  %v11492_v49 = vld [vmem:[%s12986_s0 + $0x138] sm:$0xff]   ;;  %v11493_v50 = vld [vmem:[%s12986_s0 + $0x468] sm:$0xff]  }
 0x199   :  { %10318 = vmatmul.mubr.msk.bf16.gmra.mrb[8].mxu0 %vm192_vm2, %v11430_v51  ;;  %10624 = vmatmul.mubr.msk.bf16.gmra.mrb[8].mxu1 %vm192_vm2, %v11431_v52  ;;  %v11494_v51 = vld [vmem:[%s12986_s0 + $0x140] sm:$0xff]   ;;  %v11495_v52 = vld [vmem:[%s12986_s0 + $0x470] sm:$0xff]  }
 0x19a   :  { %10321 = vmatprep.mubr.msk.bf16.mxu0 %vm192_vm2, %v11432_v53  ;;  %10627 = vmatprep.mubr.msk.bf16.mxu1 %vm192_vm2, %v11433_v54  ;;  %v11496_v53 = vld [vmem:[%s12986_s0 + $0x148] sm:$0xff]   ;;  %v11497_v54 = vld [vmem:[%s12986_s0 + $0x478] sm:$0xff]  }
 0x1a1   :  { %10322 = vmatmul.mubr.msk.bf16.gmra.mrb[12].mxu0 %vm192_vm2, %v11434_v55  ;;  %10628 = vmatmul.mubr.msk.bf16.gmra.mrb[12].mxu1 %vm192_vm2, %v11435_v56  ;;  %v11498_v55 = vld [vmem:[%s12986_s0 + $0x150] sm:$0xff]   ;;  %v11499_v56 = vld [vmem:[%s12986_s0 + $0x480] sm:$0xff]  }
 0x1a2   :  { %10325 = vmatprep.mubr.msk.bf16.mxu0 %vm192_vm2, %v11436_v57  ;;  %10631 = vmatprep.mubr.msk.bf16.mxu1 %vm192_vm2, %v11437_v58  ;;  %v11500_v57 = vld [vmem:[%s12986_s0 + $0x158] sm:$0xff]   ;;  %v11501_v58 = vld [vmem:[%s12986_s0 + $0x488] sm:$0xff]  }
 0x1a9   :  { %10326 = vmatmul.mubr.msk.bf16.gmra.mrb[16].mxu0 %vm192_vm2, %v11438_v59  ;;  %10632 = vmatmul.mubr.msk.bf16.gmra.mrb[16].mxu1 %vm192_vm2, %v11439_v60  ;;  %v11502_v59 = vld [vmem:[%s12986_s0 + $0x160] sm:$0xff]   ;;  %v11503_v60 = vld [vmem:[%s12986_s0 + $0x490] sm:$0xff]  }
 0x1aa   :  { %10329 = vmatprep.mubr.msk.bf16.mxu0 %vm192_vm2, %v11440_v61  ;;  %10635 = vmatprep.mubr.msk.bf16.mxu1 %vm192_vm2, %v11441_v62  ;;  %v11504_v61 = vld [vmem:[%s12986_s0 + $0x168] sm:$0xff]   ;;  %v11505_v62 = vld [vmem:[%s12986_s0 + $0x498] sm:$0xff]  }
 0x1b1   :  { %10330 = vmatmul.mubr.msk.bf16.gmra.mrb[20].mxu0 %vm192_vm2, %v11442_v63  ;;  %10636 = vmatmul.mubr.msk.bf16.gmra.mrb[20].mxu1 %vm192_vm2, %v11443_v0  ;;  %v11506_v63 = vld [vmem:[%s12986_s0 + $0x170] sm:$0xff]   ;;  %v11507_v0 = vld [vmem:[%s12986_s0 + $0x4a0] sm:$0xff]  }
 0x1b2   :  { %10333 = vmatprep.mubr.msk.bf16.mxu0 %vm192_vm2, %v11444_v1  ;;  %10639 = vmatprep.mubr.msk.bf16.mxu1 %vm192_vm2, %v11445_v2  ;;  %v11508_v1 = vld [vmem:[%s12986_s0 + $0x178] sm:$0xff]   ;;  %v11509_v2 = vld [vmem:[%s12986_s0 + $0x4a8] sm:$0xff]  }
 0x1b9   :  { %10334 = vmatmul.mubr.msk.bf16.gmra.mrb[24].mxu0 %vm192_vm2, %v11446_v3  ;;  %10640 = vmatmul.mubr.msk.bf16.gmra.mrb[24].mxu1 %vm192_vm2, %v11447_v4  ;;  %v11510_v3 = vld [vmem:[%s12986_s0 + $0x180] sm:$0xff]   ;;  %v11511_v4 = vld [vmem:[%s12986_s0 + $0x4b0] sm:$0xff]  }
 0x1ba   :  { %10337 = vmatprep.mubr.msk.bf16.mxu0 %vm192_vm2, %v11448_v6  ;;  %10643 = vmatprep.mubr.msk.bf16.mxu1 %vm192_vm2, %v11449_v7  ;;  %v11512_v6 = vld [vmem:[%s12986_s0 + $0x188] sm:$0xff]   ;;  %v11513_v7 = vld [vmem:[%s12986_s0 + $0x4b8] sm:$0xff]  }
 0x1c1   :  { %10338 = vmatmul.mubr.msk.bf16.gmra.mrb[28].mxu0 %vm192_vm2, %v11450_v8  ;;  %10644 = vmatmul.mubr.msk.bf16.gmra.mrb[28].mxu1 %vm192_vm2, %v11451_v9  ;;  %v11514_v8 = vld [vmem:[%s12986_s0 + $0x190] sm:$0xff]   ;;  %v11515_v9 = vld [vmem:[%s12986_s0 + $0x4c0] sm:$0xff]  }
 0x1c2   :  { %10343 = vmatprep.mubr.msk.bf16.mxu0 %vm192_vm2, %v11452_v10  ;;  %10649 = vmatprep.mubr.msk.bf16.mxu1 %vm192_vm2, %v11453_v11  ;;  %v12814_v10 = vld [vmem:[%s12987_s2] ss:$0 sm:$0xff] }
 0x1c9   :  { %10344 = vmatmul.mubr.msk.bf16.vlgmr.msra.gmra.mrb[0].mxu0 %vm192_vm2, %v11454_v12  ;;  %10650 = vmatmul.mubr.msk.bf16.vlgmr.msra.gmra.mrb[0].mxu1 %vm192_vm2, %v11455_v13 }
 0x1ca   :  { %10376 = vmatpush3.bf16.msra.mxu0 %v12436_v46  ;;  %10682 = vmatpush3.bf16.msra.mxu1 %v12439_v47  ;;  %v11488_v46 = vld [vmem:[%s12986_s0 + $0x128] sm:$0xff]   ;;  %v11489_v47 = vld [vmem:[%s12986_s0 + $0x458] sm:$0xff]  }
 0x1cb   :  { %10347 = vmatprep.mubr.msk.bf16.mxu0 %vm192_vm2, %v11456_v14  ;;  %10653 = vmatprep.mubr.msk.bf16.mxu1 %vm192_vm2, %v11457_v15 }
 0x1d1   :  { %10348 = vmatmul.mubr.msk.bf16.gmra.mrb[4].mxu0 %vm192_vm2, %v11458_v16  ;;  %10654 = vmatmul.mubr.msk.bf16.gmra.mrb[4].mxu1 %vm192_vm2, %v11459_v17 }
 0x1d2   :  { %10351 = vmatprep.mubr.msk.bf16.mxu0 %vm192_vm2, %v11460_v18  ;;  %10657 = vmatprep.mubr.msk.bf16.mxu1 %vm192_vm2, %v11461_v19 }
 0x1d9   :  { %10352 = vmatmul.mubr.msk.bf16.gmra.mrb[8].mxu0 %vm192_vm2, %v11462_v20  ;;  %10658 = vmatmul.mubr.msk.bf16.gmra.mrb[8].mxu1 %vm192_vm2, %v11463_v21 }
 0x1da   :  { %10355 = vmatprep.mubr.msk.bf16.mxu0 %vm192_vm2, %v11464_v22  ;;  %10661 = vmatprep.mubr.msk.bf16.mxu1 %vm192_vm2, %v11465_v23 }
 0x1e1   :  { %10356 = vmatmul.mubr.msk.bf16.gmra.mrb[12].mxu0 %vm192_vm2, %v11466_v24  ;;  %10662 = vmatmul.mubr.msk.bf16.gmra.mrb[12].mxu1 %vm192_vm2, %v11467_v25 }
 0x1e2   :  { %10359 = vmatprep.mubr.msk.bf16.mxu0 %vm192_vm2, %v11468_v26  ;;  %10665 = vmatprep.mubr.msk.bf16.mxu1 %vm192_vm2, %v11469_v27 }
 0x1e9   :  { %10360 = vmatmul.mubr.msk.bf16.gmra.mrb[16].mxu0 %vm192_vm2, %v11470_v28  ;;  %10666 = vmatmul.mubr.msk.bf16.gmra.mrb[16].mxu1 %vm192_vm2, %v11471_v29 }
 0x1ea   :  { %10363 = vmatprep.mubr.msk.bf16.mxu0 %vm192_vm2, %v11472_v30  ;;  %10669 = vmatprep.mubr.msk.bf16.mxu1 %vm192_vm2, %v11473_v31 }
 0x1f1   :  { %10364 = vmatmul.mubr.msk.bf16.gmra.mrb[20].mxu0 %vm192_vm2, %v11474_v32  ;;  %10670 = vmatmul.mubr.msk.bf16.gmra.mrb[20].mxu1 %vm192_vm2, %v11475_v33 }
 0x1f2   :  { %10367 = vmatprep.mubr.msk.bf16.mxu0 %vm192_vm2, %v11476_v34  ;;  %10673 = vmatprep.mubr.msk.bf16.mxu1 %vm192_vm2, %v11477_v35 }
 0x1f9   :  { %10368 = vmatmul.mubr.msk.bf16.gmra.mrb[24].mxu0 %vm192_vm2, %v11478_v36  ;;  %10674 = vmatmul.mubr.msk.bf16.gmra.mrb[24].mxu1 %vm192_vm2, %v11479_v37 }
 0x1fa   :  { %10371 = vmatprep.mubr.msk.bf16.mxu0 %vm192_vm2, %v11480_v38  ;;  %10677 = vmatprep.mubr.msk.bf16.mxu1 %vm192_vm2, %v11481_v39 }
 0x201   :  { %10372 = vmatmul.mubr.msk.bf16.gmra.mrb[28].mxu0 %vm192_vm2, %v11482_v40  ;;  %10678 = vmatmul.mubr.msk.bf16.gmra.mrb[28].mxu1 %vm192_vm2, %v11483_v41 }
 0x202   :  { %10377 = vmatprep.mubr.msk.bf16.mxu0 %vm192_vm2, %v11484_v42  ;;  %10683 = vmatprep.mubr.msk.bf16.mxu1 %vm192_vm2, %v11485_v43 }
 0x209   :  { %10378 = vmatmul.mubr.msk.bf16.vlgmr.msra.gmra.mrb[0].mxu0 %vm192_vm2, %v11486_v44  ;;  %10684 = vmatmul.mubr.msk.bf16.vlgmr.msra.gmra.mrb[0].mxu1 %vm192_vm2, %v11487_v45 }
 0x20a   :  { %10381 = vmatprep.mubr.msk.bf16.mxu0 %vm192_vm2, %v11488_v46  ;;  %10687 = vmatprep.mubr.msk.bf16.mxu1 %vm192_vm2, %v11489_v47 }
 0x211   :  { %10382 = vmatmul.mubr.msk.bf16.gmra.mrb[4].mxu0 %vm192_vm2, %v11490_v5  ;;  %10688 = vmatmul.mubr.msk.bf16.gmra.mrb[4].mxu1 %vm192_vm2, %v11491_v48 }
 0x212   :  { %10385 = vmatprep.mubr.msk.bf16.mxu0 %vm192_vm2, %v11492_v49  ;;  %10691 = vmatprep.mubr.msk.bf16.mxu1 %vm192_vm2, %v11493_v50 }
 0x219   :  { %10386 = vmatmul.mubr.msk.bf16.gmra.mrb[8].mxu0 %vm192_vm2, %v11494_v51  ;;  %10692 = vmatmul.mubr.msk.bf16.gmra.mrb[8].mxu1 %vm192_vm2, %v11495_v52 }
 0x21a   :  { %10389 = vmatprep.mubr.msk.bf16.mxu0 %vm192_vm2, %v11496_v53  ;;  %10695 = vmatprep.mubr.msk.bf16.mxu1 %vm192_vm2, %v11497_v54 }
 0x221   :  { %10390 = vmatmul.mubr.msk.bf16.gmra.mrb[12].mxu0 %vm192_vm2, %v11498_v55  ;;  %10696 = vmatmul.mubr.msk.bf16.gmra.mrb[12].mxu1 %vm192_vm2, %v11499_v56 }
 0x222   :  { %10393 = vmatprep.mubr.msk.bf16.mxu0 %vm192_vm2, %v11500_v57  ;;  %10699 = vmatprep.mubr.msk.bf16.mxu1 %vm192_vm2, %v11501_v58 }
 0x229   :  { %10394 = vmatmul.mubr.msk.bf16.gmra.mrb[16].mxu0 %vm192_vm2, %v11502_v59  ;;  %10700 = vmatmul.mubr.msk.bf16.gmra.mrb[16].mxu1 %vm192_vm2, %v11503_v60 }
 0x22a   :  { %10397 = vmatprep.mubr.msk.bf16.mxu0 %vm192_vm2, %v11504_v61  ;;  %10703 = vmatprep.mubr.msk.bf16.mxu1 %vm192_vm2, %v11505_v62 }
 0x231   :  { %10398 = vmatmul.mubr.msk.bf16.gmra.mrb[20].mxu0 %vm192_vm2, %v11506_v63  ;;  %10704 = vmatmul.mubr.msk.bf16.gmra.mrb[20].mxu1 %vm192_vm2, %v11507_v0 }
 0x232   :  { %10401 = vmatprep.mubr.msk.bf16.mxu0 %vm192_vm2, %v11508_v1  ;;  %10707 = vmatprep.mubr.msk.bf16.mxu1 %vm192_vm2, %v11509_v2 }
 0x239   :  { %10402 = vmatmul.mubr.msk.bf16.gmra.mrb[24].mxu0 %vm192_vm2, %v11510_v3  ;;  %10708 = vmatmul.mubr.msk.bf16.gmra.mrb[24].mxu1 %vm192_vm2, %v11511_v4 }
 0x23a   :  { %10405 = vmatprep.mubr.msk.bf16.mxu0 %vm192_vm2, %v11512_v6  ;;  %10711 = vmatprep.mubr.msk.bf16.mxu1 %vm192_vm2, %v11513_v7 }
 0x241   :  { %10406 = vmatmul.mubr.msk.bf16.gmra.mrb[28].mxu0 %vm192_vm2, %v11514_v8  ;;  %10712 = vmatmul.mubr.msk.bf16.gmra.mrb[28].mxu1 %vm192_vm2, %v11515_v9 }
 0x2dc   :  { %v10379_v11 = vpop.f32.mrb[0].mxu0  ;;  %v10685_v12 = vpop.f32.mrb[0].mxu1 }
 0x2dd   :  { %v3895_v13 = vadd.f32 %v10379_v11, %v12814_v10  ;;  %v8049_v14 = vadd.f32 %v10685_v12, %v12814_v10  ;;  %v3663_v15 = vpop.f32.mrb[1].mxu0  ;;  %v7817_v16 = vpop.f32.mrb[1].mxu1 }
 0x2de   :  { %v3893_v17 = vadd.f32 %v12814_v10, %v3663_v15  ;;  %v8047_v18 = vadd.f32 %v12814_v10, %v7817_v16  ;;  %v10380_v19 = vpop.f32.mrb[2].mxu0  ;;  %v10686_v20 = vpop.f32.mrb[2].mxu1 }
 0x2df   :  { %vm3927_vm3 = vcmp.ge.f32.partialorder %v3895_v13, 0.0  ;;  %v3959_v21 = vmul.f32 0.01, %v3895_v13  ;;  %vm8081_vm4 = vcmp.ge.f32.partialorder %v8049_v14, 0.0  ;;  %v8113_v22 = vmul.f32 0.01, %v8049_v14 }
 0x2e0   :  { %vm3925_vm5 = vcmp.ge.f32.partialorder %v3893_v17, 0.0  ;;  %v3957_v23 = vmul.f32 0.01, %v3893_v17  ;;  %vm8079_vm6 = vcmp.ge.f32.partialorder %v8047_v18, 0.0  ;;  %v8111_v24 = vmul.f32 0.01, %v8047_v18 }
 0x2e1   :  { %v3896_v25 = vadd.f32 %v10380_v19, %v12814_v10  ;;  %v8050_v26 = vadd.f32 %v10686_v20, %v12814_v10  ;;  %v3666_v27 = vpop.f32.mrb[3].mxu0  ;;  %v7820_v28 = vpop.f32.mrb[3].mxu1  ;;  %v3991_v29 = vsel %vm3927_vm3, %v3895_v13, %v3959_v21  ;;  %v8145_v30 = vsel %vm8081_vm4, %v8049_v14, %v8113_v22 }
 0x2e2   :  { %v3894_v31 = vadd.f32 %v12814_v10, %v3666_v27  ;;  %v8048_v32 = vadd.f32 %v12814_v10, %v7820_v28  ;;  %v3989_v37 = vsel %vm3925_vm5, %v3893_v17, %v3957_v23  ;;  %v8143_v38 = vsel %vm8079_vm6, %v8047_v18, %v8111_v24 }
 0x2e3   :  { %vm3928_vm7 = vcmp.ge.f32.partialorder %v3896_v25, 0.0  ;;  %v3960_v33 = vmul.f32 0.01, %v3896_v25  ;;  %vm8082_vm8 = vcmp.ge.f32.partialorder %v8050_v26, 0.0  ;;  %v8114_v34 = vmul.f32 0.01, %v8050_v26 }
 0x2e4   :  { %vm3926_vm9 = vcmp.ge.f32.partialorder %v3894_v31, 0.0  ;;  %v3958_v35 = vmul.f32 0.01, %v3894_v31  ;;  %vm8080_vm10 = vcmp.ge.f32.partialorder %v8048_v32, 0.0  ;;  %v8112_v36 = vmul.f32 0.01, %v8048_v32 }
 0x2e5   :  { %v3992_v39 = vsel %vm3928_vm7, %v3896_v25, %v3960_v33  ;;  %v8146_v40 = vsel %vm8082_vm8, %v8050_v26, %v8114_v34  ;;  %v10383_v41 = vpop.f32.mrb[4].mxu0  ;;  %v10689_v42 = vpop.f32.mrb[4].mxu1 }
 0x2e6   :  { %v9614_v43 = vpack.c.bf16 %v3992_v39, %v3991_v29  ;;  %v9694_v44 = vpack.c.bf16 %v8146_v40, %v8145_v30  ;;  %v3990_v45 = vsel %vm3926_vm9, %v3894_v31, %v3958_v35  ;;  %v8144_v46 = vsel %vm8080_vm10, %v8048_v32, %v8112_v36  ;;  %v3679_v47 = vpop.f32.mrb[5].mxu0  ;;  %v7833_v5 = vpop.f32.mrb[5].mxu1 }
 0x2e7   :  { %v9609_v48 = vpack.c.bf16 %v3990_v45, %v3989_v37  ;;  %v9689_v49 = vpack.c.bf16 %v8144_v46, %v8143_v38  ;;  %v3899_v50 = vadd.f32 %v10383_v41, %v12814_v10  ;;  %v8053_v51 = vadd.f32 %v10689_v42, %v12814_v10  ;;  %v10384_v52 = vpop.f32.mrb[6].mxu0  ;;  %v10690_v53 = vpop.f32.mrb[6].mxu1 }
 0x2e8   :  { %9766 = vst [vmem:[%s12988_s3 + $0x8] sm:$0xff] %v9614_v43   ;;  %9782 = vst [vmem:[%s12988_s3 + $0x88] sm:$0xff] %v9694_v44   ;;  %v3897_v54 = vadd.f32 %v12814_v10, %v3679_v47  ;;  %v8051_v55 = vadd.f32 %v12814_v10, %v7833_v5  ;;  %v3900_v56 = vadd.f32 %v10384_v52, %v12814_v10  ;;  %v3682_v58 = vpop.f32.mrb[7].mxu0  ;;  %v7836_v59 = vpop.f32.mrb[7].mxu1 }
 0x2e9   :  { %v8054_v57 = vadd.f32 %v10690_v53, %v12814_v10  ;;  %9610 = vst [vmem:[%s12988_s3] sm:$0xff] %v9609_v48   ;;  %9781 = vst [vmem:[%s12988_s3 + $0x80] sm:$0xff] %v9689_v49   ;;  %vm3931_vm11 = vcmp.ge.f32.partialorder %v3899_v50, 0.0  ;;  %v3963_v60 = vmul.f32 0.01, %v3899_v50  ;;  %vm8085_vm12 = vcmp.ge.f32.partialorder %v8053_v51, 0.0 }
 0x2ea   :  { %v8117_v61 = vmul.f32 0.01, %v8053_v51  ;;  %vm3929_vm13 = vcmp.ge.f32.partialorder %v3897_v54, 0.0  ;;  %v3961_v62 = vmul.f32 0.01, %v3897_v54  ;;  %vm8083_vm14 = vcmp.ge.f32.partialorder %v8051_v55, 0.0 }
 0x2eb   :  { %v8115_v63 = vmul.f32 0.01, %v8051_v55  ;;  %v3995_v0 = vsel %vm3931_vm11, %v3899_v50, %v3963_v60  ;;  %vm3932_vm15 = vcmp.ge.f32.partialorder %v3900_v56, 0.0  ;;  %v3964_v2 = vmul.f32 0.01, %v3900_v56 }
 0x2ec   :  { %v8149_v1 = vsel %vm8085_vm12, %v8053_v51, %v8117_v61  ;;  %v3993_v3 = vsel %vm3929_vm13, %v3897_v54, %v3961_v62  ;;  %vm8086_vm0 = vcmp.ge.f32.partialorder %v8054_v57, 0.0  ;;  %v8118_v6 = vmul.f32 0.01, %v8054_v57  ;;  %v10387_v7 = vpop.f32.mrb[8].mxu0  ;;  %v10693_v8 = vpop.f32.mrb[8].mxu1 }
 0x2ed   :  { %v8147_v4 = vsel %vm8083_vm14, %v8051_v55, %v8115_v63  ;;  %v3996_v9 = vsel %vm3932_vm15, %v3900_v56, %v3964_v2  ;;  %v3898_v11 = vadd.f32 %v12814_v10, %v3682_v58  ;;  %v8052_v12 = vadd.f32 %v12814_v10, %v7836_v59  ;;  %v3695_v14 = vpop.f32.mrb[9].mxu0  ;;  %v7849_v15 = vpop.f32.mrb[9].mxu1 }
 0x2ee   :  { %v3903_v13 = vadd.f32 %v10387_v7, %v12814_v10  ;;  %v9624_v16 = vpack.c.bf16 %v3996_v9, %v3995_v0  ;;  %v8150_v17 = vsel %vm8086_vm0, %v8054_v57, %v8118_v6  ;;  %v8057_v18 = vadd.f32 %v10693_v8, %v12814_v10  ;;  %v10388_v20 = vpop.f32.mrb[10].mxu0  ;;  %v10694_v21 = vpop.f32.mrb[10].mxu1 }
 0x2ef   :  { %v3901_v19 = vadd.f32 %v12814_v10, %v3695_v14  ;;  %v9704_v22 = vpack.c.bf16 %v8150_v17, %v8149_v1  ;;  %vm3930_vm1 = vcmp.ge.f32.partialorder %v3898_v11, 0.0  ;;  %v3962_v23 = vmul.f32 0.01, %v3898_v11  ;;  %v3698_v24 = vpop.f32.mrb[11].mxu0  ;;  %v7852_v25 = vpop.f32.mrb[11].mxu1 }
 0x2f0   :  { %vm8084_vm2 = vcmp.ge.f32.partialorder %v8052_v12, 0.0  ;;  %9768 = vst [vmem:[%s12988_s3 + $0x18] sm:$0xff] %v9624_v16   ;;  %v8116_v26 = vmul.f32 0.01, %v8052_v12  ;;  %vm3935_vm3 = vcmp.ge.f32.partialorder %v3903_v13, 0.0  ;;  %vm8089_vm4 = vcmp.ge.f32.partialorder %v8057_v18, 0.0 }
 0x2f1   :  { %v3967_v27 = vmul.f32 0.01, %v3903_v13  ;;  %9784 = vst [vmem:[%s12988_s3 + $0x98] sm:$0xff] %v9704_v22   ;;  %v3994_v28 = vsel %vm3930_vm1, %v3898_v11, %v3962_v23  ;;  %v8121_v29 = vmul.f32 0.01, %v8057_v18  ;;  %vm3933_vm5 = vcmp.ge.f32.partialorder %v3901_v19, 0.0 }
 0x2f2   :  { %v3965_v30 = vmul.f32 0.01, %v3901_v19  ;;  %v9619_v31 = vpack.c.bf16 %v3994_v28, %v3993_v3  ;;  %v8148_v32 = vsel %vm8084_vm2, %v8052_v12, %v8116_v26  ;;  %v8055_v34 = vadd.f32 %v12814_v10, %v7849_v15 }
 0x2f3   :  { %v3999_v33 = vsel %vm3935_vm3, %v3903_v13, %v3967_v27  ;;  %v9699_v35 = vpack.c.bf16 %v8148_v32, %v8147_v4  ;;  %v8153_v36 = vsel %vm8089_vm4, %v8057_v18, %v8121_v29  ;;  %v3904_v38 = vadd.f32 %v10388_v20, %v12814_v10 }
 0x2f4   :  { %v3997_v37 = vsel %vm3933_vm5, %v3901_v19, %v3965_v30  ;;  %9767 = vst [vmem:[%s12988_s3 + $0x10] sm:$0xff] %v9619_v31   ;;  %vm8087_vm6 = vcmp.ge.f32.partialorder %v8055_v34, 0.0  ;;  %v8119_v39 = vmul.f32 0.01, %v8055_v34  ;;  %v8058_v40 = vadd.f32 %v10694_v21, %v12814_v10  ;;  %v10391_v42 = vpop.f32.mrb[12].mxu0  ;;  %v10697_v43 = vpop.f32.mrb[12].mxu1 }
 0x2f5   :  { %v3902_v41 = vadd.f32 %v12814_v10, %v3698_v24  ;;  %9783 = vst [vmem:[%s12988_s3 + $0x90] sm:$0xff] %v9699_v35   ;;  %vm3936_vm7 = vcmp.ge.f32.partialorder %v3904_v38, 0.0  ;;  %v3968_v44 = vmul.f32 0.01, %v3904_v38  ;;  %v8056_v45 = vadd.f32 %v12814_v10, %v7852_v25  ;;  %v3711_v47 = vpop.f32.mrb[13].mxu0  ;;  %v7865_v5 = vpop.f32.mrb[13].mxu1 }
 0x2f6   :  { %v3907_v46 = vadd.f32 %v10391_v42, %v12814_v10  ;;  %v8151_v48 = vsel %vm8087_vm6, %v8055_v34, %v8119_v39  ;;  %vm8090_vm8 = vcmp.ge.f32.partialorder %v8058_v40, 0.0  ;;  %v8122_v49 = vmul.f32 0.01, %v8058_v40  ;;  %v10392_v50 = vpop.f32.mrb[14].mxu0  ;;  %v10698_v51 = vpop.f32.mrb[14].mxu1 }
 0x2f7   :  { %vm3934_vm9 = vcmp.ge.f32.partialorder %v3902_v41, 0.0  ;;  %v4000_v52 = vsel %vm3936_vm7, %v3904_v38, %v3968_v44  ;;  %v3966_v53 = vmul.f32 0.01, %v3902_v41  ;;  %vm8088_vm10 = vcmp.ge.f32.partialorder %v8056_v45, 0.0  ;;  %v3714_v55 = vpop.f32.mrb[15].mxu0  ;;  %v7868_v59 = vpop.f32.mrb[15].mxu1 }
 0x2f8   :  { %v8120_v54 = vmul.f32 0.01, %v8056_v45  ;;  %v9634_v56 = vpack.c.bf16 %v4000_v52, %v3999_v33  ;;  %v8154_v57 = vsel %vm8090_vm8, %v8058_v40, %v8122_v49  ;;  %vm3939_vm11 = vcmp.ge.f32.partialorder %v3907_v46, 0.0 }
 0x2f9   :  { %v3971_v58 = vmul.f32 0.01, %v3907_v46  ;;  %v9714_v60 = vpack.c.bf16 %v8154_v57, %v8153_v36  ;;  %v3998_v61 = vsel %vm3934_vm9, %v3902_v41, %v3966_v53  ;;  %v8061_v63 = vadd.f32 %v10697_v43, %v12814_v10 }
 0x2fa   :  { %v8152_v62 = vsel %vm8088_vm10, %v8056_v45, %v8120_v54  ;;  %9770 = vst [vmem:[%s12988_s3 + $0x28] sm:$0xff] %v9634_v56   ;;  %v9629_v0 = vpack.c.bf16 %v3998_v61, %v3997_v37  ;;  %v3905_v3 = vadd.f32 %v12814_v10, %v3711_v47  ;;  %v8059_v6 = vadd.f32 %v12814_v10, %v7865_v5 }
 0x2fb   :  { %v9709_v1 = vpack.c.bf16 %v8152_v62, %v8151_v48  ;;  %v4003_v2 = vsel %vm3939_vm11, %v3907_v46, %v3971_v58  ;;  %9786 = vst [vmem:[%s12988_s3 + $0xa8] sm:$0xff] %v9714_v60   ;;  %vm8093_vm12 = vcmp.ge.f32.partialorder %v8061_v63, 0.0  ;;  %v8125_v4 = vmul.f32 0.01, %v8061_v63 }
 0x2fc   :  { %v3908_v7 = vadd.f32 %v10392_v50, %v12814_v10  ;;  %9769 = vst [vmem:[%s12988_s3 + $0x20] sm:$0xff] %v9629_v0   ;;  %vm3937_vm13 = vcmp.ge.f32.partialorder %v3905_v3, 0.0  ;;  %v3969_v8 = vmul.f32 0.01, %v3905_v3  ;;  %v8062_v9 = vadd.f32 %v10698_v51, %v12814_v10  ;;  %v10395_v12 = vpop.f32.mrb[16].mxu0  ;;  %v10701_v13 = vpop.f32.mrb[16].mxu1 }
 0x2fd   :  { %9785 = vst [vmem:[%s12988_s3 + $0xa0] sm:$0xff] %v9709_v1   ;;  %v3906_v11 = vadd.f32 %v12814_v10, %v3714_v55  ;;  %v8157_v14 = vsel %vm8093_vm12, %v8061_v63, %v8125_v4  ;;  %vm8091_vm14 = vcmp.ge.f32.partialorder %v8059_v6, 0.0  ;;  %v8123_v15 = vmul.f32 0.01, %v8059_v6  ;;  %v3727_v16 = vpop.f32.mrb[17].mxu0  ;;  %v7881_v17 = vpop.f32.mrb[17].mxu1 }
 0x2fe   :  { %vm3940_vm15 = vcmp.ge.f32.partialorder %v3908_v7, 0.0  ;;  %v4001_v18 = vsel %vm3937_vm13, %v3905_v3, %v3969_v8  ;;  %v3972_v19 = vmul.f32 0.01, %v3908_v7  ;;  %vm8094_vm0 = vcmp.ge.f32.partialorder %v8062_v9, 0.0  ;;  %v10396_v21 = vpop.f32.mrb[18].mxu0  ;;  %v10702_v25 = vpop.f32.mrb[18].mxu1 }
 0x2ff   :  { %v8126_v20 = vmul.f32 0.01, %v8062_v9  ;;  %v8155_v22 = vsel %vm8091_vm14, %v8059_v6, %v8123_v15  ;;  %vm3938_vm1 = vcmp.ge.f32.partialorder %v3906_v11, 0.0  ;;  %v3970_v23 = vmul.f32 0.01, %v3906_v11  ;;  %v3730_v26 = vpop.f32.mrb[19].mxu0 }
 0x300   :  { %v8060_v24 = vadd.f32 %v12814_v10, %v7868_v59  ;;  %v4004_v27 = vsel %vm3940_vm15, %v3908_v7, %v3972_v19  ;;  %v3911_v29 = vadd.f32 %v10395_v12, %v12814_v10  ;;  %v8065_v30 = vadd.f32 %v10701_v13, %v12814_v10  ;;  %v7884_v31 = vpop.f32.mrb[19].mxu1 }
 0x301   :  { %v8158_v28 = vsel %vm8094_vm0, %v8062_v9, %v8126_v20  ;;  %v9644_v32 = vpack.c.bf16 %v4004_v27, %v4003_v2  ;;  %v4002_v34 = vsel %vm3938_vm1, %v3906_v11, %v3970_v23  ;;  %v3909_v39 = vadd.f32 %v12814_v10, %v3727_v16 }
 0x302   :  { %v9724_v33 = vpack.c.bf16 %v8158_v28, %v8157_v14  ;;  %vm8092_vm2 = vcmp.ge.f32.partialorder %v8060_v24, 0.0  ;;  %v9639_v35 = vpack.c.bf16 %v4002_v34, %v4001_v18  ;;  %v8124_v36 = vmul.f32 0.01, %v8060_v24 }
 0x303   :  { %vm3943_vm3 = vcmp.ge.f32.partialorder %v3911_v29, 0.0  ;;  %v3975_v37 = vmul.f32 0.01, %v3911_v29  ;;  %9772 = vst [vmem:[%s12988_s3 + $0x38] sm:$0xff] %v9644_v32   ;;  %vm8097_vm4 = vcmp.ge.f32.partialorder %v8065_v30, 0.0  ;;  %v8063_v40 = vadd.f32 %v12814_v10, %v7881_v17 }
 0x304   :  { %9788 = vst [vmem:[%s12988_s3 + $0xb8] sm:$0xff] %v9724_v33   ;;  %v8129_v38 = vmul.f32 0.01, %v8065_v30  ;;  %9771 = vst [vmem:[%s12988_s3 + $0x30] sm:$0xff] %v9639_v35   ;;  %v8156_v41 = vsel %vm8092_vm2, %v8060_v24, %v8124_v36  ;;  %v3912_v43 = vadd.f32 %v10396_v21, %v12814_v10  ;;  %v8066_v44 = vadd.f32 %v10702_v25, %v12814_v10  ;;  %v10399_v45 = vpop.f32.mrb[20].mxu0  ;;  %v10705_v46 = vpop.f32.mrb[20].mxu1 }
 0x305   :  { %v4007_v42 = vsel %vm3943_vm3, %v3911_v29, %v3975_v37  ;;  %v9719_v47 = vpack.c.bf16 %v8156_v41, %v8155_v22  ;;  %vm3941_vm5 = vcmp.ge.f32.partialorder %v3909_v39, 0.0  ;;  %v3973_v48 = vmul.f32 0.01, %v3909_v39  ;;  %v3743_v49 = vpop.f32.mrb[21].mxu0  ;;  %v7897_v50 = vpop.f32.mrb[21].mxu1 }
 0x306   :  { %v8161_v5 = vsel %vm8097_vm4, %v8065_v30, %v8129_v38  ;;  %vm8095_vm6 = vcmp.ge.f32.partialorder %v8063_v40, 0.0  ;;  %v8127_v51 = vmul.f32 0.01, %v8063_v40  ;;  %vm3944_vm7 = vcmp.ge.f32.partialorder %v3912_v43, 0.0  ;;  %v10400_v56 = vpop.f32.mrb[22].mxu0  ;;  %v10706_v57 = vpop.f32.mrb[22].mxu1 }
 0x307   :  { %v3976_v52 = vmul.f32 0.01, %v3912_v43  ;;  %9787 = vst [vmem:[%s12988_s3 + $0xb0] sm:$0xff] %v9719_v47   ;;  %v4005_v53 = vsel %vm3941_vm5, %v3909_v39, %v3973_v48  ;;  %vm8098_vm8 = vcmp.ge.f32.partialorder %v8066_v44, 0.0  ;;  %v8130_v54 = vmul.f32 0.01, %v8066_v44 }
 0x308   :  { %v3910_v55 = vadd.f32 %v12814_v10, %v3730_v26  ;;  %v8159_v58 = vsel %vm8095_vm6, %v8063_v40, %v8127_v51  ;;  %v8064_v60 = vadd.f32 %v12814_v10, %v7884_v31  ;;  %v3915_v61 = vadd.f32 %v10399_v45, %v12814_v10  ;;  %v3746_v62 = vpop.f32.mrb[23].mxu0  ;;  %v7900_v63 = vpop.f32.mrb[23].mxu1 }
 0x309   :  { %v4008_v59 = vsel %vm3944_vm7, %v3912_v43, %v3976_v52  ;;  %v8162_v1 = vsel %vm8098_vm8, %v8066_v44, %v8130_v54  ;;  %v8069_v8 = vadd.f32 %v10705_v46, %v12814_v10  ;;  %v3913_v9 = vadd.f32 %v12814_v10, %v3743_v49 }
 0x30a   :  { %v9654_v0 = vpack.c.bf16 %v4008_v59, %v4007_v42  ;;  %vm3942_vm9 = vcmp.ge.f32.partialorder %v3910_v55, 0.0  ;;  %v3974_v2 = vmul.f32 0.01, %v3910_v55  ;;  %v9734_v3 = vpack.c.bf16 %v8162_v1, %v8161_v5 }
 0x30b   :  { %vm8096_vm10 = vcmp.ge.f32.partialorder %v8064_v60, 0.0  ;;  %v8128_v4 = vmul.f32 0.01, %v8064_v60  ;;  %vm3947_vm11 = vcmp.ge.f32.partialorder %v3915_v61, 0.0  ;;  %v3979_v7 = vmul.f32 0.01, %v3915_v61 }
 0x30c   :  { %9774 = vst [vmem:[%s12988_s3 + $0x48] sm:$0xff] %v9654_v0   ;;  %v4006_v6 = vsel %vm3942_vm9, %v3910_v55, %v3974_v2  ;;  %9790 = vst [vmem:[%s12988_s3 + $0xc8] sm:$0xff] %v9734_v3   ;;  %v8067_v13 = vadd.f32 %v12814_v10, %v7897_v50  ;;  %v3916_v14 = vadd.f32 %v10400_v56, %v12814_v10  ;;  %v10403_v15 = vpop.f32.mrb[24].mxu0  ;;  %v10709_v16 = vpop.f32.mrb[24].mxu1  ;;  %vm8101_vm12 = vcmp.ge.f32.partialorder %v8069_v8, 0.0 }
 0x30d   :  { %v9649_v11 = vpack.c.bf16 %v4006_v6, %v4005_v53  ;;  %v8160_v12 = vsel %vm8096_vm10, %v8064_v60, %v8128_v4  ;;  %v8133_v18 = vmul.f32 0.01, %v8069_v8  ;;  %v3759_v19 = vpop.f32.mrb[25].mxu0  ;;  %v7913_v20 = vpop.f32.mrb[25].mxu1  ;;  %v4011_v21 = vsel %vm3947_vm11, %v3915_v61, %v3979_v7 }
 0x30e   :  { %v9729_v17 = vpack.c.bf16 %v8160_v12, %v8159_v58  ;;  %vm3945_vm13 = vcmp.ge.f32.partialorder %v3913_v9, 0.0  ;;  %v3977_v22 = vmul.f32 0.01, %v3913_v9  ;;  %v8131_v23 = vmul.f32 0.01, %v8067_v13  ;;  %v10404_v26 = vpop.f32.mrb[26].mxu0 }
 0x30f   :  { %9773 = vst [vmem:[%s12988_s3 + $0x40] sm:$0xff] %v9649_v11   ;;  %vm8099_vm14 = vcmp.ge.f32.partialorder %v8067_v13, 0.0  ;;  %vm3948_vm15 = vcmp.ge.f32.partialorder %v3916_v14, 0.0  ;;  %v3980_v24 = vmul.f32 0.01, %v3916_v14  ;;  %v8070_v25 = vadd.f32 %v10706_v57, %v12814_v10  ;;  %v10710_v27 = vpop.f32.mrb[26].mxu1 }
 0x310   :  { %9789 = vst [vmem:[%s12988_s3 + $0xc0] sm:$0xff] %v9729_v17   ;;  %v8165_v28 = vsel %vm8101_vm12, %v8069_v8, %v8133_v18  ;;  %v4009_v29 = vsel %vm3945_vm13, %v3913_v9, %v3977_v22  ;;  %v3914_v30 = vadd.f32 %v12814_v10, %v3746_v62  ;;  %v8068_v31 = vadd.f32 %v12814_v10, %v7900_v63  ;;  %v3762_v32 = vpop.f32.mrb[27].mxu0  ;;  %v7916_v33 = vpop.f32.mrb[27].mxu1 }
 0x311   :  { %v4012_v34 = vsel %vm3948_vm15, %v3916_v14, %v3980_v24  ;;  %vm8102_vm0 = vcmp.ge.f32.partialorder %v8070_v25, 0.0  ;;  %v8134_v35 = vmul.f32 0.01, %v8070_v25  ;;  %v3919_v36 = vadd.f32 %v10403_v15, %v12814_v10 }
 0x312   :  { %v9664_v37 = vpack.c.bf16 %v4012_v34, %v4011_v21  ;;  %vm3946_vm1 = vcmp.ge.f32.partialorder %v3914_v30, 0.0  ;;  %v3978_v38 = vmul.f32 0.01, %v3914_v30  ;;  %vm8100_vm2 = vcmp.ge.f32.partialorder %v8068_v31, 0.0 }
 0x313   :  { %v8166_v39 = vsel %vm8102_vm0, %v8070_v25, %v8134_v35  ;;  %v8132_v40 = vmul.f32 0.01, %v8068_v31  ;;  %vm3951_vm3 = vcmp.ge.f32.partialorder %v3919_v36, 0.0  ;;  %v3983_v41 = vmul.f32 0.01, %v3919_v36 }
 0x314   :  { %9776 = vst [vmem:[%s12988_s3 + $0x58] sm:$0xff] %v9664_v37   ;;  %v9744_v42 = vpack.c.bf16 %v8166_v39, %v8165_v28  ;;  %v4010_v43 = vsel %vm3946_vm1, %v3914_v30, %v3978_v38  ;;  %v8073_v44 = vadd.f32 %v10709_v16, %v12814_v10  ;;  %v3917_v45 = vadd.f32 %v12814_v10, %v3759_v19  ;;  %v10407_v46 = vpop.f32.mrb[28].mxu0  ;;  %v10713_v47 = vpop.f32.mrb[28].mxu1 }
 0x315   :  { %v8163_v5 = vsel %vm8099_vm14, %v8067_v13, %v8131_v23  ;;  %v9659_v48 = vpack.c.bf16 %v4010_v43, %v4009_v29  ;;  %v8164_v49 = vsel %vm8100_vm2, %v8068_v31, %v8132_v40  ;;  %v8071_v50 = vadd.f32 %v12814_v10, %v7913_v20  ;;  %v3775_v51 = vpop.f32.mrb[29].mxu0  ;;  %v7929_v52 = vpop.f32.mrb[29].mxu1 }
 0x316   :  { %9792 = vst [vmem:[%s12988_s3 + $0xd8] sm:$0xff] %v9744_v42   ;;  %v9739_v53 = vpack.c.bf16 %v8164_v49, %v8163_v5  ;;  %vm8105_vm4 = vcmp.ge.f32.partialorder %v8073_v44, 0.0  ;;  %v8137_v54 = vmul.f32 0.01, %v8073_v44  ;;  %vm3949_vm5 = vcmp.ge.f32.partialorder %v3917_v45, 0.0  ;;  %v10408_v55 = vpop.f32.mrb[30].mxu0 }
 0x317   :  { %v10714_v56 = vpop.f32.mrb[30].mxu1  ;;  %9775 = vst [vmem:[%s12988_s3 + $0x50] sm:$0xff] %v9659_v48   ;;  %v4015_v57 = vsel %vm3951_vm3, %v3919_v36, %v3983_v41  ;;  %v3981_v58 = vmul.f32 0.01, %v3917_v45  ;;  %vm8103_vm6 = vcmp.ge.f32.partialorder %v8071_v50, 0.0  ;;  %v3920_v59 = vadd.f32 %v10404_v26, %v12814_v10  ;;  %v3778_v60 = vpop.f32.mrb[31].mxu0 }
 0x318   :  { %9791 = vst [vmem:[%s12988_s3 + $0xd0] sm:$0xff] %v9739_v53   ;;  %v8135_v61 = vmul.f32 0.01, %v8071_v50  ;;  %v8074_v62 = vadd.f32 %v10710_v27, %v12814_v10  ;;  %v3918_v63 = vadd.f32 %v12814_v10, %v3762_v32  ;;  %v8072_v0 = vadd.f32 %v12814_v10, %v7916_v33  ;;  %v7932_v1 = vpop.f32.mrb[31].mxu1 }
 0x319   :  { %v8169_v2 = vsel %vm8105_vm4, %v8073_v44, %v8137_v54  ;;  %v4013_v3 = vsel %vm3949_vm5, %v3917_v45, %v3981_v58  ;;  %vm3952_vm7 = vcmp.ge.f32.partialorder %v3920_v59, 0.0  ;;  %v3984_v4 = vmul.f32 0.01, %v3920_v59 }
 0x31a   :  { %vm8106_vm8 = vcmp.ge.f32.partialorder %v8074_v62, 0.0  ;;  %v8138_v6 = vmul.f32 0.01, %v8074_v62  ;;  %vm3950_vm9 = vcmp.ge.f32.partialorder %v3918_v63, 0.0  ;;  %v3982_v7 = vmul.f32 0.01, %v3918_v63 }
 0x31b   :  { %v4016_v8 = vsel %vm3952_vm7, %v3920_v59, %v3984_v4  ;;  %vm8104_vm10 = vcmp.ge.f32.partialorder %v8072_v0, 0.0  ;;  %v8136_v9 = vmul.f32 0.01, %v8072_v0  ;;  %v3923_v11 = vadd.f32 %v10407_v46, %v12814_v10 }
 0x31c   :  { %v9674_v12 = vpack.c.bf16 %v4016_v8, %v4015_v57  ;;  %v8170_v13 = vsel %vm8106_vm8, %v8074_v62, %v8138_v6  ;;  %v4014_v14 = vsel %vm3950_vm9, %v3918_v63, %v3982_v7  ;;  %v8077_v15 = vadd.f32 %v10713_v47, %v12814_v10 }
 0x31d   :  { %v8167_v16 = vsel %vm8103_vm6, %v8071_v50, %v8135_v61  ;;  %v9754_v17 = vpack.c.bf16 %v8170_v13, %v8169_v2  ;;  %v9669_v18 = vpack.c.bf16 %v4014_v14, %v4013_v3  ;;  %v8168_v19 = vsel %vm8104_vm10, %v8072_v0, %v8136_v9 }
 0x31e   :  { %9778 = vst [vmem:[%s12988_s3 + $0x68] sm:$0xff] %v9674_v12   ;;  %v9749_v20 = vpack.c.bf16 %v8168_v19, %v8167_v16  ;;  %vm3955_vm11 = vcmp.ge.f32.partialorder %v3923_v11, 0.0  ;;  %v3987_v21 = vmul.f32 0.01, %v3923_v11  ;;  %v8141_v22 = vmul.f32 0.01, %v8077_v15 }
 0x31f   :  { %9794 = vst [vmem:[%s12988_s3 + $0xe8] sm:$0xff] %v9754_v17   ;;  %9777 = vst [vmem:[%s12988_s3 + $0x60] sm:$0xff] %v9669_v18   ;;  %v3921_v23 = vadd.f32 %v12814_v10, %v3775_v51  ;;  %v8075_v24 = vadd.f32 %v12814_v10, %v7929_v52  ;;  %v3924_v25 = vadd.f32 %v10408_v55, %v12814_v10  ;;  %vm8109_vm12 = vcmp.ge.f32.partialorder %v8077_v15, 0.0 }
 0x320   :  { %v8078_v26 = vadd.f32 %v10714_v56, %v12814_v10  ;;  %9793 = vst [vmem:[%s12988_s3 + $0xe0] sm:$0xff] %v9749_v20   ;;  %v3922_v27 = vadd.f32 %v12814_v10, %v3778_v60  ;;  %v8076_v28 = vadd.f32 %v12814_v10, %v7932_v1  ;;  %v4019_v29 = vsel %vm3955_vm11, %v3923_v11, %v3987_v21 }
 0x321   :  { %vm3953_vm13 = vcmp.ge.f32.partialorder %v3921_v23, 0.0  ;;  %v3985_v30 = vmul.f32 0.01, %v3921_v23  ;;  %v8139_v31 = vmul.f32 0.01, %v8075_v24  ;;  %vm3956_vm14 = vcmp.ge.f32.partialorder %v3924_v25, 0.0 }
 0x322   :  { %v3988_v32 = vmul.f32 0.01, %v3924_v25  ;;  %vm8110_vm15 = vcmp.ge.f32.partialorder %v8078_v26, 0.0  ;;  %v8142_v33 = vmul.f32 0.01, %v8078_v26  ;;  %v8173_v34 = vsel %vm8109_vm12, %v8077_v15, %v8141_v22 }
 0x323   :  { %vm8107_vm0 = vcmp.ge.f32.partialorder %v8075_v24, 0.0  ;;  %vm3954_vm1 = vcmp.ge.f32.partialorder %v3922_v27, 0.0  ;;  %v3986_v35 = vmul.f32 0.01, %v3922_v27  ;;  %vm8108_vm2 = vcmp.ge.f32.partialorder %v8076_v28, 0.0 }
 0x324   :  { %v4020_v36 = vsel %vm3956_vm14, %v3924_v25, %v3988_v32  ;;  %v8174_v37 = vsel %vm8110_vm15, %v8078_v26, %v8142_v33  ;;  %v8140_v38 = vmul.f32 0.01, %v8076_v28  ;;  %v4017_v39 = vsel %vm3953_vm13, %v3921_v23, %v3985_v30 }
 0x325   :  { %v9684_v40 = vpack.c.bf16 %v4020_v36, %v4019_v29  ;;  %v9764_v41 = vpack.c.bf16 %v8174_v37, %v8173_v34  ;;  %v4018_v10 = vsel %vm3954_vm1, %v3922_v27, %v3986_v35  ;;  %v8171_v42 = vsel %vm8107_vm0, %v8075_v24, %v8139_v31 }
 0x326   :  { %v9679_v43 = vpack.c.bf16 %v4018_v10, %v4017_v39  ;;  %v8172_v44 = vsel %vm8108_vm2, %v8076_v28, %v8140_v38 }
 0x327   :  { %9780 = vst [vmem:[%s12988_s3 + $0x78] sm:$0xff] %v9684_v40   ;;  %9796 = vst [vmem:[%s12988_s3 + $0xf8] sm:$0xff] %v9764_v41   ;;  %v9759_v45 = vpack.c.bf16 %v8172_v44, %v8171_v42 }
 0x328   :  { %9779 = vst [vmem:[%s12988_s3 + $0x70] sm:$0xff] %v9679_v43  }
 0x329   :  { %9795 = vst [vmem:[%s12988_s3 + $0xf0] sm:$0xff] %v9759_v45  }

</bundles_post_ra>
